<compile_context>
chip_gen: v5e
topology: v5e:2x2
jax: 0.10.0
libtpu: 0.0.40
codegen_flags: <defaults>
</compile_context>

<pallas_src>
import functools

import jax
import jax.numpy as jnp
from jax.experimental import pallas as pl
from jax.experimental.pallas import tpu as pltpu


_CPAD = 16  # channel-segment padding: aligns both f32 (8,128) and bf16 (16,128) tiles


def _round_up(v, m):
    return (v + m - 1) // m * m


def _dense_block_kernel(x_ref, w_ref, mask_ref, o_ref, patch_ref, *,
                        nb_layers, c0_pad, g_pad, width, lanes):
    """Fused DenseBlock for one grid step (one fold of the batch).

    x_ref    : (c0_pad, lanes) f32   input channels (zero-padded), pixels+batch on lanes
    w_ref    : (L, g_pad, K_max) bf16 packed per-layer weights (zero-padded)
    mask_ref : (9, lanes) f32        0/1 border-validity mask per tap
    o_ref    : (c0_pad + L*g_pad, lanes) f32 resident feature map / output
    patch_ref: (9*(c0_pad + (L-1)*g_pad), lanes) bf16 incremental im2col scratch
    """
    W = width
    L = nb_layers
    offsets = [(dy, dx) for dy in (-1, 0, 1) for dx in (-1, 0, 1)]

    mask = mask_ref[...]                                     # (9, lanes) f32 of {0,1}

    def append_segment(src, base, rows):
        # src: (rows, lanes) f32.  Writes the 9 rolled+masked taps of this
        # channel segment into patch rows [base + t*rows, base + (t+1)*rows).
        for t, (dy, dx) in enumerate(offsets):
            d = dy * W + dx
            shifted = src if d == 0 else pltpu.roll(src, (-d) % lanes, axis=1)
            patch_ref[base + t * rows: base + (t + 1) * rows, :] = (
                shifted * mask[t:t + 1, :]).astype(patch_ref.dtype)

    # Input channels: copy into the resident output and seed the im2col patch.
    x = x_ref[...]                                           # (c0_pad, lanes) f32
    o_ref[0:c0_pad, :] = x
    append_segment(x, 0, c0_pad)

    k = 9 * c0_pad                                           # valid patch rows so far
    for l in range(L):
        w = w_ref[l, :, 0:k]                                 # (g_pad, k) bf16
        patch = patch_ref[0:k, :]                            # (k, lanes) bf16
        # Single MXU matmul per layer, f32 accumulate, lane-dense (g_pad, lanes) out.
        y = jnp.dot(w, patch, preferred_element_type=jnp.float32)
        row = c0_pad + l * g_pad
        o_ref[row:row + g_pad, :] = y.astype(o_ref.dtype)
        if l + 1 < L:                                        # last layer's output feeds nothing
            append_segment(y, k, g_pad)
            k += 9 * g_pad


def init_dense_block_params(key, nb_layers, in_channels, growth_rate,
                            dtype=jnp.float32):
    """Deterministic weights: one (3,3,Cin_i,growth) HWIO tensor per layer."""
    params = []
    for i in range(nb_layers):
        cin = in_channels + i * growth_rate
        key, sub = jax.random.split(key)
        fan_in = cin * 3 * 3
        bound = 1.0 / jnp.sqrt(fan_in)
        w = jax.random.uniform(sub, (3, 3, cin, growth_rate),
                               minval=-bound, maxval=bound, dtype=dtype)
        params.append(w)
    return params


def _pack_weights(params, c0, g, c0_pad, g_pad):
    """Pack all per-layer HWIO conv weights into one zero-padded
    (L, g_pad, K_max) bf16 array whose column order matches the kernel's
    incremental patch layout (segments of 9 taps x padded channels)."""
    L = len(params)
    k_max = 9 * (c0_pad + (L - 1) * g_pad)
    w_all = jnp.zeros((L, g_pad, k_max), dtype=jnp.float32)
    for l, w in enumerate(params):
        w9 = w.astype(jnp.float32).reshape(9, c0 + l * g, g)      # (tap, cin, out)
        # segments feeding layer l: input block, then each previous layer's block
        segs = [(0, c0, c0_pad)] + [(c0 + j * g, g, g_pad) for j in range(l)]
        col = 0
        for ch0, rc, cs in segs:
            sub = jnp.transpose(w9[:, ch0:ch0 + rc, :], (2, 0, 1))  # (g, 9, rc)
            sub = jnp.pad(sub, ((0, g_pad - g), (0, 0), (0, cs - rc)))
            w_all = w_all.at[l, :, col:col + 9 * cs].set(sub.reshape(g_pad, 9 * cs))
            col += 9 * cs
    return w_all.astype(jnp.bfloat16)


def _border_masks(H, W, b_tile):
    """(9, b_tile*H*W) f32 0/1 mask: valid 3x3 neighbour per tap, periodic per image."""
    P = H * W
    pix = jnp.arange(b_tile * P, dtype=jnp.int32) % P
    hh = pix // W
    ww = pix % W
    rows = []
    for dy in (-1, 0, 1):
        for dx in (-1, 0, 1):
            rows.append((hh + dy >= 0) & (hh + dy < H) & (ww + dx >= 0) & (ww + dx < W))
    return jnp.stack(rows).astype(jnp.float32)


def _choose_b_tile(N, P):
    """Fold images onto the lane axis, keeping >=2 grid steps (v7x megacore)
    and a modest per-step lane width (VMEM stays far below every generation's
    scoped default, including v7x's 64 MiB physical)."""
    max_lanes = 2048
    best = 1
    for bt in range(1, N + 1):
        if N % bt or bt * P > max_lanes:
            continue
        if N // bt >= 2 or N == 1:
            best = bt
    return best


def dense_block_forward(x_nchw, params, temp=None, b_tile=None):
    """DenseBlock forward.  Input/output in NCHW to match PyTorch."""
    del temp  # TODO(synk): custom Conv2dLayer `temp` semantics unavailable.
    N, c0, H, W = x_nchw.shape
    g = params[0].shape[-1]
    L = len(params)
    P = H * W

    c0_pad = _round_up(c0, _CPAD)
    g_pad = _round_up(g, _CPAD)
    c_pad_total = c0_pad + L * g_pad
    k_patch = 9 * (c0_pad + (L - 1) * g_pad)

    if b_tile is None:
        b_tile = _choose_b_tile(N, P)
    assert N % b_tile == 0
    G = N // b_tile
    lanes = b_tile * P

    # NCHW -> (G, c0_pad, b_tile*P): channels on sublanes (zero-padded to 16),
    # batch-fold + pixels on the lane axis.
    x = jnp.pad(x_nchw.reshape(N, c0, P), ((0, 0), (0, c0_pad - c0), (0, 0)))
    x = x.reshape(G, b_tile, c0_pad, P).transpose(0, 2, 1, 3).reshape(G, c0_pad, lanes)

    w_all = _pack_weights(params, c0, g, c0_pad, g_pad)      # (L, g_pad, K_max) bf16
    mask = _border_masks(H, W, b_tile)                        # (9, lanes) f32

    kernel = functools.partial(
        _dense_block_kernel, nb_layers=L, c0_pad=c0_pad, g_pad=g_pad,
        width=W, lanes=lanes)

    out = pl.pallas_call(
        kernel,
        out_shape=jax.ShapeDtypeStruct((G, c_pad_total, lanes), x_nchw.dtype),
        grid=(G,),
        in_specs=[
            pl.BlockSpec((None, c0_pad, lanes), lambda n: (n, 0, 0)),
            # Constant index_map -> weights & masks stay VMEM-resident across steps.
            pl.BlockSpec(w_all.shape, lambda n: (0, 0, 0)),
            pl.BlockSpec(mask.shape, lambda n: (0, 0)),
        ],
        out_specs=pl.BlockSpec((None, c_pad_total, lanes), lambda n: (n, 0, 0)),
        scratch_shapes=[pltpu.VMEM((k_patch, lanes), jnp.bfloat16)],
        compiler_params=pltpu.CompilerParams(
            dimension_semantics=("parallel",)),   # shard grid steps over 2 TCs on v7x
    )(x, w_all, mask)

    # (G, C_pad, b_tile*P) -> (N, C_pad, H, W), then strip pad channels.
    out = out.reshape(G, c_pad_total, b_tile, P).transpose(0, 2, 1, 3)
    out = out.reshape(N, c_pad_total, H, W)
    parts = [out[:, 0:c0]]
    for l in range(L):
        s = c0_pad + l * g_pad
        parts.append(out[:, s:s + g])
    return jnp.concatenate(parts, axis=1)


def _reference_forward(x_nchw, params):
    """Pure-JAX reference (lax.conv) for a sanity check."""
    x = x_nchw
    for w in params:
        w_oihw = jnp.transpose(w, (3, 2, 0, 1))
        y = jax.lax.conv_general_dilated(
            x, w_oihw, window_strides=(1, 1), padding=((1, 1), (1, 1)),
            dimension_numbers=("NCHW", "OIHW", "NCHW"))
        x = jnp.concatenate([x, y], axis=1)
    return x


if __name__ == "__main__":
    # Small shapes consistent with the module: batch=2, in_channels=4,
    # spatial 16x16, growth_rate=12 (the "k12" in the filename), 4 layers.
    N, C, H, W = 2, 4, 16, 16
    nb_layers, growth_rate = 4, 12

    key = jax.random.PRNGKey(0)
    kx, kp = jax.random.split(key)
    x = jax.random.normal(kx, (N, C, H, W), dtype=jnp.float32)
    params = init_dense_block_params(kp, nb_layers, C, growth_rate)

    fwd = jax.jit(dense_block_forward)
    out = jax.block_until_ready(fwd(x, params))

    expected_channels = C + nb_layers * growth_rate
    assert out.shape == (N, expected_channels, H, W), out.shape

    ref = jax.block_until_ready(_reference_forward(x, params))
    # bf16 MXU inputs (weights + im2col patch) with f32 accumulate -> looser check.
    assert jnp.allclose(out, ref, atol=5e-2, rtol=5e-2), (
        f"mismatch vs reference (max abs diff {jnp.max(jnp.abs(out - ref))})")

    print("KERNEL_OK")
</pallas_src>

<mosaic_0001>
module attributes {stable_mosaic.version = 11 : i64} {
  func.func @_dense_block_kernel(%arg0: i32, %arg1: memref<1x16x256xf32, #tpu.memory_space<vmem>>, %arg2: memref<4x16x576xbf16, #tpu.memory_space<vmem>>, %arg3: memref<9x256xf32, #tpu.memory_space<vmem>>, %arg4: memref<1x80x256xf32, #tpu.memory_space<vmem>>, %arg5: memref<576x256xbf16, #tpu.memory_space<vmem>>) attributes {dimension_semantics = [#tpu.dimension_semantics<parallel>], iteration_bounds = array<i64: 2>, scalar_prefetch = 0 : i64, scratch_operands = 1 : i64, tpu.core_type = #tpu.core_type<tc>, window_params = [{transform_indices = @transform_0, window_bounds = array<i64: 1, 16, 256>}, {pipeline_mode = #tpu.pipeline_mode<synchronous>, transform_indices = @transform_1, window_bounds = array<i64: 4, 16, 576>}, {pipeline_mode = #tpu.pipeline_mode<synchronous>, transform_indices = @transform_2, window_bounds = array<i64: 9, 256>}, {transform_indices = @transform_3, window_bounds = array<i64: 1, 80, 256>}]} {
    %c0 = arith.constant 0 : index
    %c0_0 = arith.constant 0 : index
    %0 = vector.load %arg3[%c0, %c0_0] : memref<9x256xf32, #tpu.memory_space<vmem>>, vector<9x256xf32>
    %c0_1 = arith.constant 0 : index
    %c0_2 = arith.constant 0 : index
    %c0_3 = arith.constant 0 : index
    %1 = vector.load %arg1[%c0_1, %c0_2, %c0_3] : memref<1x16x256xf32, #tpu.memory_space<vmem>>, vector<1x16x256xf32>
    %2 = vector.shape_cast %1 : vector<1x16x256xf32> to vector<16x256xf32>
    %c0_4 = arith.constant 0 : index
    %c0_5 = arith.constant 0 : index
    %c0_6 = arith.constant 0 : index
    %3 = vector.load %arg4[%c0_4, %c0_5, %c0_6] : memref<1x80x256xf32, #tpu.memory_space<vmem>>, vector<1x16x256xf32>
    %4 = vector.shape_cast %3 : vector<1x16x256xf32> to vector<16x256xf32>
    %5 = vector.shape_cast %2 : vector<16x256xf32> to vector<1x16x256xf32>
    tpu.vector_store %arg4[%c0_4, %c0_5, %c0_6], %5 {strides = array<i32>} : memref<1x80x256xf32, #tpu.memory_space<vmem>>, vector<1x16x256xf32>,
    %c17_i32 = arith.constant 17 : i32
    %6 = tpu.dynamic_rotate %2 by %c17_i32 dim 1 : vector<16x256xf32>, i32 -> vector<16x256xf32>
    %7 = vector.extract_strided_slice %0 {offsets = [0, 0], sizes = [1, 256], strides = [1, 1]} : vector<9x256xf32> to vector<1x256xf32>
    %8 = vector.broadcast %7 : vector<1x256xf32> to vector<16x256xf32>
    %9 = arith.mulf %6, %8 : vector<16x256xf32>
    %10 = arith.truncf %9 : vector<16x256xf32> to vector<16x256xbf16>
    %c0_7 = arith.constant 0 : index
    %c0_8 = arith.constant 0 : index
    %11 = vector.load %arg5[%c0_7, %c0_8] : memref<576x256xbf16, #tpu.memory_space<vmem>>, vector<16x256xbf16>
    tpu.vector_store %arg5[%c0_7, %c0_8], %10 {strides = array<i32>} : memref<576x256xbf16, #tpu.memory_space<vmem>>, vector<16x256xbf16>,
    %c16_i32 = arith.constant 16 : i32
    %12 = tpu.dynamic_rotate %2 by %c16_i32 dim 1 : vector<16x256xf32>, i32 -> vector<16x256xf32>
    %13 = vector.extract_strided_slice %0 {offsets = [1, 0], sizes = [1, 256], strides = [1, 1]} : vector<9x256xf32> to vector<1x256xf32>
    %14 = vector.broadcast %13 : vector<1x256xf32> to vector<16x256xf32>
    %15 = arith.mulf %12, %14 : vector<16x256xf32>
    %16 = arith.truncf %15 : vector<16x256xf32> to vector<16x256xbf16>
    %c16 = arith.constant 16 : index
    %c0_9 = arith.constant 0 : index
    %17 = vector.load %arg5[%c16, %c0_9] : memref<576x256xbf16, #tpu.memory_space<vmem>>, vector<16x256xbf16>
    tpu.vector_store %arg5[%c16, %c0_9], %16 {strides = array<i32>} : memref<576x256xbf16, #tpu.memory_space<vmem>>, vector<16x256xbf16>,
    %c15_i32 = arith.constant 15 : i32
    %18 = tpu.dynamic_rotate %2 by %c15_i32 dim 1 : vector<16x256xf32>, i32 -> vector<16x256xf32>
    %19 = vector.extract_strided_slice %0 {offsets = [2, 0], sizes = [1, 256], strides = [1, 1]} : vector<9x256xf32> to vector<1x256xf32>
    %20 = vector.broadcast %19 : vector<1x256xf32> to vector<16x256xf32>
    %21 = arith.mulf %18, %20 : vector<16x256xf32>
    %22 = arith.truncf %21 : vector<16x256xf32> to vector<16x256xbf16>
    %c32 = arith.constant 32 : index
    %c0_10 = arith.constant 0 : index
    %23 = vector.load %arg5[%c32, %c0_10] : memref<576x256xbf16, #tpu.memory_space<vmem>>, vector<16x256xbf16>
    tpu.vector_store %arg5[%c32, %c0_10], %22 {strides = array<i32>} : memref<576x256xbf16, #tpu.memory_space<vmem>>, vector<16x256xbf16>,
    %c1_i32 = arith.constant 1 : i32
    %24 = tpu.dynamic_rotate %2 by %c1_i32 dim 1 : vector<16x256xf32>, i32 -> vector<16x256xf32>
    %25 = vector.extract_strided_slice %0 {offsets = [3, 0], sizes = [1, 256], strides = [1, 1]} : vector<9x256xf32> to vector<1x256xf32>
    %26 = vector.broadcast %25 : vector<1x256xf32> to vector<16x256xf32>
    %27 = arith.mulf %24, %26 : vector<16x256xf32>
    %28 = arith.truncf %27 : vector<16x256xf32> to vector<16x256xbf16>
    %c48 = arith.constant 48 : index
    %c0_11 = arith.constant 0 : index
    %29 = vector.load %arg5[%c48, %c0_11] : memref<576x256xbf16, #tpu.memory_space<vmem>>, vector<16x256xbf16>
    tpu.vector_store %arg5[%c48, %c0_11], %28 {strides = array<i32>} : memref<576x256xbf16, #tpu.memory_space<vmem>>, vector<16x256xbf16>,
    %30 = vector.extract_strided_slice %0 {offsets = [4, 0], sizes = [1, 256], strides = [1, 1]} : vector<9x256xf32> to vector<1x256xf32>
    %31 = vector.broadcast %30 : vector<1x256xf32> to vector<16x256xf32>
    %32 = arith.mulf %2, %31 : vector<16x256xf32>
    %33 = arith.truncf %32 : vector<16x256xf32> to vector<16x256xbf16>
    %c64 = arith.constant 64 : index
    %c0_12 = arith.constant 0 : index
    %34 = vector.load %arg5[%c64, %c0_12] : memref<576x256xbf16, #tpu.memory_space<vmem>>, vector<16x256xbf16>
    tpu.vector_store %arg5[%c64, %c0_12], %33 {strides = array<i32>} : memref<576x256xbf16, #tpu.memory_space<vmem>>, vector<16x256xbf16>,
    %c255_i32 = arith.constant 255 : i32
    %35 = tpu.dynamic_rotate %2 by %c255_i32 dim 1 : vector<16x256xf32>, i32 -> vector<16x256xf32>
    %36 = vector.extract_strided_slice %0 {offsets = [5, 0], sizes = [1, 256], strides = [1, 1]} : vector<9x256xf32> to vector<1x256xf32>
    %37 = vector.broadcast %36 : vector<1x256xf32> to vector<16x256xf32>
    %38 = arith.mulf %35, %37 : vector<16x256xf32>
    %39 = arith.truncf %38 : vector<16x256xf32> to vector<16x256xbf16>
    %c80 = arith.constant 80 : index
    %c0_13 = arith.constant 0 : index
    %40 = vector.load %arg5[%c80, %c0_13] : memref<576x256xbf16, #tpu.memory_space<vmem>>, vector<16x256xbf16>
    tpu.vector_store %arg5[%c80, %c0_13], %39 {strides = array<i32>} : memref<576x256xbf16, #tpu.memory_space<vmem>>, vector<16x256xbf16>,
    %c241_i32 = arith.constant 241 : i32
    %41 = tpu.dynamic_rotate %2 by %c241_i32 dim 1 : vector<16x256xf32>, i32 -> vector<16x256xf32>
    %42 = vector.extract_strided_slice %0 {offsets = [6, 0], sizes = [1, 256], strides = [1, 1]} : vector<9x256xf32> to vector<1x256xf32>
    %43 = vector.broadcast %42 : vector<1x256xf32> to vector<16x256xf32>
    %44 = arith.mulf %41, %43 : vector<16x256xf32>
    %45 = arith.truncf %44 : vector<16x256xf32> to vector<16x256xbf16>
    %c96 = arith.constant 96 : index
    %c0_14 = arith.constant 0 : index
    %46 = vector.load %arg5[%c96, %c0_14] : memref<576x256xbf16, #tpu.memory_space<vmem>>, vector<16x256xbf16>
    tpu.vector_store %arg5[%c96, %c0_14], %45 {strides = array<i32>} : memref<576x256xbf16, #tpu.memory_space<vmem>>, vector<16x256xbf16>,
    %c240_i32 = arith.constant 240 : i32
    %47 = tpu.dynamic_rotate %2 by %c240_i32 dim 1 : vector<16x256xf32>, i32 -> vector<16x256xf32>
    %48 = vector.extract_strided_slice %0 {offsets = [7, 0], sizes = [1, 256], strides = [1, 1]} : vector<9x256xf32> to vector<1x256xf32>
    %49 = vector.broadcast %48 : vector<1x256xf32> to vector<16x256xf32>
    %50 = arith.mulf %47, %49 : vector<16x256xf32>
    %51 = arith.truncf %50 : vector<16x256xf32> to vector<16x256xbf16>
    %c112 = arith.constant 112 : index
    %c0_15 = arith.constant 0 : index
    %52 = vector.load %arg5[%c112, %c0_15] : memref<576x256xbf16, #tpu.memory_space<vmem>>, vector<16x256xbf16>
    tpu.vector_store %arg5[%c112, %c0_15], %51 {strides = array<i32>} : memref<576x256xbf16, #tpu.memory_space<vmem>>, vector<16x256xbf16>,
    %c239_i32 = arith.constant 239 : i32
    %53 = tpu.dynamic_rotate %2 by %c239_i32 dim 1 : vector<16x256xf32>, i32 -> vector<16x256xf32>
    %54 = vector.extract_strided_slice %0 {offsets = [8, 0], sizes = [1, 256], strides = [1, 1]} : vector<9x256xf32> to vector<1x256xf32>
    %55 = vector.broadcast %54 : vector<1x256xf32> to vector<16x256xf32>
    %56 = arith.mulf %53, %55 : vector<16x256xf32>
    %57 = arith.truncf %56 : vector<16x256xf32> to vector<16x256xbf16>
    %c128 = arith.constant 128 : index
    %c0_16 = arith.constant 0 : index
    %58 = vector.load %arg5[%c128, %c0_16] : memref<576x256xbf16, #tpu.memory_space<vmem>>, vector<16x256xbf16>
    tpu.vector_store %arg5[%c128, %c0_16], %57 {strides = array<i32>} : memref<576x256xbf16, #tpu.memory_space<vmem>>, vector<16x256xbf16>,
    %c0_17 = arith.constant 0 : index
    %c0_18 = arith.constant 0 : index
    %c0_19 = arith.constant 0 : index
    %59 = vector.load %arg2[%c0_17, %c0_18, %c0_19] : memref<4x16x576xbf16, #tpu.memory_space<vmem>>, vector<1x16x144xbf16>
    %60 = vector.shape_cast %59 : vector<1x16x144xbf16> to vector<16x144xbf16>
    %c0_20 = arith.constant 0 : index
    %c0_21 = arith.constant 0 : index
    %61 = vector.load %arg5[%c0_20, %c0_21] : memref<576x256xbf16, #tpu.memory_space<vmem>>, vector<144x256xbf16>
    %cst = arith.constant dense<0.000000e+00> : vector<16x256xf32>
    %62 = tpu.matmul %60, %61, %cst {dimension_numbers = #tpu.dot_dimension_numbers<[1], [0], [0], [1], [0, 0, 1, 1], [], []>} : vector<16x144xbf16>, vector<144x256xbf16>, vector<16x256xf32> -> vector<16x256xf32>
    %c0_22 = arith.constant 0 : index
    %c16_23 = arith.constant 16 : index
    %c0_24 = arith.constant 0 : index
    %63 = vector.load %arg4[%c0_22, %c16_23, %c0_24] : memref<1x80x256xf32, #tpu.memory_space<vmem>>, vector<1x16x256xf32>
    %64 = vector.shape_cast %63 : vector<1x16x256xf32> to vector<16x256xf32>
    %65 = vector.shape_cast %62 : vector<16x256xf32> to vector<1x16x256xf32>
    tpu.vector_store %arg4[%c0_22, %c16_23, %c0_24], %65 {strides = array<i32>} : memref<1x80x256xf32, #tpu.memory_space<vmem>>, vector<1x16x256xf32>,
    %c17_i32_25 = arith.constant 17 : i32
    %66 = tpu.dynamic_rotate %62 by %c17_i32_25 dim 1 : vector<16x256xf32>, i32 -> vector<16x256xf32>
    %67 = vector.extract_strided_slice %0 {offsets = [0, 0], sizes = [1, 256], strides = [1, 1]} : vector<9x256xf32> to vector<1x256xf32>
    %68 = vector.broadcast %67 : vector<1x256xf32> to vector<16x256xf32>
    %69 = arith.mulf %66, %68 : vector<16x256xf32>
    %70 = arith.truncf %69 : vector<16x256xf32> to vector<16x256xbf16>
    %c144 = arith.constant 144 : index
    %c0_26 = arith.constant 0 : index
    %71 = vector.load %arg5[%c144, %c0_26] : memref<576x256xbf16, #tpu.memory_space<vmem>>, vector<16x256xbf16>
    tpu.vector_store %arg5[%c144, %c0_26], %70 {strides = array<i32>} : memref<576x256xbf16, #tpu.memory_space<vmem>>, vector<16x256xbf16>,
    %c16_i32_27 = arith.constant 16 : i32
    %72 = tpu.dynamic_rotate %62 by %c16_i32_27 dim 1 : vector<16x256xf32>, i32 -> vector<16x256xf32>
    %73 = vector.extract_strided_slice %0 {offsets = [1, 0], sizes = [1, 256], strides = [1, 1]} : vector<9x256xf32> to vector<1x256xf32>
    %74 = vector.broadcast %73 : vector<1x256xf32> to vector<16x256xf32>
    %75 = arith.mulf %72, %74 : vector<16x256xf32>
    %76 = arith.truncf %75 : vector<16x256xf32> to vector<16x256xbf16>
    %c160 = arith.constant 160 : index
    %c0_28 = arith.constant 0 : index
    %77 = vector.load %arg5[%c160, %c0_28] : memref<576x256xbf16, #tpu.memory_space<vmem>>, vector<16x256xbf16>
    tpu.vector_store %arg5[%c160, %c0_28], %76 {strides = array<i32>} : memref<576x256xbf16, #tpu.memory_space<vmem>>, vector<16x256xbf16>,
    %c15_i32_29 = arith.constant 15 : i32
    %78 = tpu.dynamic_rotate %62 by %c15_i32_29 dim 1 : vector<16x256xf32>, i32 -> vector<16x256xf32>
    %79 = vector.extract_strided_slice %0 {offsets = [2, 0], sizes = [1, 256], strides = [1, 1]} : vector<9x256xf32> to vector<1x256xf32>
    %80 = vector.broadcast %79 : vector<1x256xf32> to vector<16x256xf32>
    %81 = arith.mulf %78, %80 : vector<16x256xf32>
    %82 = arith.truncf %81 : vector<16x256xf32> to vector<16x256xbf16>
    %c176 = arith.constant 176 : index
    %c0_30 = arith.constant 0 : index
    %83 = vector.load %arg5[%c176, %c0_30] : memref<576x256xbf16, #tpu.memory_space<vmem>>, vector<16x256xbf16>
    tpu.vector_store %arg5[%c176, %c0_30], %82 {strides = array<i32>} : memref<576x256xbf16, #tpu.memory_space<vmem>>, vector<16x256xbf16>,
    %c1_i32_31 = arith.constant 1 : i32
    %84 = tpu.dynamic_rotate %62 by %c1_i32_31 dim 1 : vector<16x256xf32>, i32 -> vector<16x256xf32>
    %85 = vector.extract_strided_slice %0 {offsets = [3, 0], sizes = [1, 256], strides = [1, 1]} : vector<9x256xf32> to vector<1x256xf32>
    %86 = vector.broadcast %85 : vector<1x256xf32> to vector<16x256xf32>
    %87 = arith.mulf %84, %86 : vector<16x256xf32>
    %88 = arith.truncf %87 : vector<16x256xf32> to vector<16x256xbf16>
    %c192 = arith.constant 192 : index
    %c0_32 = arith.constant 0 : index
    %89 = vector.load %arg5[%c192, %c0_32] : memref<576x256xbf16, #tpu.memory_space<vmem>>, vector<16x256xbf16>
    tpu.vector_store %arg5[%c192, %c0_32], %88 {strides = array<i32>} : memref<576x256xbf16, #tpu.memory_space<vmem>>, vector<16x256xbf16>,
    %90 = vector.extract_strided_slice %0 {offsets = [4, 0], sizes = [1, 256], strides = [1, 1]} : vector<9x256xf32> to vector<1x256xf32>
    %91 = vector.broadcast %90 : vector<1x256xf32> to vector<16x256xf32>
    %92 = arith.mulf %62, %91 : vector<16x256xf32>
    %93 = arith.truncf %92 : vector<16x256xf32> to vector<16x256xbf16>
    %c208 = arith.constant 208 : index
    %c0_33 = arith.constant 0 : index
    %94 = vector.load %arg5[%c208, %c0_33] : memref<576x256xbf16, #tpu.memory_space<vmem>>, vector<16x256xbf16>
    tpu.vector_store %arg5[%c208, %c0_33], %93 {strides = array<i32>} : memref<576x256xbf16, #tpu.memory_space<vmem>>, vector<16x256xbf16>,
    %c255_i32_34 = arith.constant 255 : i32
    %95 = tpu.dynamic_rotate %62 by %c255_i32_34 dim 1 : vector<16x256xf32>, i32 -> vector<16x256xf32>
    %96 = vector.extract_strided_slice %0 {offsets = [5, 0], sizes = [1, 256], strides = [1, 1]} : vector<9x256xf32> to vector<1x256xf32>
    %97 = vector.broadcast %96 : vector<1x256xf32> to vector<16x256xf32>
    %98 = arith.mulf %95, %97 : vector<16x256xf32>
    %99 = arith.truncf %98 : vector<16x256xf32> to vector<16x256xbf16>
    %c224 = arith.constant 224 : index
    %c0_35 = arith.constant 0 : index
    %100 = vector.load %arg5[%c224, %c0_35] : memref<576x256xbf16, #tpu.memory_space<vmem>>, vector<16x256xbf16>
    tpu.vector_store %arg5[%c224, %c0_35], %99 {strides = array<i32>} : memref<576x256xbf16, #tpu.memory_space<vmem>>, vector<16x256xbf16>,
    %c241_i32_36 = arith.constant 241 : i32
    %101 = tpu.dynamic_rotate %62 by %c241_i32_36 dim 1 : vector<16x256xf32>, i32 -> vector<16x256xf32>
    %102 = vector.extract_strided_slice %0 {offsets = [6, 0], sizes = [1, 256], strides = [1, 1]} : vector<9x256xf32> to vector<1x256xf32>
    %103 = vector.broadcast %102 : vector<1x256xf32> to vector<16x256xf32>
    %104 = arith.mulf %101, %103 : vector<16x256xf32>
    %105 = arith.truncf %104 : vector<16x256xf32> to vector<16x256xbf16>
    %c240 = arith.constant 240 : index
    %c0_37 = arith.constant 0 : index
    %106 = vector.load %arg5[%c240, %c0_37] : memref<576x256xbf16, #tpu.memory_space<vmem>>, vector<16x256xbf16>
    tpu.vector_store %arg5[%c240, %c0_37], %105 {strides = array<i32>} : memref<576x256xbf16, #tpu.memory_space<vmem>>, vector<16x256xbf16>,
    %c240_i32_38 = arith.constant 240 : i32
    %107 = tpu.dynamic_rotate %62 by %c240_i32_38 dim 1 : vector<16x256xf32>, i32 -> vector<16x256xf32>
    %108 = vector.extract_strided_slice %0 {offsets = [7, 0], sizes = [1, 256], strides = [1, 1]} : vector<9x256xf32> to vector<1x256xf32>
    %109 = vector.broadcast %108 : vector<1x256xf32> to vector<16x256xf32>
    %110 = arith.mulf %107, %109 : vector<16x256xf32>
    %111 = arith.truncf %110 : vector<16x256xf32> to vector<16x256xbf16>
    %c256 = arith.constant 256 : index
    %c0_39 = arith.constant 0 : index
    %112 = vector.load %arg5[%c256, %c0_39] : memref<576x256xbf16, #tpu.memory_space<vmem>>, vector<16x256xbf16>
    tpu.vector_store %arg5[%c256, %c0_39], %111 {strides = array<i32>} : memref<576x256xbf16, #tpu.memory_space<vmem>>, vector<16x256xbf16>,
    %c239_i32_40 = arith.constant 239 : i32
    %113 = tpu.dynamic_rotate %62 by %c239_i32_40 dim 1 : vector<16x256xf32>, i32 -> vector<16x256xf32>
    %114 = vector.extract_strided_slice %0 {offsets = [8, 0], sizes = [1, 256], strides = [1, 1]} : vector<9x256xf32> to vector<1x256xf32>
    %115 = vector.broadcast %114 : vector<1x256xf32> to vector<16x256xf32>
    %116 = arith.mulf %113, %115 : vector<16x256xf32>
    %117 = arith.truncf %116 : vector<16x256xf32> to vector<16x256xbf16>
    %c272 = arith.constant 272 : index
    %c0_41 = arith.constant 0 : index
    %118 = vector.load %arg5[%c272, %c0_41] : memref<576x256xbf16, #tpu.memory_space<vmem>>, vector<16x256xbf16>
    tpu.vector_store %arg5[%c272, %c0_41], %117 {strides = array<i32>} : memref<576x256xbf16, #tpu.memory_space<vmem>>, vector<16x256xbf16>,
    %c1 = arith.constant 1 : index
    %c0_42 = arith.constant 0 : index
    %c0_43 = arith.constant 0 : index
    %119 = vector.load %arg2[%c1, %c0_42, %c0_43] : memref<4x16x576xbf16, #tpu.memory_space<vmem>>, vector<1x16x288xbf16>
    %120 = vector.shape_cast %119 : vector<1x16x288xbf16> to vector<16x288xbf16>
    %c0_44 = arith.constant 0 : index
    %c0_45 = arith.constant 0 : index
    %121 = vector.load %arg5[%c0_44, %c0_45] : memref<576x256xbf16, #tpu.memory_space<vmem>>, vector<288x256xbf16>
    %cst_46 = arith.constant dense<0.000000e+00> : vector<16x256xf32>
    %122 = tpu.matmul %120, %121, %cst_46 {dimension_numbers = #tpu.dot_dimension_numbers<[1], [0], [0], [1], [0, 0, 1, 1], [], []>} : vector<16x288xbf16>, vector<288x256xbf16>, vector<16x256xf32> -> vector<16x256xf32>
    %c0_47 = arith.constant 0 : index
    %c32_48 = arith.constant 32 : index
    %c0_49 = arith.constant 0 : index
    %123 = vector.load %arg4[%c0_47, %c32_48, %c0_49] : memref<1x80x256xf32, #tpu.memory_space<vmem>>, vector<1x16x256xf32>
    %124 = vector.shape_cast %123 : vector<1x16x256xf32> to vector<16x256xf32>
    %125 = vector.shape_cast %122 : vector<16x256xf32> to vector<1x16x256xf32>
    tpu.vector_store %arg4[%c0_47, %c32_48, %c0_49], %125 {strides = array<i32>} : memref<1x80x256xf32, #tpu.memory_space<vmem>>, vector<1x16x256xf32>,
    %c17_i32_50 = arith.constant 17 : i32
    %126 = tpu.dynamic_rotate %122 by %c17_i32_50 dim 1 : vector<16x256xf32>, i32 -> vector<16x256xf32>
    %127 = vector.extract_strided_slice %0 {offsets = [0, 0], sizes = [1, 256], strides = [1, 1]} : vector<9x256xf32> to vector<1x256xf32>
    %128 = vector.broadcast %127 : vector<1x256xf32> to vector<16x256xf32>
    %129 = arith.mulf %126, %128 : vector<16x256xf32>
    %130 = arith.truncf %129 : vector<16x256xf32> to vector<16x256xbf16>
    %c288 = arith.constant 288 : index
    %c0_51 = arith.constant 0 : index
    %131 = vector.load %arg5[%c288, %c0_51] : memref<576x256xbf16, #tpu.memory_space<vmem>>, vector<16x256xbf16>
    tpu.vector_store %arg5[%c288, %c0_51], %130 {strides = array<i32>} : memref<576x256xbf16, #tpu.memory_space<vmem>>, vector<16x256xbf16>,
    %c16_i32_52 = arith.constant 16 : i32
    %132 = tpu.dynamic_rotate %122 by %c16_i32_52 dim 1 : vector<16x256xf32>, i32 -> vector<16x256xf32>
    %133 = vector.extract_strided_slice %0 {offsets = [1, 0], sizes = [1, 256], strides = [1, 1]} : vector<9x256xf32> to vector<1x256xf32>
    %134 = vector.broadcast %133 : vector<1x256xf32> to vector<16x256xf32>
    %135 = arith.mulf %132, %134 : vector<16x256xf32>
    %136 = arith.truncf %135 : vector<16x256xf32> to vector<16x256xbf16>
    %c304 = arith.constant 304 : index
    %c0_53 = arith.constant 0 : index
    %137 = vector.load %arg5[%c304, %c0_53] : memref<576x256xbf16, #tpu.memory_space<vmem>>, vector<16x256xbf16>
    tpu.vector_store %arg5[%c304, %c0_53], %136 {strides = array<i32>} : memref<576x256xbf16, #tpu.memory_space<vmem>>, vector<16x256xbf16>,
    %c15_i32_54 = arith.constant 15 : i32
    %138 = tpu.dynamic_rotate %122 by %c15_i32_54 dim 1 : vector<16x256xf32>, i32 -> vector<16x256xf32>
    %139 = vector.extract_strided_slice %0 {offsets = [2, 0], sizes = [1, 256], strides = [1, 1]} : vector<9x256xf32> to vector<1x256xf32>
    %140 = vector.broadcast %139 : vector<1x256xf32> to vector<16x256xf32>
    %141 = arith.mulf %138, %140 : vector<16x256xf32>
    %142 = arith.truncf %141 : vector<16x256xf32> to vector<16x256xbf16>
    %c320 = arith.constant 320 : index
    %c0_55 = arith.constant 0 : index
    %143 = vector.load %arg5[%c320, %c0_55] : memref<576x256xbf16, #tpu.memory_space<vmem>>, vector<16x256xbf16>
    tpu.vector_store %arg5[%c320, %c0_55], %142 {strides = array<i32>} : memref<576x256xbf16, #tpu.memory_space<vmem>>, vector<16x256xbf16>,
    %c1_i32_56 = arith.constant 1 : i32
    %144 = tpu.dynamic_rotate %122 by %c1_i32_56 dim 1 : vector<16x256xf32>, i32 -> vector<16x256xf32>
    %145 = vector.extract_strided_slice %0 {offsets = [3, 0], sizes = [1, 256], strides = [1, 1]} : vector<9x256xf32> to vector<1x256xf32>
    %146 = vector.broadcast %145 : vector<1x256xf32> to vector<16x256xf32>
    %147 = arith.mulf %144, %146 : vector<16x256xf32>
    %148 = arith.truncf %147 : vector<16x256xf32> to vector<16x256xbf16>
    %c336 = arith.constant 336 : index
    %c0_57 = arith.constant 0 : index
    %149 = vector.load %arg5[%c336, %c0_57] : memref<576x256xbf16, #tpu.memory_space<vmem>>, vector<16x256xbf16>
    tpu.vector_store %arg5[%c336, %c0_57], %148 {strides = array<i32>} : memref<576x256xbf16, #tpu.memory_space<vmem>>, vector<16x256xbf16>,
    %150 = vector.extract_strided_slice %0 {offsets = [4, 0], sizes = [1, 256], strides = [1, 1]} : vector<9x256xf32> to vector<1x256xf32>
    %151 = vector.broadcast %150 : vector<1x256xf32> to vector<16x256xf32>
    %152 = arith.mulf %122, %151 : vector<16x256xf32>
    %153 = arith.truncf %152 : vector<16x256xf32> to vector<16x256xbf16>
    %c352 = arith.constant 352 : index
    %c0_58 = arith.constant 0 : index
    %154 = vector.load %arg5[%c352, %c0_58] : memref<576x256xbf16, #tpu.memory_space<vmem>>, vector<16x256xbf16>
    tpu.vector_store %arg5[%c352, %c0_58], %153 {strides = array<i32>} : memref<576x256xbf16, #tpu.memory_space<vmem>>, vector<16x256xbf16>,
    %c255_i32_59 = arith.constant 255 : i32
    %155 = tpu.dynamic_rotate %122 by %c255_i32_59 dim 1 : vector<16x256xf32>, i32 -> vector<16x256xf32>
    %156 = vector.extract_strided_slice %0 {offsets = [5, 0], sizes = [1, 256], strides = [1, 1]} : vector<9x256xf32> to vector<1x256xf32>
    %157 = vector.broadcast %156 : vector<1x256xf32> to vector<16x256xf32>
    %158 = arith.mulf %155, %157 : vector<16x256xf32>
    %159 = arith.truncf %158 : vector<16x256xf32> to vector<16x256xbf16>
    %c368 = arith.constant 368 : index
    %c0_60 = arith.constant 0 : index
    %160 = vector.load %arg5[%c368, %c0_60] : memref<576x256xbf16, #tpu.memory_space<vmem>>, vector<16x256xbf16>
    tpu.vector_store %arg5[%c368, %c0_60], %159 {strides = array<i32>} : memref<576x256xbf16, #tpu.memory_space<vmem>>, vector<16x256xbf16>,
    %c241_i32_61 = arith.constant 241 : i32
    %161 = tpu.dynamic_rotate %122 by %c241_i32_61 dim 1 : vector<16x256xf32>, i32 -> vector<16x256xf32>
    %162 = vector.extract_strided_slice %0 {offsets = [6, 0], sizes = [1, 256], strides = [1, 1]} : vector<9x256xf32> to vector<1x256xf32>
    %163 = vector.broadcast %162 : vector<1x256xf32> to vector<16x256xf32>
    %164 = arith.mulf %161, %163 : vector<16x256xf32>
    %165 = arith.truncf %164 : vector<16x256xf32> to vector<16x256xbf16>
    %c384 = arith.constant 384 : index
    %c0_62 = arith.constant 0 : index
    %166 = vector.load %arg5[%c384, %c0_62] : memref<576x256xbf16, #tpu.memory_space<vmem>>, vector<16x256xbf16>
    tpu.vector_store %arg5[%c384, %c0_62], %165 {strides = array<i32>} : memref<576x256xbf16, #tpu.memory_space<vmem>>, vector<16x256xbf16>,
    %c240_i32_63 = arith.constant 240 : i32
    %167 = tpu.dynamic_rotate %122 by %c240_i32_63 dim 1 : vector<16x256xf32>, i32 -> vector<16x256xf32>
    %168 = vector.extract_strided_slice %0 {offsets = [7, 0], sizes = [1, 256], strides = [1, 1]} : vector<9x256xf32> to vector<1x256xf32>
    %169 = vector.broadcast %168 : vector<1x256xf32> to vector<16x256xf32>
    %170 = arith.mulf %167, %169 : vector<16x256xf32>
    %171 = arith.truncf %170 : vector<16x256xf32> to vector<16x256xbf16>
    %c400 = arith.constant 400 : index
    %c0_64 = arith.constant 0 : index
    %172 = vector.load %arg5[%c400, %c0_64] : memref<576x256xbf16, #tpu.memory_space<vmem>>, vector<16x256xbf16>
    tpu.vector_store %arg5[%c400, %c0_64], %171 {strides = array<i32>} : memref<576x256xbf16, #tpu.memory_space<vmem>>, vector<16x256xbf16>,
    %c239_i32_65 = arith.constant 239 : i32
    %173 = tpu.dynamic_rotate %122 by %c239_i32_65 dim 1 : vector<16x256xf32>, i32 -> vector<16x256xf32>
    %174 = vector.extract_strided_slice %0 {offsets = [8, 0], sizes = [1, 256], strides = [1, 1]} : vector<9x256xf32> to vector<1x256xf32>
    %175 = vector.broadcast %174 : vector<1x256xf32> to vector<16x256xf32>
    %176 = arith.mulf %173, %175 : vector<16x256xf32>
    %177 = arith.truncf %176 : vector<16x256xf32> to vector<16x256xbf16>
    %c416 = arith.constant 416 : index
    %c0_66 = arith.constant 0 : index
    %178 = vector.load %arg5[%c416, %c0_66] : memref<576x256xbf16, #tpu.memory_space<vmem>>, vector<16x256xbf16>
    tpu.vector_store %arg5[%c416, %c0_66], %177 {strides = array<i32>} : memref<576x256xbf16, #tpu.memory_space<vmem>>, vector<16x256xbf16>,
    %c2 = arith.constant 2 : index
    %c0_67 = arith.constant 0 : index
    %c0_68 = arith.constant 0 : index
    %179 = vector.load %arg2[%c2, %c0_67, %c0_68] : memref<4x16x576xbf16, #tpu.memory_space<vmem>>, vector<1x16x432xbf16>
    %180 = vector.shape_cast %179 : vector<1x16x432xbf16> to vector<16x432xbf16>
    %c0_69 = arith.constant 0 : index
    %c0_70 = arith.constant 0 : index
    %181 = vector.load %arg5[%c0_69, %c0_70] : memref<576x256xbf16, #tpu.memory_space<vmem>>, vector<432x256xbf16>
    %cst_71 = arith.constant dense<0.000000e+00> : vector<16x256xf32>
    %182 = tpu.matmul %180, %181, %cst_71 {dimension_numbers = #tpu.dot_dimension_numbers<[1], [0], [0], [1], [0, 0, 1, 1], [], []>} : vector<16x432xbf16>, vector<432x256xbf16>, vector<16x256xf32> -> vector<16x256xf32>
    %c0_72 = arith.constant 0 : index
    %c48_73 = arith.constant 48 : index
    %c0_74 = arith.constant 0 : index
    %183 = vector.load %arg4[%c0_72, %c48_73, %c0_74] : memref<1x80x256xf32, #tpu.memory_space<vmem>>, vector<1x16x256xf32>
    %184 = vector.shape_cast %183 : vector<1x16x256xf32> to vector<16x256xf32>
    %185 = vector.shape_cast %182 : vector<16x256xf32> to vector<1x16x256xf32>
    tpu.vector_store %arg4[%c0_72, %c48_73, %c0_74], %185 {strides = array<i32>} : memref<1x80x256xf32, #tpu.memory_space<vmem>>, vector<1x16x256xf32>,
    %c17_i32_75 = arith.constant 17 : i32
    %186 = tpu.dynamic_rotate %182 by %c17_i32_75 dim 1 : vector<16x256xf32>, i32 -> vector<16x256xf32>
    %187 = vector.extract_strided_slice %0 {offsets = [0, 0], sizes = [1, 256], strides = [1, 1]} : vector<9x256xf32> to vector<1x256xf32>
    %188 = vector.broadcast %187 : vector<1x256xf32> to vector<16x256xf32>
    %189 = arith.mulf %186, %188 : vector<16x256xf32>
    %190 = arith.truncf %189 : vector<16x256xf32> to vector<16x256xbf16>
    %c432 = arith.constant 432 : index
    %c0_76 = arith.constant 0 : index
    %191 = vector.load %arg5[%c432, %c0_76] : memref<576x256xbf16, #tpu.memory_space<vmem>>, vector<16x256xbf16>
    tpu.vector_store %arg5[%c432, %c0_76], %190 {strides = array<i32>} : memref<576x256xbf16, #tpu.memory_space<vmem>>, vector<16x256xbf16>,
    %c16_i32_77 = arith.constant 16 : i32
    %192 = tpu.dynamic_rotate %182 by %c16_i32_77 dim 1 : vector<16x256xf32>, i32 -> vector<16x256xf32>
    %193 = vector.extract_strided_slice %0 {offsets = [1, 0], sizes = [1, 256], strides = [1, 1]} : vector<9x256xf32> to vector<1x256xf32>
    %194 = vector.broadcast %193 : vector<1x256xf32> to vector<16x256xf32>
    %195 = arith.mulf %192, %194 : vector<16x256xf32>
    %196 = arith.truncf %195 : vector<16x256xf32> to vector<16x256xbf16>
    %c448 = arith.constant 448 : index
    %c0_78 = arith.constant 0 : index
    %197 = vector.load %arg5[%c448, %c0_78] : memref<576x256xbf16, #tpu.memory_space<vmem>>, vector<16x256xbf16>
    tpu.vector_store %arg5[%c448, %c0_78], %196 {strides = array<i32>} : memref<576x256xbf16, #tpu.memory_space<vmem>>, vector<16x256xbf16>,
    %c15_i32_79 = arith.constant 15 : i32
    %198 = tpu.dynamic_rotate %182 by %c15_i32_79 dim 1 : vector<16x256xf32>, i32 -> vector<16x256xf32>
    %199 = vector.extract_strided_slice %0 {offsets = [2, 0], sizes = [1, 256], strides = [1, 1]} : vector<9x256xf32> to vector<1x256xf32>
    %200 = vector.broadcast %199 : vector<1x256xf32> to vector<16x256xf32>
    %201 = arith.mulf %198, %200 : vector<16x256xf32>
    %202 = arith.truncf %201 : vector<16x256xf32> to vector<16x256xbf16>
    %c464 = arith.constant 464 : index
    %c0_80 = arith.constant 0 : index
    %203 = vector.load %arg5[%c464, %c0_80] : memref<576x256xbf16, #tpu.memory_space<vmem>>, vector<16x256xbf16>
    tpu.vector_store %arg5[%c464, %c0_80], %202 {strides = array<i32>} : memref<576x256xbf16, #tpu.memory_space<vmem>>, vector<16x256xbf16>,
    %c1_i32_81 = arith.constant 1 : i32
    %204 = tpu.dynamic_rotate %182 by %c1_i32_81 dim 1 : vector<16x256xf32>, i32 -> vector<16x256xf32>
    %205 = vector.extract_strided_slice %0 {offsets = [3, 0], sizes = [1, 256], strides = [1, 1]} : vector<9x256xf32> to vector<1x256xf32>
    %206 = vector.broadcast %205 : vector<1x256xf32> to vector<16x256xf32>
    %207 = arith.mulf %204, %206 : vector<16x256xf32>
    %208 = arith.truncf %207 : vector<16x256xf32> to vector<16x256xbf16>
    %c480 = arith.constant 480 : index
    %c0_82 = arith.constant 0 : index
    %209 = vector.load %arg5[%c480, %c0_82] : memref<576x256xbf16, #tpu.memory_space<vmem>>, vector<16x256xbf16>
    tpu.vector_store %arg5[%c480, %c0_82], %208 {strides = array<i32>} : memref<576x256xbf16, #tpu.memory_space<vmem>>, vector<16x256xbf16>,
    %210 = vector.extract_strided_slice %0 {offsets = [4, 0], sizes = [1, 256], strides = [1, 1]} : vector<9x256xf32> to vector<1x256xf32>
    %211 = vector.broadcast %210 : vector<1x256xf32> to vector<16x256xf32>
    %212 = arith.mulf %182, %211 : vector<16x256xf32>
    %213 = arith.truncf %212 : vector<16x256xf32> to vector<16x256xbf16>
    %c496 = arith.constant 496 : index
    %c0_83 = arith.constant 0 : index
    %214 = vector.load %arg5[%c496, %c0_83] : memref<576x256xbf16, #tpu.memory_space<vmem>>, vector<16x256xbf16>
    tpu.vector_store %arg5[%c496, %c0_83], %213 {strides = array<i32>} : memref<576x256xbf16, #tpu.memory_space<vmem>>, vector<16x256xbf16>,
    %c255_i32_84 = arith.constant 255 : i32
    %215 = tpu.dynamic_rotate %182 by %c255_i32_84 dim 1 : vector<16x256xf32>, i32 -> vector<16x256xf32>
    %216 = vector.extract_strided_slice %0 {offsets = [5, 0], sizes = [1, 256], strides = [1, 1]} : vector<9x256xf32> to vector<1x256xf32>
    %217 = vector.broadcast %216 : vector<1x256xf32> to vector<16x256xf32>
    %218 = arith.mulf %215, %217 : vector<16x256xf32>
    %219 = arith.truncf %218 : vector<16x256xf32> to vector<16x256xbf16>
    %c512 = arith.constant 512 : index
    %c0_85 = arith.constant 0 : index
    %220 = vector.load %arg5[%c512, %c0_85] : memref<576x256xbf16, #tpu.memory_space<vmem>>, vector<16x256xbf16>
    tpu.vector_store %arg5[%c512, %c0_85], %219 {strides = array<i32>} : memref<576x256xbf16, #tpu.memory_space<vmem>>, vector<16x256xbf16>,
    %c241_i32_86 = arith.constant 241 : i32
    %221 = tpu.dynamic_rotate %182 by %c241_i32_86 dim 1 : vector<16x256xf32>, i32 -> vector<16x256xf32>
    %222 = vector.extract_strided_slice %0 {offsets = [6, 0], sizes = [1, 256], strides = [1, 1]} : vector<9x256xf32> to vector<1x256xf32>
    %223 = vector.broadcast %222 : vector<1x256xf32> to vector<16x256xf32>
    %224 = arith.mulf %221, %223 : vector<16x256xf32>
    %225 = arith.truncf %224 : vector<16x256xf32> to vector<16x256xbf16>
    %c528 = arith.constant 528 : index
    %c0_87 = arith.constant 0 : index
    %226 = vector.load %arg5[%c528, %c0_87] : memref<576x256xbf16, #tpu.memory_space<vmem>>, vector<16x256xbf16>
    tpu.vector_store %arg5[%c528, %c0_87], %225 {strides = array<i32>} : memref<576x256xbf16, #tpu.memory_space<vmem>>, vector<16x256xbf16>,
    %c240_i32_88 = arith.constant 240 : i32
    %227 = tpu.dynamic_rotate %182 by %c240_i32_88 dim 1 : vector<16x256xf32>, i32 -> vector<16x256xf32>
    %228 = vector.extract_strided_slice %0 {offsets = [7, 0], sizes = [1, 256], strides = [1, 1]} : vector<9x256xf32> to vector<1x256xf32>
    %229 = vector.broadcast %228 : vector<1x256xf32> to vector<16x256xf32>
    %230 = arith.mulf %227, %229 : vector<16x256xf32>
    %231 = arith.truncf %230 : vector<16x256xf32> to vector<16x256xbf16>
    %c544 = arith.constant 544 : index
    %c0_89 = arith.constant 0 : index
    %232 = vector.load %arg5[%c544, %c0_89] : memref<576x256xbf16, #tpu.memory_space<vmem>>, vector<16x256xbf16>
    tpu.vector_store %arg5[%c544, %c0_89], %231 {strides = array<i32>} : memref<576x256xbf16, #tpu.memory_space<vmem>>, vector<16x256xbf16>,
    %c239_i32_90 = arith.constant 239 : i32
    %233 = tpu.dynamic_rotate %182 by %c239_i32_90 dim 1 : vector<16x256xf32>, i32 -> vector<16x256xf32>
    %234 = vector.extract_strided_slice %0 {offsets = [8, 0], sizes = [1, 256], strides = [1, 1]} : vector<9x256xf32> to vector<1x256xf32>
    %235 = vector.broadcast %234 : vector<1x256xf32> to vector<16x256xf32>
    %236 = arith.mulf %233, %235 : vector<16x256xf32>
    %237 = arith.truncf %236 : vector<16x256xf32> to vector<16x256xbf16>
    %c560 = arith.constant 560 : index
    %c0_91 = arith.constant 0 : index
    %238 = vector.load %arg5[%c560, %c0_91] : memref<576x256xbf16, #tpu.memory_space<vmem>>, vector<16x256xbf16>
    tpu.vector_store %arg5[%c560, %c0_91], %237 {strides = array<i32>} : memref<576x256xbf16, #tpu.memory_space<vmem>>, vector<16x256xbf16>,
    %c3 = arith.constant 3 : index
    %c0_92 = arith.constant 0 : index
    %c0_93 = arith.constant 0 : index
    %239 = vector.load %arg2[%c3, %c0_92, %c0_93] : memref<4x16x576xbf16, #tpu.memory_space<vmem>>, vector<1x16x576xbf16>
    %240 = vector.shape_cast %239 : vector<1x16x576xbf16> to vector<16x576xbf16>
    %c0_94 = arith.constant 0 : index
    %c0_95 = arith.constant 0 : index
    %241 = vector.load %arg5[%c0_94, %c0_95] : memref<576x256xbf16, #tpu.memory_space<vmem>>, vector<576x256xbf16>
    %cst_96 = arith.constant dense<0.000000e+00> : vector<16x256xf32>
    %242 = tpu.matmul %240, %241, %cst_96 {dimension_numbers = #tpu.dot_dimension_numbers<[1], [0], [0], [1], [0, 0, 1, 1], [], []>} : vector<16x576xbf16>, vector<576x256xbf16>, vector<16x256xf32> -> vector<16x256xf32>
    %c0_97 = arith.constant 0 : index
    %c64_98 = arith.constant 64 : index
    %c0_99 = arith.constant 0 : index
    %243 = vector.load %arg4[%c0_97, %c64_98, %c0_99] : memref<1x80x256xf32, #tpu.memory_space<vmem>>, vector<1x16x256xf32>
    %244 = vector.shape_cast %243 : vector<1x16x256xf32> to vector<16x256xf32>
    %245 = vector.shape_cast %242 : vector<16x256xf32> to vector<1x16x256xf32>
    tpu.vector_store %arg4[%c0_97, %c64_98, %c0_99], %245 {strides = array<i32>} : memref<1x80x256xf32, #tpu.memory_space<vmem>>, vector<1x16x256xf32>,
    return
  }
  func.func @transform_0(%arg0: i32) -> (i32, i32, i32) {
    %c0_i32 = arith.constant 0 : i32
    %c0_i32_0 = arith.constant 0 : i32
    %c0_i32_1 = arith.constant 0 : i32
    return %arg0, %c0_i32, %c0_i32_0 : i32, i32, i32
  }
  func.func @transform_1(%arg0: i32) -> (i32, i32, i32) {
    %c0_i32 = arith.constant 0 : i32
    %c0_i32_0 = arith.constant 0 : i32
    %c0_i32_1 = arith.constant 0 : i32
    %c0_i32_2 = arith.constant 0 : i32
    return %c0_i32, %c0_i32_0, %c0_i32_1 : i32, i32, i32
  }
  func.func @transform_2(%arg0: i32) -> (i32, i32) {
    %c0_i32 = arith.constant 0 : i32
    %c0_i32_0 = arith.constant 0 : i32
    %c0_i32_1 = arith.constant 0 : i32
    return %c0_i32, %c0_i32_0 : i32, i32
  }
  func.func @transform_3(%arg0: i32) -> (i32, i32, i32) {
    %c0_i32 = arith.constant 0 : i32
    %c0_i32_0 = arith.constant 0 : i32
    %c0_i32_1 = arith.constant 0 : i32
    return %arg0, %c0_i32, %c0_i32_0 : i32, i32, i32
  }
}

</mosaic_0001>

<bundles_post_ra>
// kernel: dense_block_forward.1
= control target key start
LH: loop header
LB: loop body
LE: loop exit
PB: predicated region body
PF: predicated region fallthrough
CT: control target
= control target key end

     0   :  { %s3592_s12 = smov 0   ;;  %s4445_s0 = inlined_call_operand.vmem [shape: f32[2,16,256], index: 0, kind: input, shape index: {}]   ;;  %s4446_s1 = inlined_call_operand.vmem [shape: bf16[4,16,576], index: 1, kind: input, shape index: {}]   ;;  %s4447_s2 = inlined_call_operand.vmem [shape: f32[9,256], index: 2, kind: input, shape index: {}]   ;;  %s4448_s3 = inlined_call_operand.vmem [shape: f32[2,80,256], index: 3, kind: output, shape index: {}]  }
   0x1 LB: > { %s2530_s13 = sadd.s32 4294967295, %s3562_s12   ;;  %p2534_p0 = scmp.ge.s32.totalorder %s3562_s12, 1  ;;  %s3562_s12 = sphi %s3592_s12, %s13_s12  }
   0x2   : > { %p137_p1 = scmp.lt.s32.totalorder %s3562_s12, 3 }
   0x4   : > { %p138_p2 = pnand %p2534_p0, %p137_p1 }
   0x5   : > { %p161_p3 = scmp.lt.s32.totalorder (!%p138_p2), %s2530_s13, 1  ;;  %s3564_s22 = smov (!%p138_p2), 112  }
   0x6   : > { %141 = sbr.rel (%p138_p2) target bundleno = 1429 (0x595), region = 32  ;;  %s3565_s23 = smov (!%p138_p2), 113  }
   0x7   : > { %s3566_s24 = smov (!%p138_p2), 127   ;;  %s3567_s25 = smov (!%p138_p2), 1  }
   0x8   : > { %s3568_s26 = smov (!%p138_p2), 15   ;;  %s3569_s27 = smov (!%p138_p2), 16  }
   0x9   : > { %s3570_s28 = smov (!%p138_p2), 17   ;;  %s3571_s29 = smov (!%p138_p2), 111  }
   0xb   : > { %s4450_s13 = smov (!%p161_p3, %s2530_s13), 1  ;;  %v192_v5 = vlaneseq  ;;  %v3682_v8 = vld [vmem:[%s4447_s2] sm:$0xff]  ;;  %v3687_v9 = vld [vmem:[%s4447_s2 + $0x8] sm:$0xff]  ;;  %vm499_vm8 = vcmask 130048   ;;  %vm967_vm9 = vcmask 261120   ;;  %vm1575_vm10 = vcmask 392192  }
   0xc   : > { %s3338_s14 = sshll.u32 %s4450_s13, 5  ;;  %s3533_s15 = smul.u32 160, %s4450_s13  ;;  %v3691_v10 = vperm.slane %v3682_v8, 7  ;;  %v3694_v11 = vperm.slane %v3687_v9, 7  ;;  %v3703_v19 = vperm.slane %v3682_v8, 4  ;;  %v3706_v20 = vperm.slane %v3687_v9, 4 }
   0xd   : > { %s165_s18 = scalar_lea.vmem %s4445_s0, %s3338_s14  ;;  %v3677_v7 = vand.u32 127, %v192_v5  ;;  %v3723_v36 = vperm.slane %v3682_v8, 6  ;;  %v3726_v37 = vperm.slane %v3687_v9, 6  ;;  %v3742_v55 = vperm.slane %v3682_v8, 5 }
   0xe   : > { %s3606_s21 = scalar_lea.vmem %s4448_s3, %s3533_s15  ;;  %v3608_v0 = vld [vmem:[%s165_s18 + $0x8] sm:$0xff]  ;;  %v3610_v1 = vld [vmem:[%s165_s18] sm:$0xff]  ;;  %v3620_v2 = vld [vmem:[%s165_s18 + $0x18] sm:$0xff]  ;;  %v3745_v56 = vperm.slane %v3687_v9, 5  ;;  %vm2327_vm11 = vcmask 523264  }
   0xf   : > { %338 = vrot.lane.b32.xlu1 %v3608_v0, %s3564_s22  ;;  %181 = vst [vmem:[%s3606_s21 + $0x8] sm:$0xff] %v3608_v0  ;;  %334 = vrot.lane.b32.xlu0 %v3610_v1, %s3564_s22  ;;  %v178_v3 = vld [vmem:[%s165_s18 + $0x10] sm:$0xff]  ;;  %vm342_vm0 = vcmp.lt.s32.totalorder %v3677_v7, 112  ;;  %v280_v22 = vmul.f32 %v3703_v19, %v3610_v1  ;;  %v281_v23 = vmul.f32 %v3706_v20, %v3608_v0  ;;  %vm319_vm1 = vcmp.lt.s32.totalorder %v3677_v7, 113 }
  0x10   : > { %180 = vst [vmem:[%s3606_s21] sm:$0xff] %v3610_v1  ;;  %311 = vrot.lane.b32.xlu2 %v3610_v1, %s3565_s23  ;;  %v282_v24 = vmul.f32 %v3703_v19, %v178_v3  ;;  %v283_v25 = vmul.f32 %v3706_v20, %v3620_v2  ;;  %vm296_vm2 = vcmp.lt.s32.totalorder %v3677_v7, 127  ;;  %vm263_vm3 = vcmp.lt.s32.totalorder %v3677_v7, 1 }
  0x11   : > { %183 = vst [vmem:[%s3606_s21 + $0x18] sm:$0xff] %v3620_v2  ;;  %v284_v30 = vpack.c.bf16 %v281_v23, %v280_v22  ;;  %vm240_vm4 = vcmp.lt.s32.totalorder %v3677_v7, 15  ;;  %vm217_vm5 = vcmp.lt.s32.totalorder %v3677_v7, 16  ;;  %vm194_vm6 = vcmp.lt.s32.totalorder %v3677_v7, 17 }
  0x12   : > { %182 = vst [vmem:[%s3606_s21 + $0x10] sm:$0xff] %v178_v3  ;;  %v285_v31 = vpack.c.bf16 %v283_v25, %v282_v24  ;;  %vm365_vm7 = vcmp.lt.s32.totalorder %v3677_v7, 111 }
  0x13   : > { %286 = vst [vmem:[#allocation2 + $0x40] sm:$0xff] %v284_v30 }
  0x14   : > { %287 = vst [vmem:[#allocation2 + $0x48] sm:$0xff] %v285_v31 }
  0x17   : > { %340 = vrot.lane.b32.xlu1 %v3620_v2, %s3564_s22  ;;  %336 = vrot.lane.b32.xlu0 %v178_v3, %s3564_s22 }
  0x18   : > { %313 = vrot.lane.b32.xlu2 %v178_v3, %s3565_s23 }
  0x1a   : > { %v2580_v30 = vld [vmem:[#allocation2 + $0x40] sm:$0xf] }
  0x1b   : > { %v3350_v31 = vld [vmem:[#allocation2 + $0x44] sm:$0xf0] }
  0x1f   : > { %317 = vrot.lane.b32.xlu1 %v3620_v2, %s3565_s23  ;;  %315 = vrot.lane.b32.xlu0 %v3608_v0, %s3565_s23 }
  0x20   : > { %288 = vrot.lane.b32.xlu2 %v3610_v1, %s3566_s24 }
  0x27   : > { %292 = vrot.lane.b32.xlu1 %v3608_v0, %s3566_s24  ;;  %290 = vrot.lane.b32.xlu0 %v178_v3, %s3566_s24 }
  0x28   : > { %294 = vrot.lane.b32.xlu2 %v3620_v2, %s3566_s24 }
  0x2f   : > { %257 = vrot.lane.b32.xlu1 %v178_v3, %s3567_s25  ;;  %255 = vrot.lane.b32.xlu0 %v3610_v1, %s3567_s25 }
  0x30   : > { %259 = vrot.lane.b32.xlu2 %v3608_v0, %s3567_s25 }
  0x37   : > { %232 = vrot.lane.b32.xlu1 %v3610_v1, %s3568_s26  ;;  %261 = vrot.lane.b32.xlu0 %v3620_v2, %s3567_s25 }
  0x38   : > { %234 = vrot.lane.b32.xlu2 %v178_v3, %s3568_s26 }
  0x3f   : > { %238 = vrot.lane.b32.xlu1 %v3620_v2, %s3568_s26  ;;  %236 = vrot.lane.b32.xlu0 %v3608_v0, %s3568_s26 }
  0x40   : > { %209 = vrot.lane.b32.xlu2 %v3610_v1, %s3569_s27 }
  0x47   : > { %213 = vrot.lane.b32.xlu1 %v3608_v0, %s3569_s27  ;;  %211 = vrot.lane.b32.xlu0 %v178_v3, %s3569_s27 }
  0x48   : > { %215 = vrot.lane.b32.xlu2 %v3620_v2, %s3569_s27 }
  0x4f   : > { %186 = vrot.lane.b32.xlu1 %v178_v3, %s3570_s28  ;;  %184 = vrot.lane.b32.xlu0 %v3610_v1, %s3570_s28 }
  0x50   : > { %188 = vrot.lane.b32.xlu2 %v3608_v0, %s3570_s28 }
  0x57   : > { %357 = vrot.lane.b32.xlu1 %v3610_v1, %s3571_s29  ;;  %190 = vrot.lane.b32.xlu0 %v3620_v2, %s3570_s28 }
  0x58   : > { %359 = vrot.lane.b32.xlu2 %v178_v3, %s3571_s29 }
  0x5f   : > { %363 = vrot.lane.b32.xlu1 %v3620_v2, %s3571_s29  ;;  %361 = vrot.lane.b32.xlu0 %v3608_v0, %s3571_s29 }
  0x6a   : > { %v312_v4 = vpop.permute.xlu2 %311 }
  0x72   : > { %v314_v6 = vpop.permute.xlu2 %313 }
  0x7a   : > { %v289_v16 = vpop.permute.xlu2 %288 }
  0x81   : > { %v339_v12 = vpop.permute.xlu1 %338  ;;  %v335_v13 = vpop.permute.xlu0 %334 }
  0x82   : > { %v343_v14 = vsel %vm342_vm0, %v335_v13, %v339_v12  ;;  %v345_v15 = vsel %vm342_vm0, %v339_v12, %v335_v13  ;;  %v295_v34 = vpop.permute.xlu2 %294 }
  0x83   : > { %v349_v17 = vmul.f32 %v3691_v10, %v343_v14  ;;  %v350_v18 = vmul.f32 %v3694_v11, %v345_v15  ;;  %v3761_v14 = vperm.slane %v3682_v8, 3 }
  0x85   : > { %v353_v21 = vpack.c.bf16 %v350_v18, %v349_v17  ;;  %v3764_v17 = vperm.slane %v3687_v9, 3 }
  0x87   : > { %355 = vst [vmem:[#allocation2 + $0x70] sm:$0xff] %v353_v21 }
  0x89   : > { %v341_v26 = vpop.permute.xlu1 %340  ;;  %v337_v27 = vpop.permute.xlu0 %336 }
  0x8a   : > { %v344_v28 = vsel %vm342_vm0, %v337_v27, %v341_v26  ;;  %v346_v29 = vsel %vm342_vm0, %v341_v26, %v337_v27  ;;  %v260_v54 = vpop.permute.xlu2 %259 }
  0x8b   : > { %v351_v32 = vmul.f32 %v3691_v10, %v344_v28  ;;  %v352_v33 = vmul.f32 %v3694_v11, %v346_v29 }
  0x8d   : > { %v354_v35 = vpack.c.bf16 %v352_v33, %v351_v32  ;;  %v3349_v32 = vld [vmem:[#allocation2 + $0x44] sm:$0xf] }
  0x8e   : > { %v2604_v50 = vld [vmem:[#allocation2 + $0x70] sm:$0xf]  ;;  %v3355_v52 = vld [vmem:[#allocation2 + $0x74] sm:$0xf] }
  0x8f   : > { %356 = vst [vmem:[#allocation2 + $0x78] sm:$0xff] %v354_v35  ;;  %v2582_v35 = vld [vmem:[#allocation2 + $0x48] sm:$0xf0] }
  0x91   : > { %v318_v38 = vpop.permute.xlu1 %317  ;;  %v316_v39 = vpop.permute.xlu0 %315 }
  0x92   : > { %v321_v40 = vsel %vm319_vm1, %v314_v6, %v318_v38  ;;  %v323_v41 = vsel %vm319_vm1, %v318_v38, %v314_v6  ;;  %v320_v42 = vsel %vm319_vm1, %v312_v4, %v316_v39  ;;  %v322_v43 = vsel %vm319_vm1, %v316_v39, %v312_v4  ;;  %v235_v22 = vpop.permute.xlu2 %234 }
  0x93   : > { %v328_v44 = vmul.f32 %v3723_v36, %v321_v40  ;;  %v329_v45 = vmul.f32 %v3726_v37, %v323_v41  ;;  %v326_v46 = vmul.f32 %v3723_v36, %v320_v42  ;;  %v327_v47 = vmul.f32 %v3726_v37, %v322_v43 }
  0x95   : > { %v331_v48 = vpack.c.bf16 %v329_v45, %v328_v44  ;;  %v330_v49 = vpack.c.bf16 %v327_v47, %v326_v46  ;;  %v2581_v44 = vor.u32 %v3350_v31, %v2580_v30  ;;  %v2585_v47 = vor.u32 %v3349_v32, %v2582_v35 }
  0x96   : > { %v3356_v51 = vld [vmem:[#allocation2 + $0x74] sm:$0xf0]  ;;  %v2606_v53 = vld [vmem:[#allocation2 + $0x78] sm:$0xf0] }
  0x97   : > { %333 = vst [vmem:[#allocation2 + $0x68] sm:$0xff] %v331_v48  ;;  %v2605_v57 = vor.u32 %v3356_v51, %v2604_v50  ;;  %v2609_v58 = vor.u32 %v3355_v52, %v2606_v53  ;;  %v3780_v52 = vperm.slane %v3682_v8, 2  ;;  %v3783_v53 = vperm.slane %v3687_v9, 2 }
  0x98   : > { %332 = vst [vmem:[#allocation2 + $0x60] sm:$0xff] %v330_v49 }
  0x99   : > { %v293_v59 = vpop.permute.xlu1 %292  ;;  %503 = vmatpush.bf16.msra.mxu0 %v2605_v57  ;;  %531 = vmatpush.bf16.msra.mxu2 %v2609_v58  ;;  %v291_v60 = vpop.permute.xlu0 %290 }
  0x9a   : > { %v297_v61 = vsel %vm296_vm2, %v289_v16, %v293_v59  ;;  %v299_v62 = vsel %vm296_vm2, %v293_v59, %v289_v16  ;;  %v298_v63 = vsel %vm296_vm2, %v291_v60, %v295_v34  ;;  %v300_v0 = vsel %vm296_vm2, %v295_v34, %v291_v60  ;;  %v210_v50 = vpop.permute.xlu2 %209 }
  0x9b   : > { %v303_v1 = vmul.f32 %v3742_v55, %v297_v61  ;;  %v304_v2 = vmul.f32 %v3745_v56, %v299_v62  ;;  %v305_v3 = vmul.f32 %v3742_v55, %v298_v63  ;;  %v306_v4 = vmul.f32 %v3745_v56, %v300_v0 }
  0x9d   : > { %v307_v5 = vpack.c.bf16 %v304_v2, %v303_v1  ;;  %v308_v6 = vpack.c.bf16 %v306_v4, %v305_v3 }
  0x9e   : > { %v3354_v12 = vld [vmem:[#allocation2 + $0x64] sm:$0xf0]  ;;  %v2598_v13 = vld [vmem:[#allocation2 + $0x68] sm:$0xf0] }
  0x9f   : > { %309 = vst [vmem:[#allocation2 + $0x50] sm:$0xff] %v307_v5  ;;  %v2596_v15 = vld [vmem:[#allocation2 + $0x60] sm:$0xf]  ;;  %v3353_v16 = vld [vmem:[#allocation2 + $0x64] sm:$0xf] }
  0xa0   : > { %310 = vst [vmem:[#allocation2 + $0x58] sm:$0xff] %v308_v6  ;;  %v2597_v18 = vor.u32 %v3354_v12, %v2596_v15  ;;  %v2601_v21 = vor.u32 %v3353_v16, %v2598_v13  ;;  %v3799_v15 = vperm.slane %v3682_v8, 1  ;;  %v3802_v16 = vperm.slane %v3687_v9, 1 }
  0xa1   : > { %v258_v23 = vpop.permute.xlu1 %257  ;;  %v256_v24 = vpop.permute.xlu0 %255 }
  0xa2   : > { %504 = vmatpush.bf16.msra.mxu0 %v2597_v18  ;;  %532 = vmatpush.bf16.msra.mxu2 %v2601_v21  ;;  %v264_v25 = vsel %vm263_vm3, %v256_v24, %v260_v54  ;;  %v266_v26 = vsel %vm263_vm3, %v260_v54, %v256_v24  ;;  %v216_v4 = vpop.permute.xlu2 %215 }
  0xa3   : > { %v270_v27 = vmul.f32 %v3761_v14, %v266_v26  ;;  %v271_v28 = vmul.f32 %v3764_v17, %v264_v25 }
  0xa5   : > { %v274_v29 = vpack.c.bf16 %v271_v28, %v270_v27 }
  0xa6   : > { %v2588_v33 = vld [vmem:[#allocation2 + $0x50] sm:$0xf]  ;;  %v3351_v34 = vld [vmem:[#allocation2 + $0x54] sm:$0xf] }
  0xa7   : > { %276 = vst [vmem:[#allocation2 + $0x30] sm:$0xff] %v274_v29  ;;  %v3352_v38 = vld [vmem:[#allocation2 + $0x54] sm:$0xf0]  ;;  %v2590_v39 = vld [vmem:[#allocation2 + $0x58] sm:$0xf0] }
  0xa8   : > { %v2589_v40 = vor.u32 %v3352_v38, %v2588_v33  ;;  %v2593_v41 = vor.u32 %v3351_v34, %v2590_v39  ;;  %v3818_v34 = vperm.slane %v3682_v8, 0 }
  0xa9   : > { %v233_v42 = vpop.permute.xlu1 %232  ;;  %v262_v43 = vpop.permute.xlu0 %261 }
  0xaa   : > { %505 = vmatpush.bf16.msra.mxu0 %v2589_v40  ;;  %533 = vmatpush.bf16.msra.mxu2 %v2593_v41  ;;  %v265_v45 = vsel %vm263_vm3, %v258_v23, %v262_v43  ;;  %v267_v46 = vsel %vm263_vm3, %v262_v43, %v258_v23  ;;  %v189_v39 = vpop.permute.xlu2 %188  ;;  %v3821_v40 = vperm.slane %v3687_v9, 0 }
  0xab   : > { %v272_v48 = vmul.f32 %v3761_v14, %v267_v46  ;;  %v273_v49 = vmul.f32 %v3764_v17, %v265_v45 }
  0xad   : > { %v275_v51 = vpack.c.bf16 %v273_v49, %v272_v48 }
  0xae   : > { %506 = vmatpush.bf16.msra.mxu0 %v2581_v44  ;;  %534 = vmatpush.bf16.msra.mxu2 %v2585_v47  ;;  %v2572_v5 = vld [vmem:[#allocation2 + $0x30] sm:$0xf]  ;;  %v3347_v12 = vld [vmem:[#allocation2 + $0x34] sm:$0xf] }
  0xaf   : > { %277 = vst [vmem:[#allocation2 + $0x38] sm:$0xff] %v275_v51 }
  0xb1   : > { %v239_v54 = vpop.permute.xlu1 %238  ;;  %v237_v57 = vpop.permute.xlu0 %236 }
  0xb2   : > { %v242_v58 = vsel %vm240_vm4, %v235_v22, %v239_v54  ;;  %v244_v59 = vsel %vm240_vm4, %v239_v54, %v235_v22  ;;  %v241_v60 = vsel %vm240_vm4, %v233_v42, %v237_v57  ;;  %v243_v61 = vsel %vm240_vm4, %v237_v57, %v233_v42 }
  0xb3   : > { %v249_v62 = vmul.f32 %v3780_v52, %v244_v59  ;;  %v250_v63 = vmul.f32 %v3783_v53, %v242_v58  ;;  %v247_v0 = vmul.f32 %v3780_v52, %v243_v61  ;;  %v248_v1 = vmul.f32 %v3783_v53, %v241_v60 }
  0xb5   : > { %v252_v2 = vpack.c.bf16 %v250_v63, %v249_v62  ;;  %v251_v3 = vpack.c.bf16 %v248_v1, %v247_v0 }
  0xb6   : > { %v3348_v6 = vld [vmem:[#allocation2 + $0x34] sm:$0xf0]  ;;  %v2574_v13 = vld [vmem:[#allocation2 + $0x38] sm:$0xf0] }
  0xb7   : > { %254 = vst [vmem:[#allocation2 + $0x28] sm:$0xff] %v252_v2  ;;  %v2573_v18 = vor.u32 %v3348_v6, %v2572_v5  ;;  %v2577_v21 = vor.u32 %v3347_v12, %v2574_v13  ;;  %v360_v5 = vpop.permute.xlu2 %359 }
  0xb8   : > { %253 = vst [vmem:[#allocation2 + $0x20] sm:$0xff] %v251_v3  ;;  %v3839_v3 = vld [vmem:[%s4447_s2 + $0x10] ss:$0 sm:$0xff] }
  0xb9   : > { %v214_v22 = vpop.permute.xlu1 %213  ;;  %v212_v23 = vpop.permute.xlu0 %211  ;;  %507 = vmatpush.bf16.msra.mxu0 %v2573_v18  ;;  %535 = vmatpush.bf16.msra.mxu2 %v2577_v21 }
  0xba   : > { %v218_v24 = vsel %vm217_vm5, %v210_v50, %v214_v22  ;;  %v220_v25 = vsel %vm217_vm5, %v214_v22, %v210_v50  ;;  %v219_v26 = vsel %vm217_vm5, %v212_v23, %v216_v4  ;;  %v221_v27 = vsel %vm217_vm5, %v216_v4, %v212_v23  ;;  %v3844_v4 = vld [vmem:[%s4447_s2 + $0x18] ss:$0 sm:$0xff] }
  0xbb   : > { %v224_v28 = vmul.f32 %v3799_v15, %v220_v25  ;;  %v225_v29 = vmul.f32 %v3802_v16, %v218_v24  ;;  %v226_v30 = vmul.f32 %v3799_v15, %v221_v27  ;;  %v227_v31 = vmul.f32 %v3802_v16, %v219_v26  ;;  %v2696_v27 = vld [vmem:[#allocation2 + $0x78] sm:$0xf0] }
  0xbd   : > { %v228_v32 = vpack.c.bf16 %v225_v29, %v224_v28  ;;  %v229_v33 = vpack.c.bf16 %v227_v31, %v226_v30  ;;  %v2540_v31 = vld [vmem:[%s4446_s1] sm:$0xf] }
  0xbe   : > { %v3346_v35 = vld [vmem:[#allocation2 + $0x24] sm:$0xf0]  ;;  %v2566_v38 = vld [vmem:[#allocation2 + $0x28] sm:$0xf0] }
  0xbf   : > { %230 = vst [vmem:[#allocation2 + $0x10] sm:$0xff] %v228_v32  ;;  %v2564_v41 = vld [vmem:[#allocation2 + $0x20] sm:$0xf]  ;;  %v3345_v42 = vld [vmem:[#allocation2 + $0x24] sm:$0xf] }
  0xc0   : > { %231 = vst [vmem:[#allocation2 + $0x18] sm:$0xff] %v229_v33  ;;  %v2565_v43 = vor.u32 %v3346_v35, %v2564_v41  ;;  %v2569_v44 = vor.u32 %v3345_v42, %v2566_v38  ;;  %v3340_v32 = vld [vmem:[%s4446_s1 + $0x10] sm:$0xf0] }
  0xc1   : > { %v187_v45 = vpop.permute.xlu1 %186  ;;  %v185_v46 = vpop.permute.xlu0 %184  ;;  %v3376_v42 = vld [vmem:[#allocation2 + $0x74] sm:$0xf] }
  0xc2   : > { %v195_v47 = vsel %vm194_vm6, %v185_v46, %v189_v39  ;;  %v197_v8 = vsel %vm194_vm6, %v189_v39, %v185_v46  ;;  %508 = vmatpush.bf16.msra.mxu0 %v2565_v43  ;;  %536 = vmatpush.bf16.msra.mxu2 %v2569_v44  ;;  %v2699_v43 = vor.u32 %v3376_v42, %v2696_v27  ;;  %v2688_v46 = vld [vmem:[#allocation2 + $0x68] sm:$0xf0]  ;;  %v2654_v42 = vld [vmem:[#allocation2 + $0x20] sm:$0xf] }
  0xc3   : > { %v201_v48 = vmul.f32 %v3818_v34, %v197_v8  ;;  %v202_v9 = vmul.f32 %v3821_v40, %v195_v47  ;;  %v2541_v44 = vor.u32 %v3340_v32, %v2540_v31  ;;  %v3377_v8 = vld [vmem:[#allocation2 + $0x74] sm:$0xf0] }
  0xc4   : > { %v3369_v32 = vld [vmem:[#allocation2 + $0x34] sm:$0xf0] }
  0xc5   : > { %v205_v49 = vpack.c.bf16 %v202_v9, %v201_v48  ;;  %v3372_v48 = vld [vmem:[#allocation2 + $0x54] sm:$0xf]  ;;  %v2680_v9 = vld [vmem:[#allocation2 + $0x58] sm:$0xf0] }
  0xc6   : > { %v2556_v50 = vld [vmem:[#allocation2 + $0x10] sm:$0xf]  ;;  %v3343_v51 = vld [vmem:[#allocation2 + $0x14] sm:$0xf] }
  0xc7   : > { %207 = vst [vmem:[#allocation2] sm:$0xff] %v205_v49  ;;  %v3344_v54 = vld [vmem:[#allocation2 + $0x14] sm:$0xf0]  ;;  %v2558_v57 = vld [vmem:[#allocation2 + $0x18] sm:$0xf0] }
  0xc8   : > { %v2557_v58 = vor.u32 %v3344_v54, %v2556_v50  ;;  %v2561_v59 = vor.u32 %v3343_v51, %v2558_v57  ;;  %v3339_v49 = vld [vmem:[%s4446_s1 + $0x4] sm:$0xf]  ;;  %v2542_v54 = vld [vmem:[%s4446_s1 + $0x14] sm:$0xf0] }
  0xc9   : > { %v358_v60 = vpop.permute.xlu1 %357  ;;  %v191_v61 = vpop.permute.xlu0 %190 }
  0xca   : > { %v196_v62 = vsel %vm194_vm6, %v187_v45, %v191_v61  ;;  %v198_v63 = vsel %vm194_vm6, %v191_v61, %v187_v45  ;;  %509 = vmatpush.bf16.msra.mxu0 %v2557_v58  ;;  %537 = vmatpush.bf16.msra.mxu2 %v2561_v59  ;;  %v3374_v45 = vld [vmem:[#allocation2 + $0x64] sm:$0xf]  ;;  %v2694_v61 = vld [vmem:[#allocation2 + $0x70] sm:$0xf] }
  0xcb   : > { %v203_v0 = vmul.f32 %v3818_v34, %v198_v63  ;;  %v204_v1 = vmul.f32 %v3821_v40, %v196_v62  ;;  %v2691_v47 = vor.u32 %v3374_v45, %v2688_v46  ;;  %v3370_v62 = vld [vmem:[#allocation2 + $0x44] sm:$0xf]  ;;  %v2672_v63 = vld [vmem:[#allocation2 + $0x48] sm:$0xf0] }
  0xcd   : > { %v206_v2 = vpack.c.bf16 %v204_v1, %v203_v0  ;;  %v2695_v0 = vor.u32 %v3377_v8, %v2694_v61  ;;  %v2683_v1 = vor.u32 %v3372_v48, %v2680_v9  ;;  %v2646_v8 = vld [vmem:[#allocation2 + $0x10] sm:$0xf]  ;;  %v3365_v48 = vld [vmem:[#allocation2 + $0x14] sm:$0xf0] }
  0xce   : > { %v2548_v30 = vld [vmem:[#allocation2] sm:$0xf]  ;;  %v3341_v35 = vld [vmem:[#allocation2 + $0x4] sm:$0xf]  ;;  %v2647_v9 = vor.u32 %v3365_v48, %v2646_v8 }
  0xcf   : > { %208 = vst [vmem:[#allocation2 + $0x8] sm:$0xff] %v206_v2  ;;  %v2545_v2 = vor.u32 %v3339_v49, %v2542_v54  ;;  %v3362_v45 = vld [vmem:[#allocation2 + $0x4] sm:$0xf] }
  0xd1   : > { %v364_v6 = vpop.permute.xlu1 %363  ;;  %v362_v12 = vpop.permute.xlu0 %361 }
  0xd2   : > { %v367_v13 = vsel %vm365_vm7, %v360_v5, %v364_v6  ;;  %v369_v18 = vsel %vm365_vm7, %v364_v6, %v360_v5  ;;  %v366_v21 = vsel %vm365_vm7, %v358_v60, %v362_v12  ;;  %v368_v22 = vsel %vm365_vm7, %v362_v12, %v358_v60  ;;  %v2686_v5 = vld [vmem:[#allocation2 + $0x60] sm:$0xf]  ;;  %v3375_v6 = vld [vmem:[#allocation2 + $0x64] sm:$0xf0] }
  0xd3   : > { %v374_v23 = vmul.f32 %v3839_v3, %v367_v13  ;;  %v375_v24 = vmul.f32 %v3844_v4, %v369_v18  ;;  %v372_v25 = vmul.f32 %v3839_v3, %v366_v21  ;;  %v373_v26 = vmul.f32 %v3844_v4, %v368_v22  ;;  %v2678_v18 = vld [vmem:[#allocation2 + $0x50] sm:$0xf]  ;;  %v3373_v21 = vld [vmem:[#allocation2 + $0x54] sm:$0xf0]  ;;  %v2664_v22 = vld [vmem:[#allocation2 + $0x38] sm:$0xf0] }
  0xd4   : > { %v2675_v12 = vor.u32 %v3370_v62, %v2672_v63  ;;  %v2687_v13 = vor.u32 %v3375_v6, %v2686_v5 }
  0xd5   : > { %v377_v28 = vpack.c.bf16 %v375_v24, %v374_v23  ;;  %v376_v29 = vpack.c.bf16 %v373_v26, %v372_v25  ;;  %v3368_v23 = vld [vmem:[#allocation2 + $0x34] sm:$0xf]  ;;  %v2670_v24 = vld [vmem:[#allocation2 + $0x40] sm:$0xf]  ;;  %v3371_v25 = vld [vmem:[#allocation2 + $0x44] sm:$0xf0]  ;;  %v2679_v26 = vor.u32 %v3373_v21, %v2678_v18 }
  0xd6   : > { %v3342_v33 = vld [vmem:[#allocation2 + $0x4] sm:$0xf0]  ;;  %v2550_v38 = vld [vmem:[#allocation2 + $0x8] sm:$0xf0]  ;;  %v2667_v27 = vor.u32 %v3368_v23, %v2664_v22 }
  0xd7   : > { %379 = vst [vmem:[#allocation2 + $0x88] sm:$0xff] %v377_v28  ;;  %v2549_v39 = vor.u32 %v3342_v33, %v2548_v30  ;;  %v2553_v41 = vor.u32 %v3341_v35, %v2550_v38  ;;  %v3366_v28 = vld [vmem:[#allocation2 + $0x24] sm:$0xf]  ;;  %v2671_v30 = vor.u32 %v3371_v25, %v2670_v24  ;;  %v3364_v33 = vld [vmem:[#allocation2 + $0x14] sm:$0xf] }
  0xd8   : > { %378 = vst [vmem:[#allocation2 + $0x80] sm:$0xff] %v376_v29  ;;  %v2656_v29 = vld [vmem:[#allocation2 + $0x28] sm:$0xf0]  ;;  %v2648_v35 = vld [vmem:[#allocation2 + $0x18] sm:$0xf0] }
  0xd9   : > { %510 = vmatpush.bf16.msra.mxu0 %v2549_v39  ;;  %538 = vmatpush.bf16.msra.mxu2 %v2553_v41  ;;  %v2659_v31 = vor.u32 %v3366_v28, %v2656_v29  ;;  %v2662_v38 = vld [vmem:[#allocation2 + $0x30] sm:$0xf]  ;;  %v2651_v41 = vor.u32 %v3364_v33, %v2648_v35  ;;  %v3363_v49 = vld [vmem:[#allocation2 + $0x4] sm:$0xf0] }
  0xda   : > { %v2663_v39 = vor.u32 %v3369_v32, %v2662_v38 }
  0xdc   : > { %511 = vmatmul.bf16.vlgmr.msra.gmra.mxu0 %v2541_v44  ;;  %539 = vmatmul.bf16.vlgmr.msra.gmra.mxu2 %v2541_v44  ;;  %v2640_v44 = vld [vmem:[#allocation2 + $0x8] sm:$0xf0] }
  0xdd   : > { %1013 = vmatpush.bf16.msrb.mxu2 %v2699_v43  ;;  %v3367_v43 = vld [vmem:[#allocation2 + $0x24] sm:$0xf0] }
  0xde   : > { %v3358_v50 = vld [vmem:[#allocation2 + $0x84] sm:$0xf0]  ;;  %v2614_v51 = vld [vmem:[#allocation2 + $0x88] sm:$0xf0]  ;;  %v2655_v46 = vor.u32 %v3367_v43, %v2654_v42 }
  0xdf   : > { %v2612_v57 = vld [vmem:[#allocation2 + $0x80] sm:$0xf]  ;;  %v3357_v58 = vld [vmem:[#allocation2 + $0x84] sm:$0xf] }
  0xe0   : > { %v2613_v59 = vor.u32 %v3358_v50, %v2612_v57  ;;  %v2617_v60 = vor.u32 %v3357_v58, %v2614_v51  ;;  %v2638_v50 = vld [vmem:[#allocation2] sm:$0xf] }
  0xe1   : > { %1014 = vmatpush.bf16.msrb.mxu2 %v2691_v47  ;;  %v2643_v47 = vor.u32 %v3362_v45, %v2640_v44  ;;  %v2639_v51 = vor.u32 %v3363_v49, %v2638_v50 }
  0xe2   : > { %524 = vmatpush.bf16.msra.mxu1 %v2613_v59  ;;  %552 = vmatpush.bf16.msra.mxu3 %v2617_v60 }
  0xe5   : > { %1015 = vmatpush.bf16.msrb.mxu2 %v2683_v1  ;;  %2618 = vmatmul.msk.bf16.vlgmr.msra.gmra.mxu1 %vm499_vm8, %v2545_v2 }
  0xe6   : > { %971 = vmatpush.bf16.msrb.mxu1 %v2695_v0  ;;  %2619 = vmatmul.msk.bf16.vlgmr.msra.gmra.mxu3 %vm499_vm8, %v2545_v2 }
  0xe9   : > { %1016 = vmatpush.bf16.msrb.mxu2 %v2675_v12 }
  0xea   : > { %972 = vmatpush.bf16.msrb.mxu1 %v2687_v13 }
  0xed   : > { %1017 = vmatpush.bf16.msrb.mxu2 %v2667_v27 }
  0xee   : > { %973 = vmatpush.bf16.msrb.mxu1 %v2679_v26 }
  0xf1   : > { %1018 = vmatpush.bf16.msrb.mxu2 %v2659_v31 }
  0xf2   : > { %974 = vmatpush.bf16.msrb.mxu1 %v2671_v30 }
  0xf5   : > { %1019 = vmatpush.bf16.msrb.mxu2 %v2651_v41 }
  0xf6   : > { %975 = vmatpush.bf16.msrb.mxu1 %v2663_v39 }
  0xf9   : > { %1020 = vmatpush.bf16.msrb.mxu2 %v2643_v47 }
  0xfa   : > { %976 = vmatpush.bf16.msrb.mxu1 %v2655_v46 }
  0xfe   : > { %977 = vmatpush.bf16.msrb.mxu1 %v2647_v9 }
 0x102   : > { %978 = vmatpush.bf16.msrb.mxu1 %v2639_v51 }
 0x159   : > { %v512_v54 = vpop.f32.mrf.mxu0 }
 0x15f   : > { %v540_v59 = vpop.f32.mrf.mxu2 }
 0x161   : > { %v514_v62 = vpop.f32.mrf.mxu0 }
 0x162   : > { %v526_v57 = vpop.f32.mrf.mxu1 }
 0x163   : > { %v527_v58 = vadd.f32 %v526_v57, %v512_v54 }
 0x165   : > { %559 = vst [vmem:[%s3606_s21 + $0x20] sm:$0xff] %v527_v58  ;;  %623 = vrot.lane.b32.xlu1 %v527_v58, %s3567_s25  ;;  %651 = vrot.lane.b32.xlu0 %v527_v58, %s3566_s24  ;;  %v643_v1 = vmul.f32 %v527_v58, %v3703_v19 }
 0x166   : > { %671 = vrot.lane.b32.xlu2 %v527_v58, %s3565_s23 }
 0x167   : > { %v542_v6 = vpop.f32.mrf.mxu2 }
 0x169   : > { %v554_v60 = vpop.f32.mrf.mxu3 }
 0x16a   : > { %v555_v61 = vadd.f32 %v554_v60, %v540_v59  ;;  %v528_v63 = vpop.f32.mrf.mxu1 }
 0x16b   : > { %v529_v0 = vadd.f32 %v528_v63, %v514_v62 }
 0x16c   : > { %560 = vst [vmem:[%s3606_s21 + $0x28] sm:$0xff] %v555_v61  ;;  %v644_v2 = vmul.f32 %v555_v61, %v3706_v20 }
 0x16d   : > { %561 = vst [vmem:[%s3606_s21 + $0x30] sm:$0xff] %v529_v0  ;;  %583 = vrot.lane.b32.xlu0 %v527_v58, %s3569_s27  ;;  %675 = vrot.lane.b32.xlu1 %v555_v61, %s3565_s23  ;;  %v645_v18 = vmul.f32 %v529_v0, %v3703_v19 }
 0x16e   : > { %v647_v5 = vpack.c.bf16 %v644_v2, %v643_v1  ;;  %603 = vrot.lane.b32.xlu2 %v527_v58, %s3568_s26 }
 0x170   : > { %649 = vst [vmem:[#allocation2 + $0xd0] sm:$0xff] %v647_v5 }
 0x171   : > { %v556_v12 = vpop.f32.mrf.mxu3 }
 0x172   : > { %v557_v13 = vadd.f32 %v556_v12, %v542_v6 }
 0x174   : > { %562 = vst [vmem:[%s3606_s21 + $0x38] sm:$0xff] %v557_v13  ;;  %v646_v21 = vmul.f32 %v557_v13, %v3706_v20 }
 0x175   : > { %627 = vrot.lane.b32.xlu0 %v555_v61, %s3567_s25  ;;  %607 = vrot.lane.b32.xlu1 %v555_v61, %s3568_s26 }
 0x176   : > { %v648_v22 = vpack.c.bf16 %v646_v21, %v645_v18  ;;  %655 = vrot.lane.b32.xlu2 %v555_v61, %s3566_s24 }
 0x178   : > { %650 = vst [vmem:[#allocation2 + $0xd8] sm:$0xff] %v648_v22 }
 0x17d   : > { %673 = vrot.lane.b32.xlu0 %v529_v0, %s3565_s23  ;;  %653 = vrot.lane.b32.xlu1 %v529_v0, %s3566_s24 }
 0x17e   : > { %625 = vrot.lane.b32.xlu2 %v529_v0, %s3567_s25 }
 0x185   : > { %605 = vrot.lane.b32.xlu0 %v529_v0, %s3568_s26  ;;  %585 = vrot.lane.b32.xlu1 %v529_v0, %s3569_s27 }
 0x186   : > { %677 = vrot.lane.b32.xlu2 %v557_v13, %s3565_s23 }
 0x18d   : > { %629 = vrot.lane.b32.xlu1 %v557_v13, %s3567_s25  ;;  %657 = vrot.lane.b32.xlu0 %v557_v13, %s3566_s24 }
 0x18e   : > { %587 = vrot.lane.b32.xlu2 %v555_v61, %s3569_s27 }
 0x195   : > { %563 = vrot.lane.b32.xlu1 %v527_v58, %s3570_s28  ;;  %567 = vrot.lane.b32.xlu0 %v555_v61, %s3570_s28 }
 0x196   : > { %609 = vrot.lane.b32.xlu2 %v557_v13, %s3568_s26 }
 0x19d   : > { %569 = vrot.lane.b32.xlu1 %v557_v13, %s3570_s28  ;;  %589 = vrot.lane.b32.xlu0 %v557_v13, %s3569_s27 }
 0x19e   : > { %565 = vrot.lane.b32.xlu2 %v529_v0, %s3570_s28 }
 0x1a5   : > { %715 = vrot.lane.b32.xlu1 %v555_v61, %s3571_s29  ;;  %713 = vrot.lane.b32.xlu0 %v529_v0, %s3571_s29 }
 0x1a6   : > { %711 = vrot.lane.b32.xlu2 %v527_v58, %s3571_s29 }
 0x1ad   : > { %693 = vrot.lane.b32.xlu1 %v529_v0, %s3564_s22  ;;  %691 = vrot.lane.b32.xlu0 %v527_v58, %s3564_s22 }
 0x1ae   : > { %717 = vrot.lane.b32.xlu2 %v557_v13, %s3571_s29 }
 0x1b5   : > { %697 = vrot.lane.b32.xlu0 %v557_v13, %s3564_s22 }
 0x1b6   : > { %695 = vrot.lane.b32.xlu2 %v555_v61, %s3564_s22 }
 0x1c0   : > { %v672_v23 = vpop.permute.xlu2 %671 }
 0x1c8   : > { %v604_v24 = vpop.permute.xlu2 %603 }
 0x1d0   : > { %v656_v25 = vpop.permute.xlu2 %655 }
 0x1d7   : > { %v624_v26 = vpop.permute.xlu1 %623  ;;  %v652_v27 = vpop.permute.xlu0 %651 }
 0x1d8   : > { %v659_v28 = vsel %vm296_vm2, %v652_v27, %v656_v25  ;;  %v661_v29 = vsel %vm296_vm2, %v656_v25, %v652_v27  ;;  %v3914_v30 = vpop.permute.xlu2 %625 }
 0x1d9   : > { %v663_v31 = vmul.f32 %v659_v28, %v3742_v55  ;;  %v664_v32 = vmul.f32 %v661_v29, %v3745_v56 }
 0x1db   : > { %v667_v33 = vpack.c.bf16 %v664_v32, %v663_v31 }
 0x1dd   : > { %669 = vst [vmem:[#allocation2 + $0xe0] sm:$0xff] %v667_v33 }
 0x1df   : > { %v584_v35 = vpop.permute.xlu0 %583  ;;  %v676_v38 = vpop.permute.xlu1 %675 }
 0x1e0   : > { %v679_v39 = vsel %vm319_vm1, %v672_v23, %v676_v38  ;;  %v681_v41 = vsel %vm319_vm1, %v676_v38, %v672_v23  ;;  %v678_v42 = vpop.permute.xlu2 %677 }
 0x1e1   : > { %v683_v43 = vmul.f32 %v679_v39, %v3723_v36  ;;  %v684_v44 = vmul.f32 %v681_v41, %v3726_v37 }
 0x1e3   : > { %v687_v45 = vpack.c.bf16 %v684_v44, %v683_v43 }
 0x1e5   : > { %689 = vst [vmem:[#allocation2 + $0xf0] sm:$0xff] %v687_v45 }
 0x1e7   : > { %v628_v46 = vpop.permute.xlu0 %627  ;;  %v608_v47 = vpop.permute.xlu1 %607 }
 0x1e8   : > { %v631_v8 = vsel %vm263_vm3, %v624_v26, %v628_v46  ;;  %v633_v48 = vsel %vm263_vm3, %v628_v46, %v624_v26  ;;  %v611_v9 = vsel %vm240_vm4, %v604_v24, %v608_v47  ;;  %v613_v49 = vsel %vm240_vm4, %v608_v47, %v604_v24  ;;  %v588_v50 = vpop.permute.xlu2 %587 }
 0x1e9   : > { %v635_v51 = vmul.f32 %v633_v48, %v3761_v14  ;;  %v636_v54 = vmul.f32 %v631_v8, %v3764_v17  ;;  %v615_v57 = vmul.f32 %v613_v49, %v3780_v52  ;;  %v616_v58 = vmul.f32 %v611_v9, %v3783_v53 }
 0x1ea   : > { %v591_v59 = vsel %vm217_vm5, %v584_v35, %v588_v50  ;;  %v593_v60 = vsel %vm217_vm5, %v588_v50, %v584_v35 }
 0x1eb   : > { %v639_v61 = vpack.c.bf16 %v636_v54, %v635_v51  ;;  %v619_v62 = vpack.c.bf16 %v616_v58, %v615_v57  ;;  %v595_v63 = vmul.f32 %v593_v60, %v3799_v15  ;;  %v596_v0 = vmul.f32 %v591_v59, %v3802_v16 }
 0x1ec   : > { %v2758_v31 = vld [vmem:[#allocation2 + $0xf0] sm:$0xf]  ;;  %v3392_v33 = vld [vmem:[#allocation2 + $0xf4] sm:$0xf] }
 0x1ed   : > { %641 = vst [vmem:[#allocation2 + $0xc0] sm:$0xff] %v639_v61  ;;  %v599_v1 = vpack.c.bf16 %v596_v0, %v595_v63  ;;  %v2750_v63 = vld [vmem:[#allocation2 + $0xe0] sm:$0xf]  ;;  %v3390_v0 = vld [vmem:[#allocation2 + $0xe4] sm:$0xf] }
 0x1ee   : > { %621 = vst [vmem:[#allocation2 + $0xb0] sm:$0xff] %v619_v62 }
 0x1ef   : > { %601 = vst [vmem:[#allocation2 + $0xa0] sm:$0xff] %v599_v1  ;;  %v674_v2 = vpop.permute.xlu0 %673  ;;  %v654_v5 = vpop.permute.xlu1 %653 }
 0x1f0   : > { %v680_v6 = vsel %vm319_vm1, %v674_v2, %v678_v42  ;;  %v682_v12 = vsel %vm319_vm1, %v678_v42, %v674_v2  ;;  %v610_v22 = vpop.permute.xlu2 %609 }
 0x1f1   : > { %v685_v13 = vmul.f32 %v680_v6, %v3723_v36  ;;  %v686_v18 = vmul.f32 %v682_v12, %v3726_v37  ;;  %v2626_v12 = vld [vmem:[%s4446_s1 + $0x28] sm:$0xf] }
 0x1f3   : > { %v688_v21 = vpack.c.bf16 %v686_v18, %v685_v13  ;;  %v3360_v13 = vld [vmem:[%s4446_s1 + $0x38] sm:$0xf0] }
 0x1f5   : > { %690 = vst [vmem:[#allocation2 + $0xf8] sm:$0xff] %v688_v21 }
 0x1f7   : > { %v606_v23 = vpop.permute.xlu0 %605  ;;  %v586_v24 = vpop.permute.xlu1 %585 }
 0x1f8   : > { %v612_v25 = vsel %vm240_vm4, %v606_v23, %v610_v22  ;;  %v614_v26 = vsel %vm240_vm4, %v610_v22, %v606_v23  ;;  %v566_v47 = vpop.permute.xlu2 %565  ;;  %v3389_v22 = vld [vmem:[#allocation2 + $0xd4] sm:$0xf0]  ;;  %v2627_v23 = vor.u32 %v3360_v13, %v2626_v12  ;;  %v2718_v13 = vld [vmem:[#allocation2 + $0xa0] sm:$0xf] }
 0x1f9   : > { %v617_v27 = vmul.f32 %v614_v26, %v3780_v52  ;;  %v618_v28 = vmul.f32 %v612_v25, %v3783_v53 }
 0x1fa   : > { %979 = vmatmul.bf16.vlgmr.msrb.gmra.mxu1 %v2627_v23  ;;  %1021 = vmatmul.bf16.vlgmr.msrb.gmra.mxu2 %v2627_v23 }
 0x1fb   : > { %v620_v29 = vpack.c.bf16 %v618_v28, %v617_v27 }
 0x1fc   : > { %v3393_v32 = vld [vmem:[#allocation2 + $0xf4] sm:$0xf0]  ;;  %v2760_v35 = vld [vmem:[#allocation2 + $0xf8] sm:$0xf0] }
 0x1fd   : > { %622 = vst [vmem:[#allocation2 + $0xb8] sm:$0xff] %v620_v29  ;;  %v2759_v38 = vor.u32 %v3393_v32, %v2758_v31  ;;  %v2763_v39 = vor.u32 %v3392_v33, %v2760_v35  ;;  %v2744_v29 = vld [vmem:[#allocation2 + $0xd8] sm:$0xf0] }
 0x1ff   : > { %v630_v41 = vpop.permute.xlu1 %629  ;;  %v658_v42 = vpop.permute.xlu0 %657  ;;  %985 = vmatpush.bf16.msrb.mxu3 %v2759_v38  ;;  %1027 = vmatpush.bf16.msra.mxu1 %v2763_v39  ;;  %v2742_v38 = vld [vmem:[#allocation2 + $0xd0] sm:$0xf] }
 0x200   : > { %v632_v43 = vsel %vm263_vm3, %v3914_v30, %v630_v41  ;;  %v634_v44 = vsel %vm263_vm3, %v630_v41, %v3914_v30  ;;  %v660_v45 = vsel %vm296_vm2, %v654_v5, %v658_v42  ;;  %v662_v46 = vsel %vm296_vm2, %v658_v42, %v654_v5  ;;  %v712_v61 = vpop.permute.xlu2 %711  ;;  %v3388_v41 = vld [vmem:[#allocation2 + $0xd4] sm:$0xf] }
 0x201   : > { %v637_v8 = vmul.f32 %v634_v44, %v3761_v14  ;;  %v638_v48 = vmul.f32 %v632_v43, %v3764_v17  ;;  %v665_v9 = vmul.f32 %v660_v45, %v3742_v55  ;;  %v666_v49 = vmul.f32 %v662_v46, %v3745_v56 }
 0x202   : > { %v2743_v39 = vor.u32 %v3389_v22, %v2742_v38  ;;  %v2747_v44 = vor.u32 %v3388_v41, %v2744_v29  ;;  %v3379_v41 = vld [vmem:[#allocation2 + $0x84] sm:$0xf0] }
 0x203   : > { %v640_v50 = vpack.c.bf16 %v638_v48, %v637_v8  ;;  %v668_v51 = vpack.c.bf16 %v666_v49, %v665_v9  ;;  %v3386_v48 = vld [vmem:[#allocation2 + $0xc4] sm:$0xf] }
 0x205   : > { %642 = vst [vmem:[#allocation2 + $0xc8] sm:$0xff] %v640_v50 }
 0x206   : > { %670 = vst [vmem:[#allocation2 + $0xe8] sm:$0xff] %v668_v51  ;;  %v3385_v51 = vld [vmem:[#allocation2 + $0xb4] sm:$0xf0] }
 0x207   : > { %v564_v30 = vpop.permute.xlu1 %563  ;;  %v568_v54 = vpop.permute.xlu0 %567 }
 0x208   : > { %v571_v57 = vsel %vm194_vm6, %v564_v30, %v568_v54  ;;  %v573_v58 = vsel %vm194_vm6, %v568_v54, %v564_v30  ;;  %v718_v46 = vpop.permute.xlu2 %717 }
 0x209   : > { %v575_v59 = vmul.f32 %v573_v58, %v3818_v34  ;;  %v576_v60 = vmul.f32 %v571_v57, %v3821_v40 }
 0x20b   : > { %v579_v62 = vpack.c.bf16 %v576_v60, %v575_v59  ;;  %v2728_v59 = vld [vmem:[#allocation2 + $0xb8] sm:$0xf0] }
 0x20c   : > { %v2736_v45 = vld [vmem:[#allocation2 + $0xc8] sm:$0xf0] }
 0x20d   : > { %581 = vst [vmem:[#allocation2 + $0x90] sm:$0xff] %v579_v62  ;;  %v3391_v1 = vld [vmem:[#allocation2 + $0xe4] sm:$0xf0]  ;;  %v2752_v2 = vld [vmem:[#allocation2 + $0xe8] sm:$0xf0]  ;;  %v2739_v50 = vor.u32 %v3386_v48, %v2736_v45 }
 0x20e   : > { %v2751_v5 = vor.u32 %v3391_v1, %v2750_v63  ;;  %v2755_v6 = vor.u32 %v3390_v0, %v2752_v2  ;;  %v2726_v1 = vld [vmem:[#allocation2 + $0xb0] sm:$0xf]  ;;  %v3359_v45 = vld [vmem:[%s4446_s1 + $0x2c] sm:$0xf] }
 0x20f   : > { %v570_v18 = vpop.permute.xlu1 %569  ;;  %v590_v21 = vpop.permute.xlu0 %589  ;;  %v2727_v2 = vor.u32 %v3385_v51, %v2726_v1  ;;  %v3417_v1 = vld [vmem:[#allocation2 + $0x74] sm:$0xf0] }
 0x210   : > { %v572_v25 = vsel %vm194_vm6, %v566_v47, %v570_v18  ;;  %v574_v26 = vsel %vm194_vm6, %v570_v18, %v566_v47  ;;  %v592_v27 = vsel %vm217_vm5, %v586_v24, %v590_v21  ;;  %v594_v28 = vsel %vm217_vm5, %v590_v21, %v586_v24  ;;  %986 = vmatpush.bf16.msrb.mxu3 %v2751_v5  ;;  %v3387_v24 = vld [vmem:[#allocation2 + $0xc4] sm:$0xf0]  ;;  %v2734_v47 = vld [vmem:[#allocation2 + $0xc0] sm:$0xf]  ;;  %v3382_v18 = vld [vmem:[#allocation2 + $0xa4] sm:$0xf] }
 0x211   : > { %v577_v31 = vmul.f32 %v574_v26, %v3818_v34  ;;  %v578_v32 = vmul.f32 %v572_v25, %v3821_v40  ;;  %v597_v33 = vmul.f32 %v594_v28, %v3799_v15  ;;  %v598_v35 = vmul.f32 %v592_v27, %v3802_v16  ;;  %1028 = vmatpush.bf16.msra.mxu1 %v2755_v6 }
 0x212   : > { %v2735_v8 = vor.u32 %v3387_v24, %v2734_v47  ;;  %v2704_v24 = vld [vmem:[#allocation2 + $0x88] sm:$0xf0] }
 0x213   : > { %v580_v42 = vpack.c.bf16 %v578_v32, %v577_v31  ;;  %v600_v43 = vpack.c.bf16 %v598_v35, %v597_v33 }
 0x214   : > { %987 = vmatpush.bf16.msrb.mxu3 %v2743_v39  ;;  %v2710_v33 = vld [vmem:[#allocation2 + $0x90] sm:$0xf]  ;;  %v3380_v38 = vld [vmem:[#allocation2 + $0x94] sm:$0xf]  ;;  %v2702_v39 = vld [vmem:[#allocation2 + $0x80] sm:$0xf] }
 0x215   : > { %582 = vst [vmem:[#allocation2 + $0x98] sm:$0xff] %v580_v42  ;;  %1029 = vmatpush.bf16.msra.mxu1 %v2747_v44  ;;  %v3378_v44 = vld [vmem:[#allocation2 + $0x84] sm:$0xf] }
 0x216   : > { %602 = vst [vmem:[#allocation2 + $0xa8] sm:$0xff] %v600_v43 }
 0x217   : > { %v716_v9 = vpop.permute.xlu1 %715  ;;  %v714_v49 = vpop.permute.xlu0 %713 }
 0x218   : > { %v719_v30 = vsel %vm365_vm7, %v712_v61, %v716_v9  ;;  %v721_v54 = vsel %vm365_vm7, %v716_v9, %v712_v61  ;;  %v720_v57 = vsel %vm365_vm7, %v714_v49, %v718_v46  ;;  %v722_v58 = vsel %vm365_vm7, %v718_v46, %v714_v49  ;;  %988 = vmatpush.bf16.msrb.mxu3 %v2735_v8  ;;  %v3384_v61 = vld [vmem:[#allocation2 + $0xb4] sm:$0xf]  ;;  %v2628_v8 = vld [vmem:[%s4446_s1 + $0x3c] sm:$0xf0] }
 0x219   : > { %v723_v60 = vmul.f32 %v3839_v3, %v719_v30  ;;  %v724_v62 = vmul.f32 %v3844_v4, %v721_v54  ;;  %v725_v63 = vmul.f32 %v3839_v3, %v720_v57  ;;  %v726_v0 = vmul.f32 %v3844_v4, %v722_v58  ;;  %1030 = vmatpush.bf16.msra.mxu1 %v2739_v50  ;;  %v696_v3 = vpop.permute.xlu2 %695 }
 0x21a   : > { %v2731_v12 = vor.u32 %v3384_v61, %v2728_v59  ;;  %v2703_v49 = vor.u32 %v3379_v41, %v2702_v39  ;;  %v2707_v57 = vor.u32 %v3378_v44, %v2704_v24  ;;  %v2631_v58 = vor.u32 %v3359_v45, %v2628_v8  ;;  %v3429_v39 = vld [vmem:[#allocation2 + $0xd4] sm:$0xf0]  ;;  %v2908_v41 = vld [vmem:[#allocation2 + $0xd0] sm:$0xf]  ;;  %v3427_v45 = vld [vmem:[#allocation2 + $0xc4] sm:$0xf0] }
 0x21b   : > { %v727_v5 = vpack.c.bf16 %v724_v62, %v723_v60  ;;  %v728_v6 = vpack.c.bf16 %v726_v0, %v725_v63  ;;  %v2909_v24 = vor.u32 %v3429_v39, %v2908_v41 }
 0x21c   : > { %989 = vmatpush.bf16.msrb.mxu3 %v2727_v2  ;;  %v3381_v4 = vld [vmem:[#allocation2 + $0x94] sm:$0xf0]  ;;  %v2712_v29 = vld [vmem:[#allocation2 + $0x98] sm:$0xf0] }
 0x21d   : > { %729 = vst [vmem:[#allocation2 + $0x110] sm:$0xff] %v727_v5  ;;  %1031 = vmatpush.bf16.msra.mxu1 %v2731_v12  ;;  %v3383_v21 = vld [vmem:[#allocation2 + $0xa4] sm:$0xf0]  ;;  %v2720_v22 = vld [vmem:[#allocation2 + $0xa8] sm:$0xf0]  ;;  %v2711_v35 = vor.u32 %v3381_v4, %v2710_v33  ;;  %v2715_v43 = vor.u32 %v3380_v38, %v2712_v29 }
 0x21e   : > { %730 = vst [vmem:[#allocation2 + $0x118] sm:$0xff] %v728_v6  ;;  %v2719_v23 = vor.u32 %v3383_v21, %v2718_v13  ;;  %v2723_v25 = vor.u32 %v3382_v18, %v2720_v22  ;;  %v3433_v2 = vld [vmem:[#allocation2 + $0xf4] sm:$0xf0]  ;;  %v2634_v5 = vld [vmem:[%s4446_s1 + $0x30] sm:$0xf] }
 0x21f   : > { %v692_v26 = vpop.permute.xlu0 %691  ;;  %v694_v30 = vpop.permute.xlu1 %693  ;;  %v3361_v6 = vld [vmem:[%s4446_s1 + $0x40] sm:$0xf0]  ;;  %v3431_v29 = vld [vmem:[#allocation2 + $0xe4] sm:$0xf0]  ;;  %v3413_v38 = vld [vmem:[#allocation2 + $0x54] sm:$0xf0] }
 0x220   : > { %v699_v27 = vsel %vm342_vm0, %v692_v26, %v696_v3  ;;  %v701_v28 = vsel %vm342_vm0, %v696_v3, %v692_v26  ;;  %990 = vmatpush.bf16.msrb.mxu3 %v2719_v23  ;;  %v2860_v23 = vld [vmem:[#allocation2 + $0x70] sm:$0xf]  ;;  %v2635_v4 = vor.u32 %v3361_v6, %v2634_v5  ;;  %v3403_v6 = vld [vmem:[#allocation2 + $0x4] sm:$0xf0] }
 0x221   : > { %v703_v31 = vmul.f32 %v699_v27, %v3691_v10  ;;  %v704_v32 = vmul.f32 %v701_v28, %v3694_v11  ;;  %1032 = vmatpush.bf16.msra.mxu1 %v2723_v25  ;;  %v2924_v25 = vld [vmem:[#allocation2 + $0xf0] sm:$0xf]  ;;  %v2861_v3 = vor.u32 %v3417_v1, %v2860_v23  ;;  %v2852_v27 = vld [vmem:[#allocation2 + $0x60] sm:$0xf]  ;;  %v3415_v28 = vld [vmem:[#allocation2 + $0x64] sm:$0xf0] }
 0x222   : > { %v2925_v26 = vor.u32 %v3433_v2, %v2924_v25  ;;  %v3421_v1 = vld [vmem:[#allocation2 + $0x94] sm:$0xf0]  ;;  %v2876_v2 = vld [vmem:[#allocation2 + $0x90] sm:$0xf]  ;;  %v3400_v23 = vld [vmem:[%s4446_s1 + $0x60] sm:$0xf0] }
 0x223   : > { %v707_v42 = vpack.c.bf16 %v704_v32, %v703_v31  ;;  %v2916_v31 = vld [vmem:[#allocation2 + $0xe0] sm:$0xf]  ;;  %v2853_v32 = vor.u32 %v3415_v28, %v2852_v27  ;;  %v2877_v5 = vor.u32 %v3421_v1, %v2876_v2  ;;  %v3414_v28 = vld [vmem:[#allocation2 + $0x64] sm:$0xf] }
 0x224   : > { %991 = vmatpush.bf16.msrb.mxu3 %v2711_v35  ;;  %v2774_v46 = vld [vmem:[#allocation2 + $0x110] sm:$0xf]  ;;  %v3396_v47 = vld [vmem:[#allocation2 + $0x114] sm:$0xf]  ;;  %v2917_v33 = vor.u32 %v3431_v29, %v2916_v31  ;;  %v2854_v29 = vld [vmem:[#allocation2 + $0x68] sm:$0xf0] }
 0x225   : > { %709 = vst [vmem:[#allocation2 + $0x100] sm:$0xff] %v707_v42  ;;  %1033 = vmatpush.bf16.msra.mxu1 %v2715_v43  ;;  %v3397_v48 = vld [vmem:[#allocation2 + $0x114] sm:$0xf0]  ;;  %v2776_v9 = vld [vmem:[#allocation2 + $0x118] sm:$0xf0]  ;;  %v2857_v31 = vor.u32 %v3414_v28, %v2854_v29 }
 0x226   : > { %v2775_v50 = vor.u32 %v3397_v48, %v2774_v46  ;;  %v2779_v51 = vor.u32 %v3396_v47, %v2776_v9  ;;  %v2844_v35 = vld [vmem:[#allocation2 + $0x50] sm:$0xf]  ;;  %v2836_v42 = vld [vmem:[#allocation2 + $0x40] sm:$0xf]  ;;  %v3411_v43 = vld [vmem:[#allocation2 + $0x44] sm:$0xf0] }
 0x227   : > { %v698_v54 = vpop.permute.xlu0 %697  ;;  %v2845_v44 = vor.u32 %v3413_v38, %v2844_v35  ;;  %v2837_v46 = vor.u32 %v3411_v43, %v2836_v42  ;;  %v2900_v47 = vld [vmem:[#allocation2 + $0xc0] sm:$0xf]  ;;  %v3409_v48 = vld [vmem:[#allocation2 + $0x34] sm:$0xf0]  ;;  %v3410_v35 = vld [vmem:[#allocation2 + $0x44] sm:$0xf] }
 0x228   : > { %v700_v59 = vsel %vm342_vm0, %v694_v30, %v698_v54  ;;  %v702_v60 = vsel %vm342_vm0, %v698_v54, %v694_v30  ;;  %992 = vmatpush.bf16.msrb.mxu3 %v2703_v49  ;;  %1005 = vmatpush.bf16.msrb.mxu0 %v2775_v50  ;;  %v2901_v8 = vor.u32 %v3427_v45, %v2900_v47  ;;  %v3425_v9 = vld [vmem:[#allocation2 + $0xb4] sm:$0xf0]  ;;  %v2828_v49 = vld [vmem:[#allocation2 + $0x30] sm:$0xf]  ;;  %v2820_v54 = vld [vmem:[#allocation2 + $0x20] sm:$0xf] }
 0x229   : > { %v705_v62 = vmul.f32 %v700_v59, %v3691_v10  ;;  %v706_v63 = vmul.f32 %v702_v60, %v3694_v11  ;;  %1034 = vmatpush.bf16.msra.mxu1 %v2707_v57  ;;  %v2892_v50 = vld [vmem:[#allocation2 + $0xb0] sm:$0xf]  ;;  %v3407_v57 = vld [vmem:[#allocation2 + $0x24] sm:$0xf0]  ;;  %v2884_v59 = vld [vmem:[#allocation2 + $0xa0] sm:$0xf] }
 0x22a   : > { %v2893_v30 = vor.u32 %v3425_v9, %v2892_v50  ;;  %v2821_v60 = vor.u32 %v3407_v57, %v2820_v54  ;;  %v2838_v38 = vld [vmem:[#allocation2 + $0x48] sm:$0xf0]  ;;  %v2830_v42 = vld [vmem:[#allocation2 + $0x38] sm:$0xf0]  ;;  %v3408_v43 = vld [vmem:[#allocation2 + $0x34] sm:$0xf] }
 0x22b   : > { %v708_v0 = vpack.c.bf16 %v706_v63, %v705_v62  ;;  %993 = vmatmul.bf16.vlgmr.msrb.gmra.mxu3 %v2631_v58  ;;  %v2812_v63 = vld [vmem:[#allocation2 + $0x10] sm:$0xf]  ;;  %v2841_v41 = vor.u32 %v3410_v35, %v2838_v38  ;;  %v2822_v45 = vld [vmem:[#allocation2 + $0x28] sm:$0xf0]  ;;  %v3404_v47 = vld [vmem:[#allocation2 + $0x14] sm:$0xf] }
 0x22c   : > { %1047 = vmatpush.bf16.msra.mxu3 %v2779_v51  ;;  %1035 = vmatmul.bf16.vlgmr.msra.gmra.mxu1 %v2631_v58  ;;  %v2766_v61 = vld [vmem:[#allocation2 + $0x100] sm:$0xf]  ;;  %v3394_v13 = vld [vmem:[#allocation2 + $0x104] sm:$0xf]  ;;  %v2829_v51 = vor.u32 %v3409_v48, %v2828_v49  ;;  %v3423_v58 = vld [vmem:[#allocation2 + $0xa4] sm:$0xf0] }
 0x22d   : > { %710 = vst [vmem:[#allocation2 + $0x108] sm:$0xff] %v708_v0  ;;  %v2885_v62 = vor.u32 %v3423_v58, %v2884_v59  ;;  %v3405_v0 = vld [vmem:[#allocation2 + $0x14] sm:$0xf0]  ;;  %v2806_v9 = vld [vmem:[#allocation2 + $0x8] sm:$0xf0] }
 0x22e   : > { %v3476_v49 = vld [vmem:[#allocation2 + $0x74] sm:$0xf0]  ;;  %v3402_v50 = vld [vmem:[#allocation2 + $0x4] sm:$0xf]  ;;  %v3096_v57 = vld [vmem:[#allocation2 + $0x60] sm:$0xf] }
 0x22f   : > { %v3474_v58 = vld [vmem:[#allocation2 + $0x64] sm:$0xf0] }
 0x230   : > { %v3097_v59 = vor.u32 %v3474_v58, %v3096_v57 }
 0x234   : > { %v3395_v12 = vld [vmem:[#allocation2 + $0x104] sm:$0xf0]  ;;  %v2768_v18 = vld [vmem:[#allocation2 + $0x108] sm:$0xf0] }
 0x235   : > { %v2767_v21 = vor.u32 %v3395_v12, %v2766_v61  ;;  %v2771_v22 = vor.u32 %v3394_v13, %v2768_v18  ;;  %v2813_v61 = vor.u32 %v3405_v0, %v2812_v63  ;;  %v2868_v12 = vld [vmem:[#allocation2 + $0x80] sm:$0xf]  ;;  %v3419_v13 = vld [vmem:[#allocation2 + $0x84] sm:$0xf0]  ;;  %v2862_v18 = vld [vmem:[#allocation2 + $0x78] sm:$0xf0] }
 0x236   : > { %v3080_v63 = vld [vmem:[#allocation2 + $0x40] sm:$0xf]  ;;  %v3470_v0 = vld [vmem:[#allocation2 + $0x44] sm:$0xf0] }
 0x237   : > { %1006 = vmatpush.bf16.msrb.mxu0 %v2767_v21  ;;  %1048 = vmatpush.bf16.msra.mxu3 %v2771_v22  ;;  %v2804_v21 = vld [vmem:[#allocation2] sm:$0xf]  ;;  %v2788_v22 = vld [vmem:[%s4446_s1 + $0x50] sm:$0xf]  ;;  %v3081_v2 = vor.u32 %v3470_v0, %v3080_v63 }
 0x238   : > { %v2805_v25 = vor.u32 %v3403_v6, %v2804_v21  ;;  %v2789_v27 = vor.u32 %v3400_v23, %v2788_v22  ;;  %v3056_v21 = vld [vmem:[#allocation2 + $0x10] sm:$0xf]  ;;  %v3464_v22 = vld [vmem:[#allocation2 + $0x14] sm:$0xf0] }
 0x239   : > { %v3057_v23 = vor.u32 %v3464_v22, %v3056_v21 }
 0x23a   : > { %2780 = vmatmul.msk.bf16.vlgmr.msrb.gmra.mxu0 %vm967_vm9, %v2635_v4 }
 0x23b   : > { %1579 = vmatpush.bf16.msra.mxu0 %v2861_v3  ;;  %1593 = vmatpush.bf16.msrb.mxu3 %v2925_v26  ;;  %v2869_v3 = vor.u32 %v3419_v13, %v2868_v12  ;;  %v3416_v26 = vld [vmem:[#allocation2 + $0x74] sm:$0xf]  ;;  %v3064_v12 = vld [vmem:[#allocation2 + $0x20] sm:$0xf]  ;;  %v3466_v13 = vld [vmem:[#allocation2 + $0x24] sm:$0xf0] }
 0x23c   : > { %2781 = vmatmul.msk.bf16.vlgmr.msra.gmra.mxu3 %vm967_vm9, %v2635_v4  ;;  %v2865_v4 = vor.u32 %v3416_v26, %v2862_v18  ;;  %v3065_v18 = vor.u32 %v3466_v13, %v3064_v12 }
 0x23f   : > { %1580 = vmatpush.bf16.msra.mxu0 %v2853_v32  ;;  %1594 = vmatpush.bf16.msrb.mxu3 %v2917_v33  ;;  %v3412_v32 = vld [vmem:[#allocation2 + $0x54] sm:$0xf]  ;;  %v2846_v33 = vld [vmem:[#allocation2 + $0x58] sm:$0xf0] }
 0x240   : > { %v2849_v39 = vor.u32 %v3412_v32, %v2846_v33 }
 0x243   : > { %1581 = vmatpush.bf16.msra.mxu0 %v2845_v44  ;;  %1595 = vmatpush.bf16.msrb.mxu3 %v2909_v24  ;;  %v2833_v44 = vor.u32 %v3408_v43, %v2830_v42  ;;  %v3406_v24 = vld [vmem:[#allocation2 + $0x24] sm:$0xf] }
 0x247   : > { %1582 = vmatpush.bf16.msra.mxu0 %v2837_v46  ;;  %1596 = vmatpush.bf16.msrb.mxu3 %v2901_v8  ;;  %v2825_v46 = vor.u32 %v3406_v24, %v2822_v45  ;;  %v2814_v8 = vld [vmem:[#allocation2 + $0x18] sm:$0xf0] }
 0x248   : > { %v2817_v48 = vor.u32 %v3404_v47, %v2814_v8 }
 0x24b   : > { %1583 = vmatpush.bf16.msra.mxu0 %v2829_v51  ;;  %1597 = vmatpush.bf16.msrb.mxu3 %v2893_v30  ;;  %v2809_v51 = vor.u32 %v3402_v50, %v2806_v9  ;;  %v3104_v30 = vld [vmem:[#allocation2 + $0x70] sm:$0xf] }
 0x24c   : > { %v3105_v54 = vor.u32 %v3476_v49, %v3104_v30 }
 0x24f   : > { %1584 = vmatpush.bf16.msra.mxu0 %v2821_v60  ;;  %1598 = vmatpush.bf16.msrb.mxu3 %v2885_v62  ;;  %v3088_v60 = vld [vmem:[#allocation2 + $0x50] sm:$0xf]  ;;  %v3472_v62 = vld [vmem:[#allocation2 + $0x54] sm:$0xf0] }
 0x250   : > { %v3089_v1 = vor.u32 %v3472_v62, %v3088_v60 }
 0x253   : > { %1585 = vmatpush.bf16.msra.mxu0 %v2813_v61  ;;  %1599 = vmatpush.bf16.msrb.mxu3 %v2877_v5  ;;  %v3468_v61 = vld [vmem:[#allocation2 + $0x34] sm:$0xf0]  ;;  %v3072_v5 = vld [vmem:[#allocation2 + $0x30] sm:$0xf] }
 0x254   : > { %v3073_v6 = vor.u32 %v3468_v61, %v3072_v5 }
 0x257   : > { %1586 = vmatpush.bf16.msra.mxu0 %v2805_v25  ;;  %1600 = vmatpush.bf16.msrb.mxu3 %v2869_v3  ;;  %v3462_v25 = vld [vmem:[#allocation2 + $0x4] sm:$0xf0]  ;;  %v3048_v3 = vld [vmem:[#allocation2] sm:$0xf] }
 0x258   : > { %v3049_v26 = vor.u32 %v3462_v25, %v3048_v3  ;;  %v4091_v3 = vld [vmem:[%s4447_s2 + $0x10] ss:$0 sm:$0xff] }
 0x25a   : > { %1587 = vmatmul.bf16.vlgmr.msra.gmra.mxu0 %v2789_v27 }
 0x25b   : > { %1635 = vmatpush.bf16.msrb.mxu0 %v2865_v4 }
 0x25f   : > { %1636 = vmatpush.bf16.msrb.mxu0 %v2857_v31 }
 0x263   : > { %1637 = vmatpush.bf16.msrb.mxu0 %v2849_v39 }
 0x267   : > { %1638 = vmatpush.bf16.msrb.mxu0 %v2841_v41 }
 0x26b   : > { %1639 = vmatpush.bf16.msrb.mxu0 %v2833_v44 }
 0x26f   : > { %1640 = vmatpush.bf16.msrb.mxu0 %v2825_v46 }
 0x273   : > { %1641 = vmatpush.bf16.msrb.mxu0 %v2817_v48 }
 0x277   : > { %1642 = vmatpush.bf16.msrb.mxu0 %v2809_v51  ;;  %v980_v4 = vpop.f32.mrf.mxu1 }
 0x27a   : > { %1643 = vmatmul.bf16.vlgmr.msrb.gmra.mxu0 %v2789_v27 }
 0x27b   : > { %2331 = vmatpush.bf16.msra.mxu0 %v3105_v54 }
 0x27d   : > { %v1022_v31 = vpop.f32.mrf.mxu2 }
 0x27f   : > { %2332 = vmatpush.bf16.msra.mxu0 %v3097_v59  ;;  %v982_v27 = vpop.f32.mrf.mxu1 }
 0x283   : > { %2333 = vmatpush.bf16.msra.mxu0 %v3089_v1 }
 0x285   : > { %v1024_v45 = vpop.f32.mrf.mxu2 }
 0x287   : > { %2334 = vmatpush.bf16.msra.mxu0 %v3081_v2 }
 0x28b   : > { %2335 = vmatpush.bf16.msra.mxu0 %v3073_v6 }
 0x28f   : > { %2336 = vmatpush.bf16.msra.mxu0 %v3065_v18 }
 0x293   : > { %2337 = vmatpush.bf16.msra.mxu0 %v3057_v23 }
 0x297   : > { %2338 = vmatpush.bf16.msra.mxu0 %v3049_v26 }
 0x2a9   : > { %v1036_v33 = vpop.f32.mrf.mxu1 }
 0x2aa   : > { %v1037_v39 = vadd.f32 %v1036_v33, %v1022_v31 }
 0x2ae   : > { %v994_v28 = vpop.f32.mrf.mxu3 }
 0x2af   : > { %v995_v29 = vadd.f32 %v994_v28, %v980_v4  ;;  %v4097_v4 = vld [vmem:[%s4447_s2 + $0x18] ss:$0 sm:$0xff] }
 0x2b1   : > { %v1038_v46 = vpop.f32.mrf.mxu1 }
 0x2b2   : > { %v1039_v48 = vadd.f32 %v1038_v46, %v1024_v45 }
 0x2b6   : > { %v996_v32 = vpop.f32.mrf.mxu3 }
 0x2b7   : > { %v1008_v35 = vpop.f32.mrf.mxu0  ;;  %v997_v41 = vadd.f32 %v996_v32, %v982_v27 }
 0x2b8   : > { %v1009_v38 = vadd.f32 %v1008_v35, %v995_v29 }
 0x2ba   : > { %1055 = vst [vmem:[%s3606_s21 + $0x40] sm:$0xff] %v1009_v38  ;;  %1099 = vrot.lane.b32.xlu0 %v1009_v38, %s3568_s26  ;;  %1119 = vrot.lane.b32.xlu2 %v1009_v38, %s3567_s25  ;;  %v1139_v47 = vmul.f32 %v1009_v38, %v3703_v19 }
 0x2bb   : > { %1147 = vrot.lane.b32.xlu1 %v1009_v38, %s3566_s24 }
 0x2bf   : > { %v1050_v42 = vpop.f32.mrf.mxu3  ;;  %v1010_v44 = vpop.f32.mrf.mxu0 }
 0x2c0   : > { %v1051_v43 = vadd.f32 %v1050_v42, %v1037_v39  ;;  %v1011_v24 = vadd.f32 %v1010_v44, %v997_v41 }
 0x2c2   : > { %1056 = vst [vmem:[%s3606_s21 + $0x48] sm:$0xff] %v1051_v43  ;;  %v1140_v8 = vmul.f32 %v1051_v43, %v3706_v20  ;;  %1207 = vrot.lane.b32.xlu0 %v1009_v38, %s3571_s29  ;;  %1059 = vrot.lane.b32.xlu2 %v1009_v38, %s3570_s28  ;;  %v1141_v51 = vmul.f32 %v1011_v24, %v3703_v19 }
 0x2c3   : > { %1057 = vst [vmem:[%s3606_s21 + $0x50] sm:$0xff] %v1011_v24  ;;  %1079 = vrot.lane.b32.xlu1 %v1009_v38, %s3569_s27 }
 0x2c4   : > { %v1143_v9 = vpack.c.bf16 %v1140_v8, %v1139_v47 }
 0x2c6   : > { %1145 = vst [vmem:[#allocation2 + $0x160] sm:$0xff] %v1143_v9 }
 0x2c7   : > { %v1052_v49 = vpop.f32.mrf.mxu3 }
 0x2c8   : > { %v1053_v50 = vadd.f32 %v1052_v49, %v1039_v48 }
 0x2ca   : > { %1058 = vst [vmem:[%s3606_s21 + $0x58] sm:$0xff] %v1053_v50  ;;  %v1142_v30 = vmul.f32 %v1053_v50, %v3706_v20  ;;  %1121 = vrot.lane.b32.xlu0 %v1011_v24, %s3567_s25  ;;  %1149 = vrot.lane.b32.xlu2 %v1011_v24, %s3566_s24 }
 0x2cb   : > { %1101 = vrot.lane.b32.xlu1 %v1011_v24, %s3568_s26 }
 0x2cc   : > { %v1144_v54 = vpack.c.bf16 %v1142_v30, %v1141_v51 }
 0x2ce   : > { %1146 = vst [vmem:[#allocation2 + $0x168] sm:$0xff] %v1144_v54 }
 0x2d2   : > { %1061 = vrot.lane.b32.xlu0 %v1011_v24, %s3570_s28  ;;  %1081 = vrot.lane.b32.xlu2 %v1011_v24, %s3569_s27 }
 0x2d3   : > { %1209 = vrot.lane.b32.xlu1 %v1011_v24, %s3571_s29 }
 0x2da   : > { %1103 = vrot.lane.b32.xlu2 %v1051_v43, %s3568_s26  ;;  %1151 = vrot.lane.b32.xlu0 %v1051_v43, %s3566_s24 }
 0x2db   : > { %1123 = vrot.lane.b32.xlu1 %v1051_v43, %s3567_s25 }
 0x2e2   : > { %1211 = vrot.lane.b32.xlu2 %v1051_v43, %s3571_s29  ;;  %1083 = vrot.lane.b32.xlu0 %v1051_v43, %s3569_s27 }
 0x2e3   : > { %1063 = vrot.lane.b32.xlu1 %v1051_v43, %s3570_s28 }
 0x2ea   : > { %1189 = vrot.lane.b32.xlu2 %v1011_v24, %s3564_s22  ;;  %1105 = vrot.lane.b32.xlu0 %v1053_v50, %s3568_s26 }
 0x2eb   : > { %1153 = vrot.lane.b32.xlu1 %v1053_v50, %s3566_s24 }
 0x2f2   : > { %1125 = vrot.lane.b32.xlu2 %v1053_v50, %s3567_s25  ;;  %1191 = vrot.lane.b32.xlu0 %v1051_v43, %s3564_s22 }
 0x2f3   : > { %1187 = vrot.lane.b32.xlu1 %v1009_v38, %s3564_s22 }
 0x2fa   : > { %1065 = vrot.lane.b32.xlu2 %v1053_v50, %s3570_s28  ;;  %1213 = vrot.lane.b32.xlu0 %v1053_v50, %s3571_s29 }
 0x2fb   : > { %1085 = vrot.lane.b32.xlu1 %v1053_v50, %s3569_s27 }
 0x302   : > { %1167 = vrot.lane.b32.xlu2 %v1009_v38, %s3565_s23  ;;  %1169 = vrot.lane.b32.xlu0 %v1011_v24, %s3565_s23 }
 0x303   : > { %1193 = vrot.lane.b32.xlu1 %v1053_v50, %s3564_s22 }
 0x30a   : > { %1173 = vrot.lane.b32.xlu2 %v1053_v50, %s3565_s23 }
 0x30b   : > { %1171 = vrot.lane.b32.xlu1 %v1051_v43, %s3565_s23 }
 0x314   : > { %v1120_v57 = vpop.permute.xlu2 %1119 }
 0x31c   : > { %v1060_v58 = vpop.permute.xlu2 %1059 }
 0x324   : > { %v4074_v59 = vpop.permute.xlu2 %1149 }
 0x32c   : > { %v1100_v60 = vpop.permute.xlu0 %1099  ;;  %v4076_v62 = vpop.permute.xlu2 %1081 }
 0x32d   : > { %v1148_v63 = vpop.permute.xlu1 %1147 }
 0x334   : > { %v1208_v0 = vpop.permute.xlu0 %1207  ;;  %v1104_v1 = vpop.permute.xlu2 %1103 }
 0x335   : > { %v1080_v2 = vpop.permute.xlu1 %1079  ;;  %v1107_v61 = vsel %vm240_vm4, %v1100_v60, %v1104_v1  ;;  %v1109_v5 = vsel %vm240_vm4, %v1104_v1, %v1100_v60 }
 0x336   : > { %v1111_v6 = vmul.f32 %v1109_v5, %v3780_v52  ;;  %v1112_v12 = vmul.f32 %v1107_v61, %v3783_v53 }
 0x338   : > { %v1115_v13 = vpack.c.bf16 %v1112_v12, %v1111_v6 }
 0x33a   : > { %1117 = vst [vmem:[#allocation2 + $0x140] sm:$0xff] %v1115_v13 }
 0x33c   : > { %v1122_v18 = vpop.permute.xlu0 %1121  ;;  %v1212_v21 = vpop.permute.xlu2 %1211 }
 0x33d   : > { %v1102_v22 = vpop.permute.xlu1 %1101  ;;  %v1215_v23 = vsel %vm365_vm7, %v1208_v0, %v1212_v21  ;;  %v1217_v25 = vsel %vm365_vm7, %v1212_v21, %v1208_v0 }
 0x33e   : > { %v1219_v26 = vmul.f32 %v4091_v3, %v1215_v23  ;;  %v1220_v27 = vmul.f32 %v4097_v4, %v1217_v25 }
 0x340   : > { %v1223_v28 = vpack.c.bf16 %v1220_v27, %v1219_v26 }
 0x342   : > { %1225 = vst [vmem:[#allocation2 + $0x1a0] sm:$0xff] %v1223_v28 }
 0x344   : > { %v1062_v29 = vpop.permute.xlu0 %1061  ;;  %v4100_v31 = vpop.permute.xlu2 %1189 }
 0x345   : > { %v4102_v32 = vpop.permute.xlu1 %1209 }
 0x34c   : > { %v1126_v33 = vpop.permute.xlu2 %1125  ;;  %v1152_v35 = vpop.permute.xlu0 %1151 }
 0x34d   : > { %v1128_v38 = vsel %vm263_vm3, %v1122_v18, %v1126_v33  ;;  %v1130_v39 = vsel %vm263_vm3, %v1126_v33, %v1122_v18  ;;  %v1124_v41 = vpop.permute.xlu1 %1123  ;;  %v1155_v42 = vsel %vm296_vm2, %v1148_v63, %v1152_v35  ;;  %v1157_v43 = vsel %vm296_vm2, %v1152_v35, %v1148_v63 }
 0x34e   : > { %v1133_v44 = vmul.f32 %v1130_v39, %v3761_v14  ;;  %v1134_v24 = vmul.f32 %v1128_v38, %v3764_v17  ;;  %v1127_v45 = vsel %vm263_vm3, %v1120_v57, %v1124_v41  ;;  %v1129_v46 = vsel %vm263_vm3, %v1124_v41, %v1120_v57 }
 0x34f   : > { %v1131_v47 = vmul.f32 %v1129_v46, %v3761_v14  ;;  %v1132_v8 = vmul.f32 %v1127_v45, %v3764_v17  ;;  %v1159_v48 = vmul.f32 %v1155_v42, %v3742_v55  ;;  %v1160_v9 = vmul.f32 %v1157_v43, %v3745_v56 }
 0x350   : > { %v1136_v49 = vpack.c.bf16 %v1134_v24, %v1133_v44  ;;  %v3398_v24 = vld [vmem:[%s4446_s1 + $0x54] sm:$0xf] }
 0x351   : > { %v1135_v50 = vpack.c.bf16 %v1132_v8, %v1131_v47  ;;  %v1163_v51 = vpack.c.bf16 %v1160_v9, %v1159_v48 }
 0x352   : > { %1138 = vst [vmem:[#allocation2 + $0x158] sm:$0xff] %v1136_v49 }
 0x353   : > { %1137 = vst [vmem:[#allocation2 + $0x150] sm:$0xff] %v1135_v50 }
 0x354   : > { %1165 = vst [vmem:[#allocation2 + $0x170] sm:$0xff] %v1163_v51  ;;  %v1066_v30 = vpop.permute.xlu2 %1065  ;;  %v1084_v54 = vpop.permute.xlu0 %1083 }
 0x355   : > { %v1068_v60 = vsel %vm194_vm6, %v1062_v29, %v1066_v30  ;;  %v1070_v57 = vsel %vm194_vm6, %v1066_v30, %v1062_v29  ;;  %v1064_v63 = vpop.permute.xlu1 %1063  ;;  %v1087_v0 = vsel %vm217_vm5, %v1080_v2, %v1084_v54  ;;  %v1089_v1 = vsel %vm217_vm5, %v1084_v54, %v1080_v2 }
 0x356   : > { %v1073_v61 = vmul.f32 %v1070_v57, %v3818_v34  ;;  %v1074_v5 = vmul.f32 %v1068_v60, %v3821_v40  ;;  %v1067_v6 = vsel %vm194_vm6, %v1060_v58, %v1064_v63  ;;  %v1069_v12 = vsel %vm194_vm6, %v1064_v63, %v1060_v58 }
 0x357   : > { %v1071_v13 = vmul.f32 %v1069_v12, %v3818_v34  ;;  %v1072_v18 = vmul.f32 %v1067_v6, %v3821_v40  ;;  %v1091_v21 = vmul.f32 %v1089_v1, %v3799_v15  ;;  %v1092_v23 = vmul.f32 %v1087_v0, %v3802_v16  ;;  %v3447_v1 = vld [vmem:[#allocation2 + $0x164] sm:$0xf0] }
 0x358   : > { %v1076_v25 = vpack.c.bf16 %v1074_v5, %v1073_v61  ;;  %v2982_v61 = vld [vmem:[#allocation2 + $0x168] sm:$0xf0] }
 0x359   : > { %v1075_v2 = vpack.c.bf16 %v1072_v18, %v1071_v13  ;;  %v1095_v26 = vpack.c.bf16 %v1092_v23, %v1091_v21 }
 0x35a   : > { %1078 = vst [vmem:[#allocation2 + $0x128] sm:$0xff] %v1076_v25  ;;  %v2980_v25 = vld [vmem:[#allocation2 + $0x160] sm:$0xf] }
 0x35b   : > { %1077 = vst [vmem:[#allocation2 + $0x120] sm:$0xff] %v1075_v2  ;;  %v2988_v50 = vld [vmem:[#allocation2 + $0x170] sm:$0xf]  ;;  %v3448_v54 = vld [vmem:[#allocation2 + $0x174] sm:$0xf] }
 0x35c   : > { %1097 = vst [vmem:[#allocation2 + $0x130] sm:$0xff] %v1095_v26  ;;  %v1106_v27 = vpop.permute.xlu0 %1105  ;;  %v4169_v51 = vpop.permute.xlu2 %1167  ;;  %v3446_v2 = vld [vmem:[#allocation2 + $0x164] sm:$0xf] }
 0x35d   : > { %v1154_v28 = vpop.permute.xlu1 %1153  ;;  %v1108_v29 = vsel %vm240_vm4, %v1102_v22, %v1106_v27  ;;  %v1110_v58 = vsel %vm240_vm4, %v1106_v27, %v1102_v22 }
 0x35e   : > { %v1156_v33 = vsel %vm296_vm2, %v4074_v59, %v1154_v28  ;;  %v1158_v35 = vsel %vm296_vm2, %v1154_v28, %v4074_v59  ;;  %v1113_v38 = vmul.f32 %v1110_v58, %v3780_v52  ;;  %v1114_v39 = vmul.f32 %v1108_v29, %v3783_v53  ;;  %v2790_v59 = vld [vmem:[%s4446_s1 + $0x64] sm:$0xf0]  ;;  %v3445_v29 = vld [vmem:[#allocation2 + $0x154] sm:$0xf0] }
 0x35f   : > { %v1161_v41 = vmul.f32 %v1156_v33, %v3742_v55  ;;  %v1162_v42 = vmul.f32 %v1158_v35, %v3745_v56  ;;  %v4160_v46 = vor.u32 %v3398_v24, %v2790_v59  ;;  %v2981_v28 = vor.u32 %v3447_v1, %v2980_v25  ;;  %v2972_v33 = vld [vmem:[#allocation2 + $0x150] sm:$0xf]  ;;  %v3444_v35 = vld [vmem:[#allocation2 + $0x154] sm:$0xf] }
 0x360   : > { %v1116_v43 = vpack.c.bf16 %v1114_v39, %v1113_v38  ;;  %v2974_v38 = vld [vmem:[#allocation2 + $0x158] sm:$0xf0] }
 0x361   : > { %v1164_v44 = vpack.c.bf16 %v1162_v42, %v1161_v41  ;;  %1601 = vmatmul.bf16.vlgmr.msrb.gmra.mxu3 %v4160_v46  ;;  %v2977_v41 = vor.u32 %v3444_v35, %v2974_v38  ;;  %v2940_v38 = vld [vmem:[#allocation2 + $0x110] sm:$0xf] }
 0x362   : > { %1118 = vst [vmem:[#allocation2 + $0x148] sm:$0xff] %v1116_v43  ;;  %v2948_v25 = vld [vmem:[#allocation2 + $0x120] sm:$0xf] }
 0x363   : > { %1166 = vst [vmem:[#allocation2 + $0x178] sm:$0xff] %v1164_v44 }
 0x364   : > { %v1192_v22 = vpop.permute.xlu0 %1191  ;;  %v1174_v42 = vpop.permute.xlu2 %1173 }
 0x365   : > { %v1188_v45 = vpop.permute.xlu1 %1187 }
 0x366   : > { %v1195_v47 = vsel %vm342_vm0, %v1188_v45, %v1192_v22  ;;  %v1197_v8 = vsel %vm342_vm0, %v1192_v22, %v1188_v45 }
 0x367   : > { %v1199_v48 = vmul.f32 %v1195_v47, %v3691_v10  ;;  %v1200_v9 = vmul.f32 %v1197_v8, %v3694_v11 }
 0x369   : > { %v1203_v49 = vpack.c.bf16 %v1200_v9, %v1199_v48  ;;  %v3443_v44 = vld [vmem:[#allocation2 + $0x144] sm:$0xf0]  ;;  %v2966_v22 = vld [vmem:[#allocation2 + $0x148] sm:$0xf0] }
 0x36a   : > { %v3449_v30 = vld [vmem:[#allocation2 + $0x174] sm:$0xf0]  ;;  %v2990_v60 = vld [vmem:[#allocation2 + $0x178] sm:$0xf0] }
 0x36b   : > { %1205 = vst [vmem:[#allocation2 + $0x190] sm:$0xff] %v1203_v49  ;;  %v2989_v57 = vor.u32 %v3449_v30, %v2988_v50  ;;  %v2993_v63 = vor.u32 %v3448_v54, %v2990_v60  ;;  %v2964_v49 = vld [vmem:[#allocation2 + $0x140] sm:$0xf]  ;;  %v3442_v50 = vld [vmem:[#allocation2 + $0x144] sm:$0xf] }
 0x36c   : > { %v1214_v0 = vpop.permute.xlu0 %1213  ;;  %v2965_v60 = vor.u32 %v3443_v44, %v2964_v49 }
 0x36d   : > { %v1086_v5 = vpop.permute.xlu1 %1085  ;;  %1607 = vmatpush.bf16.msra.mxu2 %v2989_v57  ;;  %1663 = vmatpush.bf16.msra.mxu3 %v2993_v63  ;;  %v1216_v6 = vsel %vm365_vm7, %v4102_v32, %v1214_v0  ;;  %v1218_v12 = vsel %vm365_vm7, %v1214_v0, %v4102_v32  ;;  %v2985_v32 = vor.u32 %v3446_v2, %v2982_v61  ;;  %v3012_v0 = vld [vmem:[#allocation2 + $0x1a0] sm:$0xf]  ;;  %v2956_v61 = vld [vmem:[#allocation2 + $0x130] sm:$0xf]  ;;  %v3438_v2 = vld [vmem:[#allocation2 + $0x124] sm:$0xf] }
 0x36e   : > { %v1088_v13 = vsel %vm217_vm5, %v4076_v62, %v1086_v5  ;;  %v1090_v18 = vsel %vm217_vm5, %v1086_v5, %v4076_v62  ;;  %v1221_v21 = vmul.f32 %v4091_v3, %v1216_v6  ;;  %v1222_v23 = vmul.f32 %v4097_v4, %v1218_v12 }
 0x36f   : > { %v1093_v26 = vmul.f32 %v1090_v18, %v3799_v15  ;;  %v1094_v27 = vmul.f32 %v1088_v13, %v3802_v16  ;;  %v2973_v62 = vor.u32 %v3445_v29, %v2972_v33  ;;  %v2969_v57 = vor.u32 %v3442_v50, %v2966_v22  ;;  %v3434_v50 = vld [vmem:[#allocation2 + $0x104] sm:$0xf] }
 0x370   : > { %v1224_v58 = vpack.c.bf16 %v1222_v23, %v1221_v21  ;;  %v3439_v23 = vld [vmem:[#allocation2 + $0x124] sm:$0xf0] }
 0x371   : > { %v1096_v39 = vpack.c.bf16 %v1094_v27, %v1093_v26  ;;  %1608 = vmatpush.bf16.msra.mxu2 %v2981_v28  ;;  %1664 = vmatpush.bf16.msra.mxu3 %v2985_v32  ;;  %v2950_v26 = vld [vmem:[#allocation2 + $0x128] sm:$0xf0]  ;;  %v2949_v33 = vor.u32 %v3439_v23, %v2948_v25 }
 0x372   : > { %1226 = vst [vmem:[#allocation2 + $0x1a8] sm:$0xff] %v1224_v58  ;;  %v2953_v35 = vor.u32 %v3438_v2, %v2950_v26  ;;  %v2918_v25 = vld [vmem:[#allocation2 + $0xe8] sm:$0xf0]  ;;  %v3492_v26 = vld [vmem:[#allocation2 + $0xf4] sm:$0xf0] }
 0x373   : > { %1098 = vst [vmem:[#allocation2 + $0x138] sm:$0xff] %v1096_v39  ;;  %v3437_v39 = vld [vmem:[#allocation2 + $0x114] sm:$0xf0] }
 0x374   : > { %v1170_v43 = vpop.permute.xlu0 %1169  ;;  %v2941_v22 = vor.u32 %v3437_v39, %v2940_v38  ;;  %v3490_v38 = vld [vmem:[#allocation2 + $0xe4] sm:$0xf0]  ;;  %v3428_v39 = vld [vmem:[#allocation2 + $0xd4] sm:$0xf] }
 0x375   : > { %v1194_v24 = vpop.permute.xlu1 %1193  ;;  %v1176_v59 = vsel %vm319_vm1, %v1170_v43, %v1174_v42  ;;  %v1178_v45 = vsel %vm319_vm1, %v1174_v42, %v1170_v43  ;;  %1609 = vmatpush.bf16.msra.mxu2 %v2973_v62  ;;  %1665 = vmatpush.bf16.msra.mxu3 %v2977_v41  ;;  %v3436_v41 = vld [vmem:[#allocation2 + $0x114] sm:$0xf]  ;;  %v2942_v42 = vld [vmem:[#allocation2 + $0x118] sm:$0xf0]  ;;  %v3004_v43 = vld [vmem:[#allocation2 + $0x190] sm:$0xf] }
 0x376   : > { %v1196_v47 = vsel %vm342_vm0, %v4100_v31, %v1194_v24  ;;  %v1198_v8 = vsel %vm342_vm0, %v1194_v24, %v4100_v31  ;;  %v1181_v48 = vmul.f32 %v1176_v59, %v3723_v36  ;;  %v1182_v9 = vmul.f32 %v1178_v45, %v3726_v37  ;;  %v3440_v31 = vld [vmem:[#allocation2 + $0x134] sm:$0xf]  ;;  %v2934_v45 = vld [vmem:[#allocation2 + $0x108] sm:$0xf0] }
 0x377   : > { %v1201_v30 = vmul.f32 %v1196_v47, %v3691_v10  ;;  %v1202_v54 = vmul.f32 %v1198_v8, %v3694_v11  ;;  %v2945_v59 = vor.u32 %v3436_v41, %v2942_v42  ;;  %v2796_v8 = vld [vmem:[%s4446_s1 + $0x58] sm:$0xf]  ;;  %v3160_v41 = vld [vmem:[#allocation2 + $0xe0] sm:$0xf] }
 0x378   : > { %v1184_v63 = vpack.c.bf16 %v1182_v9, %v1181_v48  ;;  %v3401_v48 = vld [vmem:[%s4446_s1 + $0x68] sm:$0xf0]  ;;  %v2932_v9 = vld [vmem:[#allocation2 + $0x100] sm:$0xf]  ;;  %v3161_v42 = vor.u32 %v3490_v38, %v3160_v41  ;;  %v3216_v41 = vld [vmem:[#allocation2 + $0x150] sm:$0xf] }
 0x379   : > { %v1204_v1 = vpack.c.bf16 %v1202_v54, %v1201_v30  ;;  %1610 = vmatpush.bf16.msra.mxu2 %v2965_v60  ;;  %1666 = vmatpush.bf16.msra.mxu3 %v2969_v57  ;;  %v3455_v5 = vld [vmem:[#allocation2 + $0x1a4] sm:$0xf0]  ;;  %v3014_v47 = vld [vmem:[#allocation2 + $0x1a8] sm:$0xf0]  ;;  %v3454_v30 = vld [vmem:[#allocation2 + $0x1a4] sm:$0xf]  ;;  %v2937_v54 = vor.u32 %v3434_v50, %v2934_v45  ;;  %v2797_v57 = vor.u32 %v3401_v48, %v2796_v8 }
 0x37a   : > { %1186 = vst [vmem:[#allocation2 + $0x188] sm:$0xff] %v1184_v63  ;;  %v3441_v6 = vld [vmem:[#allocation2 + $0x134] sm:$0xf0]  ;;  %v3013_v12 = vor.u32 %v3455_v5, %v3012_v0  ;;  %v2958_v13 = vld [vmem:[#allocation2 + $0x138] sm:$0xf0]  ;;  %v3017_v60 = vor.u32 %v3454_v30, %v3014_v47 }
 0x37b   : > { %1206 = vst [vmem:[#allocation2 + $0x198] sm:$0xff] %v1204_v1  ;;  %v2957_v18 = vor.u32 %v3441_v6, %v2956_v61  ;;  %v2961_v21 = vor.u32 %v3440_v31, %v2958_v13  ;;  %v2926_v63 = vld [vmem:[#allocation2 + $0xf8] sm:$0xf0]  ;;  %v2798_v61 = vld [vmem:[%s4446_s1 + $0x6c] sm:$0xf0] }
 0x37c   : > { %1626 = vmatpush.bf16.msrb.mxu1 %v3013_v12  ;;  %v3399_v1 = vld [vmem:[%s4446_s1 + $0x5c] sm:$0xf]  ;;  %v3432_v12 = vld [vmem:[#allocation2 + $0xf4] sm:$0xf]  ;;  %v3486_v47 = vld [vmem:[#allocation2 + $0xc4] sm:$0xf0] }
 0x37d   : > { %v1172_v27 = vpop.permute.xlu1 %1171  ;;  %1611 = vmatpush.bf16.msra.mxu2 %v2957_v18  ;;  %1667 = vmatpush.bf16.msra.mxu3 %v2961_v21  ;;  %v3452_v13 = vld [vmem:[#allocation2 + $0x194] sm:$0xf]  ;;  %v2929_v18 = vor.u32 %v3432_v12, %v2926_v63  ;;  %v2801_v23 = vor.u32 %v3399_v1, %v2798_v61  ;;  %v2894_v45 = vld [vmem:[#allocation2 + $0xb8] sm:$0xf0]  ;;  %v2886_v50 = vld [vmem:[#allocation2 + $0xa8] sm:$0xf0] }
 0x37e   : > { %v1175_v28 = vsel %vm319_vm1, %v4169_v51, %v1172_v27  ;;  %v1177_v32 = vsel %vm319_vm1, %v1172_v27, %v4169_v51  ;;  %v3435_v51 = vld [vmem:[#allocation2 + $0x104] sm:$0xf0]  ;;  %v3430_v27 = vld [vmem:[#allocation2 + $0xe4] sm:$0xf]  ;;  %v3424_v8 = vld [vmem:[#allocation2 + $0xb4] sm:$0xf] }
 0x37f   : > { %v1179_v29 = vmul.f32 %v1175_v28, %v3723_v36  ;;  %v1180_v58 = vmul.f32 %v1177_v32, %v3726_v37  ;;  %v2933_v49 = vor.u32 %v3435_v51, %v2932_v9  ;;  %v2921_v32 = vor.u32 %v3430_v27, %v2918_v25  ;;  %v3144_v9 = vld [vmem:[#allocation2 + $0xc0] sm:$0xf]  ;;  %v3484_v30 = vld [vmem:[#allocation2 + $0xb4] sm:$0xf0]  ;;  %v3482_v1 = vld [vmem:[#allocation2 + $0xa4] sm:$0xf0] }
 0x380   : > { %v2897_v48 = vor.u32 %v3424_v8, %v2894_v45  ;;  %v3420_v61 = vld [vmem:[#allocation2 + $0x94] sm:$0xf]  ;;  %v3418_v12 = vld [vmem:[#allocation2 + $0x84] sm:$0xf]  ;;  %v3120_v25 = vld [vmem:[#allocation2 + $0x90] sm:$0xf] }
 0x381   : > { %v1183_v62 = vpack.c.bf16 %v1180_v58, %v1179_v29  ;;  %1612 = vmatpush.bf16.msra.mxu2 %v2949_v33  ;;  %1668 = vmatpush.bf16.msra.mxu3 %v2953_v35  ;;  %v3451_v31 = vld [vmem:[#allocation2 + $0x184] sm:$0xf0]  ;;  %v2998_v28 = vld [vmem:[#allocation2 + $0x188] sm:$0xf0]  ;;  %v3168_v58 = vld [vmem:[#allocation2 + $0xf0] sm:$0xf] }
 0x382   : > { %v3453_v44 = vld [vmem:[#allocation2 + $0x194] sm:$0xf0]  ;;  %v3006_v0 = vld [vmem:[#allocation2 + $0x198] sm:$0xf0]  ;;  %v3169_v33 = vor.u32 %v3492_v26, %v3168_v58  ;;  %v3469_v8 = vld [vmem:[#allocation2 + $0x44] sm:$0xf] }
 0x383   : > { %1185 = vst [vmem:[#allocation2 + $0x180] sm:$0xff] %v1183_v62  ;;  %v3005_v24 = vor.u32 %v3453_v44, %v3004_v43  ;;  %v3009_v21 = vor.u32 %v3452_v13, %v3006_v0  ;;  %v2910_v35 = vld [vmem:[#allocation2 + $0xd8] sm:$0xf0]  ;;  %v2902_v43 = vld [vmem:[#allocation2 + $0xc8] sm:$0xf0] }
 0x384   : > { %v2913_v62 = vor.u32 %v3428_v39, %v2910_v35  ;;  %v3488_v44 = vld [vmem:[#allocation2 + $0xd4] sm:$0xf0]  ;;  %v2878_v0 = vld [vmem:[#allocation2 + $0x98] sm:$0xf0]  ;;  %v2870_v13 = vld [vmem:[#allocation2 + $0x88] sm:$0xf0] }
 0x385   : > { %1613 = vmatpush.bf16.msra.mxu2 %v2941_v22  ;;  %1627 = vmatpush.bf16.msrb.mxu1 %v3005_v24  ;;  %v3426_v22 = vld [vmem:[#allocation2 + $0xc4] sm:$0xf]  ;;  %v3106_v58 = vld [vmem:[#allocation2 + $0x78] sm:$0xf0]  ;;  %v3475_v39 = vld [vmem:[#allocation2 + $0x74] sm:$0xf] }
 0x386   : > { %1669 = vmatpush.bf16.msra.mxu3 %v2945_v59  ;;  %v2905_v24 = vor.u32 %v3426_v22, %v2902_v43  ;;  %v3152_v59 = vld [vmem:[#allocation2 + $0xd0] sm:$0xf]  ;;  %v3473_v43 = vld [vmem:[#allocation2 + $0x64] sm:$0xf]  ;;  %v3090_v45 = vld [vmem:[#allocation2 + $0x58] sm:$0xf0] }
 0x387   : > { %v3153_v51 = vor.u32 %v3488_v44, %v3152_v59  ;;  %v3098_v44 = vld [vmem:[#allocation2 + $0x68] sm:$0xf0]  ;;  %v3502_v59 = vld [vmem:[#allocation2 + $0x144] sm:$0xf0] }
 0x389   : > { %1614 = vmatpush.bf16.msra.mxu2 %v2933_v49  ;;  %v3145_v49 = vor.u32 %v3486_v47, %v3144_v9  ;;  %v3208_v47 = vld [vmem:[#allocation2 + $0x140] sm:$0xf] }
 0x38a   : > { %1670 = vmatpush.bf16.msra.mxu3 %v2937_v54  ;;  %v2996_v5 = vld [vmem:[#allocation2 + $0x180] sm:$0xf]  ;;  %v3450_v2 = vld [vmem:[#allocation2 + $0x184] sm:$0xf] }
 0x38b   : > { %v2997_v6 = vor.u32 %v3451_v31, %v2996_v5  ;;  %v3001_v29 = vor.u32 %v3450_v2, %v2998_v28  ;;  %v3422_v54 = vld [vmem:[#allocation2 + $0xa4] sm:$0xf]  ;;  %v2881_v5 = vor.u32 %v3420_v61, %v2878_v0  ;;  %v3128_v31 = vld [vmem:[#allocation2 + $0xa0] sm:$0xf]  ;;  %v3232_v2 = vld [vmem:[#allocation2 + $0x170] sm:$0xf] }
 0x38c   : > { %1615 = vmatmul.bf16.vlgmr.msra.gmra.mxu2 %v2797_v57  ;;  %v3112_v28 = vld [vmem:[#allocation2 + $0x80] sm:$0xf] }
 0x38d   : > { %1682 = vmatpush.bf16.msrb.mxu2 %v3017_v60  ;;  %1628 = vmatpush.bf16.msrb.mxu1 %v2997_v6  ;;  %v2889_v60 = vor.u32 %v3422_v54, %v2886_v50  ;;  %v3129_v6 = vor.u32 %v3482_v1, %v3128_v31  ;;  %v3200_v50 = vld [vmem:[#allocation2 + $0x130] sm:$0xf]  ;;  %v3467_v1 = vld [vmem:[#allocation2 + $0x34] sm:$0xf]  ;;  %v3496_v31 = vld [vmem:[#allocation2 + $0x114] sm:$0xf0] }
 0x38e   : > { %1671 = vmatmul.bf16.vlgmr.msra.gmra.mxu3 %v2797_v57  ;;  %v3136_v57 = vld [vmem:[#allocation2 + $0xb0] sm:$0xf] }
 0x38f   : > { %v3137_v63 = vor.u32 %v3484_v30, %v3136_v57  ;;  %v3498_v57 = vld [vmem:[#allocation2 + $0x124] sm:$0xf0] }
 0x390   : > { %3018 = vmatmul.msk.bf16.vlgmr.msrb.gmra.mxu1 %vm1575_vm10, %v2801_v23 }
 0x391   : > { %1649 = vmatpush.bf16.msra.mxu1 %v2929_v18  ;;  %1683 = vmatpush.bf16.msrb.mxu2 %v3009_v21  ;;  %v3480_v18 = vld [vmem:[#allocation2 + $0x94] sm:$0xf0] }
 0x392   : > { %v3508_v21 = vld [vmem:[#allocation2 + $0x174] sm:$0xf0]  ;;  %v3121_v26 = vor.u32 %v3480_v18, %v3120_v25  ;;  %v3058_v25 = vld [vmem:[#allocation2 + $0x18] sm:$0xf0] }
 0x393   : > { %v3233_v27 = vor.u32 %v3508_v21, %v3232_v2  ;;  %v3494_v21 = vld [vmem:[#allocation2 + $0x104] sm:$0xf0]  ;;  %v3170_v2 = vld [vmem:[#allocation2 + $0xf8] sm:$0xf0] }
 0x395   : > { %1650 = vmatpush.bf16.msra.mxu1 %v2921_v32  ;;  %1684 = vmatpush.bf16.msrb.mxu2 %v3001_v29  ;;  %v3478_v32 = vld [vmem:[#allocation2 + $0x84] sm:$0xf0] }
 0x396   : > { %v3506_v29 = vld [vmem:[#allocation2 + $0x164] sm:$0xf0]  ;;  %v3113_v35 = vor.u32 %v3478_v32, %v3112_v28  ;;  %v3491_v28 = vld [vmem:[#allocation2 + $0xf4] sm:$0xf] }
 0x399   : > { %2345 = vmatpush.bf16.msra.mxu2 %v3169_v33  ;;  %1651 = vmatpush.bf16.msra.mxu1 %v2913_v62  ;;  %v3224_v33 = vld [vmem:[#allocation2 + $0x160] sm:$0xf]  ;;  %v3109_v62 = vor.u32 %v3475_v39, %v3106_v58  ;;  %v3050_v58 = vld [vmem:[#allocation2 + $0x8] sm:$0xf0] }
 0x39a   : > { %v3225_v38 = vor.u32 %v3506_v29, %v3224_v33  ;;  %v3173_v29 = vor.u32 %v3491_v28, %v3170_v2  ;;  %v3162_v33 = vld [vmem:[#allocation2 + $0xe8] sm:$0xf0] }
 0x39c   : > { %3019 = vmatmul.msk.bf16.vlgmr.msrb.gmra.mxu2 %vm1575_vm10, %v2801_v23  ;;  %v2873_v23 = vor.u32 %v3418_v12, %v2870_v13  ;;  %v3066_v12 = vld [vmem:[#allocation2 + $0x28] sm:$0xf0] }
 0x39d   : > { %2346 = vmatpush.bf16.msra.mxu2 %v3161_v42  ;;  %1652 = vmatpush.bf16.msra.mxu1 %v2905_v24  ;;  %v3504_v42 = vld [vmem:[#allocation2 + $0x154] sm:$0xf0]  ;;  %v3101_v24 = vor.u32 %v3473_v43, %v3098_v44  ;;  %v3146_v44 = vld [vmem:[#allocation2 + $0xc8] sm:$0xf0] }
 0x39e   : > { %v3217_v22 = vor.u32 %v3504_v42, %v3216_v41  ;;  %v3154_v41 = vld [vmem:[#allocation2 + $0xd8] sm:$0xf0]  ;;  %v3487_v42 = vld [vmem:[#allocation2 + $0xd4] sm:$0xf] }
 0x39f   : > { %v3157_v43 = vor.u32 %v3487_v42, %v3154_v41 }
 0x3a1   : > { %2347 = vmatpush.bf16.msra.mxu2 %v3153_v51  ;;  %1653 = vmatpush.bf16.msra.mxu1 %v2897_v48  ;;  %v3471_v51 = vld [vmem:[#allocation2 + $0x54] sm:$0xf]  ;;  %v3082_v48 = vld [vmem:[#allocation2 + $0x48] sm:$0xf0] }
 0x3a2   : > { %v3093_v9 = vor.u32 %v3471_v51, %v3090_v45  ;;  %v3085_v30 = vor.u32 %v3469_v8, %v3082_v48  ;;  %v3483_v51 = vld [vmem:[#allocation2 + $0xb4] sm:$0xf]  ;;  %v3122_v48 = vld [vmem:[#allocation2 + $0x98] sm:$0xf0] }
 0x3a5   : > { %2348 = vmatpush.bf16.msra.mxu2 %v3145_v49  ;;  %1654 = vmatpush.bf16.msra.mxu1 %v2889_v60  ;;  %v3500_v49 = vld [vmem:[#allocation2 + $0x134] sm:$0xf0]  ;;  %v3192_v60 = vld [vmem:[#allocation2 + $0x120] sm:$0xf] }
 0x3a6   : > { %v3201_v54 = vor.u32 %v3500_v49, %v3200_v50  ;;  %v3193_v0 = vor.u32 %v3498_v57, %v3192_v60  ;;  %v3477_v50 = vld [vmem:[#allocation2 + $0x84] sm:$0xf]  ;;  %v1588_v60 = vpop.f32.mrf.mxu0 }
 0x3a9   : > { %2349 = vmatpush.bf16.msra.mxu2 %v3137_v63  ;;  %1655 = vmatpush.bf16.msra.mxu1 %v2881_v5  ;;  %v3074_v63 = vld [vmem:[#allocation2 + $0x38] sm:$0xf0]  ;;  %v3184_v5 = vld [vmem:[#allocation2 + $0x110] sm:$0xf] }
 0x3aa   : > { %v3077_v61 = vor.u32 %v3467_v1, %v3074_v63  ;;  %v3185_v13 = vor.u32 %v3496_v31, %v3184_v5 }
 0x3ad   : > { %2350 = vmatpush.bf16.msra.mxu2 %v3129_v6  ;;  %1656 = vmatpush.bf16.msra.mxu1 %v2873_v23  ;;  %v3465_v6 = vld [vmem:[#allocation2 + $0x24] sm:$0xf]  ;;  %v3463_v23 = vld [vmem:[#allocation2 + $0x14] sm:$0xf] }
 0x3ae   : > { %v3069_v18 = vor.u32 %v3465_v6, %v3066_v12  ;;  %v3061_v32 = vor.u32 %v3463_v23, %v3058_v25  ;;  %v1590_v31 = vpop.f32.mrf.mxu0 }
 0x3b0   : > { %1657 = vmatmul.bf16.vlgmr.msra.gmra.mxu1 %v4160_v46  ;;  %v3209_v46 = vor.u32 %v3502_v59, %v3208_v47  ;;  %v3138_v59 = vld [vmem:[#allocation2 + $0xb8] sm:$0xf0]  ;;  %v3130_v47 = vld [vmem:[#allocation2 + $0xa8] sm:$0xf0] }
 0x3b1   : > { %2351 = vmatpush.bf16.msra.mxu2 %v3121_v26  ;;  %2359 = vmatpush.bf16.msrb.mxu1 %v3233_v27  ;;  %v3176_v26 = vld [vmem:[#allocation2 + $0x100] sm:$0xf]  ;;  %v3141_v45 = vor.u32 %v3483_v51, %v3138_v59 }
 0x3b2   : > { %v3177_v27 = vor.u32 %v3494_v21, %v3176_v26 }
 0x3b5   : > { %2352 = vmatpush.bf16.msra.mxu2 %v3113_v35  ;;  %2360 = vmatpush.bf16.msrb.mxu1 %v3225_v38  ;;  %v3461_v35 = vld [vmem:[#allocation2 + $0x4] sm:$0xf] }
 0x3b6   : > { %v3489_v38 = vld [vmem:[#allocation2 + $0xe4] sm:$0xf]  ;;  %v3053_v39 = vor.u32 %v3461_v35, %v3050_v58  ;;  %v1644_v25 = vpop.f32.mrf.mxu0 }
 0x3b9   : > { %2401 = vmatpush.bf16.msrb.mxu2 %v3109_v62  ;;  %2361 = vmatpush.bf16.msrb.mxu1 %v3217_v22  ;;  %v3165_v62 = vor.u32 %v3489_v38, %v3162_v33  ;;  %v3485_v22 = vld [vmem:[#allocation2 + $0xc4] sm:$0xf] }
 0x3bd   : > { %2402 = vmatpush.bf16.msrb.mxu2 %v3101_v24  ;;  %2362 = vmatpush.bf16.msrb.mxu1 %v3209_v46  ;;  %v3149_v24 = vor.u32 %v3485_v22, %v3146_v44  ;;  %v3481_v46 = vld [vmem:[#allocation2 + $0xa4] sm:$0xf] }
 0x3be   : > { %v3133_v8 = vor.u32 %v3481_v46, %v3130_v47  ;;  %v1646_v35 = vpop.f32.mrf.mxu0 }
 0x3c1   : > { %2403 = vmatpush.bf16.msrb.mxu2 %v3093_v9  ;;  %2363 = vmatpush.bf16.msrb.mxu1 %v3201_v54  ;;  %v3479_v9 = vld [vmem:[#allocation2 + $0x94] sm:$0xf] }
 0x3c2   : > { %v3125_v49 = vor.u32 %v3479_v9, %v3122_v48 }
 0x3c5   : > { %2404 = vmatpush.bf16.msrb.mxu2 %v3085_v30  ;;  %2364 = vmatpush.bf16.msrb.mxu1 %v3193_v0  ;;  %v3114_v30 = vld [vmem:[#allocation2 + $0x88] sm:$0xf0] }
 0x3c6   : > { %v3117_v54 = vor.u32 %v3477_v50, %v3114_v30 }
 0x3c9   : > { %2405 = vmatpush.bf16.msrb.mxu2 %v3077_v61  ;;  %2365 = vmatpush.bf16.msrb.mxu1 %v3185_v13 }
 0x3cd   : > { %2406 = vmatpush.bf16.msrb.mxu2 %v3069_v18  ;;  %2366 = vmatpush.bf16.msrb.mxu1 %v3177_v27 }
 0x3d1   : > { %2407 = vmatpush.bf16.msrb.mxu2 %v3061_v32  ;;  %2415 = vmatpush.bf16.msra.mxu1 %v3173_v29 }
 0x3d5   : > { %2408 = vmatpush.bf16.msrb.mxu2 %v3053_v39  ;;  %2416 = vmatpush.bf16.msra.mxu1 %v3165_v62 }
 0x3d9   : > { %2417 = vmatpush.bf16.msra.mxu1 %v3157_v43 }
 0x3dd   : > { %2418 = vmatpush.bf16.msra.mxu1 %v3149_v24 }
 0x3e1   : > { %2419 = vmatpush.bf16.msra.mxu1 %v3141_v45 }
 0x3e4   : > { %v1602_v57 = vpop.f32.mrf.mxu3 }
 0x3e5   : > { %2420 = vmatpush.bf16.msra.mxu1 %v3133_v8  ;;  %v1603_v63 = vadd.f32 %v1602_v57, %v1588_v60 }
 0x3e9   : > { %2421 = vmatpush.bf16.msra.mxu1 %v3125_v49 }
 0x3ec   : > { %v1604_v6 = vpop.f32.mrf.mxu3 }
 0x3ed   : > { %2422 = vmatpush.bf16.msra.mxu1 %v3117_v54  ;;  %v1605_v12 = vadd.f32 %v1604_v6, %v1590_v31 }
 0x40d   : > { %v1630_v0 = vpop.f32.mrf.mxu1 }
 0x40f   : > { %v1616_v1 = vpop.f32.mrf.mxu2 }
 0x410   : > { %v1617_v61 = vadd.f32 %v1616_v1, %v1603_v63 }
 0x411   : > { %v1672_v2 = vpop.f32.mrf.mxu3 }
 0x412   : > { %v4224_v5 = vadd.f32 %v1630_v0, %v1617_v61 }
 0x414   : > { %1691 = vst [vmem:[%s3606_s21 + $0x60] sm:$0xff] %v4224_v5  ;;  %1715 = vrot.lane.b32.xlu2 %v4224_v5, %s3569_s27  ;;  %1735 = vrot.lane.b32.xlu1 %v4224_v5, %s3568_s26  ;;  %v1775_v58 = vmul.f32 %v4224_v5, %v3703_v19 }
 0x415   : > { %1755 = vrot.lane.b32.xlu0 %v4224_v5, %s3567_s25  ;;  %v1632_v21 = vpop.f32.mrf.mxu1 }
 0x417   : > { %v1618_v13 = vpop.f32.mrf.mxu2 }
 0x418   : > { %v1619_v18 = vadd.f32 %v1618_v13, %v1605_v12 }
 0x419   : > { %v1674_v41 = vpop.f32.mrf.mxu3 }
 0x41a   : > { %v1633_v23 = vadd.f32 %v1632_v21, %v1619_v18 }
 0x41c   : > { %1693 = vst [vmem:[%s3606_s21 + $0x70] sm:$0xff] %v1633_v23  ;;  %1823 = vrot.lane.b32.xlu2 %v4224_v5, %s3564_s22  ;;  %1843 = vrot.lane.b32.xlu1 %v4224_v5, %s3571_s29  ;;  %v1777_v22 = vmul.f32 %v1633_v23, %v3703_v19 }
 0x41d   : > { %1695 = vrot.lane.b32.xlu0 %v4224_v5, %s3570_s28 }
 0x41f   : > { %v1686_v28 = vpop.f32.mrf.mxu2 }
 0x424   : > { %1737 = vrot.lane.b32.xlu2 %v1633_v23, %s3568_s26  ;;  %1757 = vrot.lane.b32.xlu1 %v1633_v23, %s3567_s25 }
 0x425   : > { %1717 = vrot.lane.b32.xlu0 %v1633_v23, %s3569_s27 }
 0x427   : > { %v1688_v43 = vpop.f32.mrf.mxu2 }
 0x42c   : > { %1845 = vrot.lane.b32.xlu2 %v1633_v23, %s3571_s29  ;;  %1697 = vrot.lane.b32.xlu1 %v1633_v23, %s3570_s28 }
 0x42d   : > { %v1658_v26 = vpop.f32.mrf.mxu1  ;;  %1825 = vrot.lane.b32.xlu0 %v1633_v23, %s3564_s22 }
 0x42e   : > { %v1659_v27 = vadd.f32 %v1658_v26, %v1644_v25 }
 0x430   : > { %v1673_v32 = vadd.f32 %v1672_v2, %v1659_v27 }
 0x432   : > { %v1687_v29 = vadd.f32 %v1686_v28, %v1673_v32 }
 0x434   : > { %1692 = vst [vmem:[%s3606_s21 + $0x68] sm:$0xff] %v1687_v29  ;;  %v1776_v33 = vmul.f32 %v1687_v29, %v3706_v20  ;;  %1719 = vrot.lane.b32.xlu1 %v1687_v29, %s3569_s27  ;;  %1759 = vrot.lane.b32.xlu2 %v1687_v29, %s3567_s25 }
 0x435   : > { %v1660_v38 = vpop.f32.mrf.mxu1  ;;  %1739 = vrot.lane.b32.xlu0 %v1687_v29, %s3568_s26 }
 0x436   : > { %v1661_v39 = vadd.f32 %v1660_v38, %v1646_v35  ;;  %v1779_v62 = vpack.c.bf16 %v1776_v33, %v1775_v58 }
 0x438   : > { %v1675_v42 = vadd.f32 %v1674_v41, %v1661_v39  ;;  %1781 = vst [vmem:[#allocation2 + $0x1f0] sm:$0xff] %v1779_v62 }
 0x43a   : > { %v1689_v44 = vadd.f32 %v1688_v43, %v1675_v42 }
 0x43c   : > { %1694 = vst [vmem:[%s3606_s21 + $0x78] sm:$0xff] %v1689_v44  ;;  %v1778_v24 = vmul.f32 %v1689_v44, %v3706_v20  ;;  %1827 = vrot.lane.b32.xlu1 %v1687_v29, %s3564_s22  ;;  %1699 = vrot.lane.b32.xlu2 %v1687_v29, %s3570_s28 }
 0x43d   : > { %1847 = vrot.lane.b32.xlu0 %v1687_v29, %s3571_s29 }
 0x43e   : > { %v1780_v59 = vpack.c.bf16 %v1778_v24, %v1777_v22 }
 0x43f   : > { %v3296_v51 = vld [vmem:[#allocation2 + $0x1f0] sm:$0xf] }
 0x440   : > { %1782 = vst [vmem:[#allocation2 + $0x1f8] sm:$0xff] %v1780_v59 }
 0x444   : > { %1741 = vrot.lane.b32.xlu1 %v1689_v44, %s3568_s26  ;;  %1721 = vrot.lane.b32.xlu2 %v1689_v44, %s3569_s27 }
 0x445   : > { %1761 = vrot.lane.b32.xlu0 %v1689_v44, %s3567_s25 }
 0x447   : > { %v3524_v45 = vld [vmem:[#allocation2 + $0x1f4] sm:$0xf0] }
 0x448   : > { %v3297_v47 = vor.u32 %v3524_v45, %v3296_v51 }
 0x44a   : > { %2373 = vmatpush.bf16.msrb.mxu3 %v3297_v47 }
 0x44c   : > { %1805 = vrot.lane.b32.xlu1 %v1633_v23, %s3565_s23  ;;  %1807 = vrot.lane.b32.xlu2 %v1687_v29, %s3565_s23 }
 0x44d   : > { %1701 = vrot.lane.b32.xlu0 %v1689_v44, %s3570_s28 }
 0x454   : > { %1849 = vrot.lane.b32.xlu1 %v1689_v44, %s3571_s29  ;;  %1829 = vrot.lane.b32.xlu2 %v1689_v44, %s3564_s22 }
 0x455   : > { %1803 = vrot.lane.b32.xlu0 %v4224_v5, %s3565_s23 }
 0x45c   : > { %1783 = vrot.lane.b32.xlu1 %v4224_v5, %s3566_s24  ;;  %1785 = vrot.lane.b32.xlu2 %v1633_v23, %s3566_s24 }
 0x45d   : > { %1809 = vrot.lane.b32.xlu0 %v1689_v44, %s3565_s23 }
 0x464   : > { %1789 = vrot.lane.b32.xlu1 %v1689_v44, %s3566_s24 }
 0x465   : > { %1787 = vrot.lane.b32.xlu0 %v1687_v29, %s3566_s24 }
 0x46e   : > { %v1716_v19 = vpop.permute.xlu2 %1715 }
 0x476   : > { %v1824_v20 = vpop.permute.xlu2 %1823 }
 0x47e   : > { %v4276_v46 = vpop.permute.xlu2 %1737 }
 0x486   : > { %v4278_v8 = vpop.permute.xlu2 %1845  ;;  %v1736_v48 = vpop.permute.xlu1 %1735 }
 0x487   : > { %v1756_v9 = vpop.permute.xlu0 %1755 }
 0x48e   : > { %v1844_v49 = vpop.permute.xlu1 %1843  ;;  %v1760_v50 = vpop.permute.xlu2 %1759 }
 0x48f   : > { %v1696_v30 = vpop.permute.xlu0 %1695  ;;  %v1763_v54 = vsel %vm263_vm3, %v1756_v9, %v1760_v50  ;;  %v1765_v60 = vsel %vm263_vm3, %v1760_v50, %v1756_v9 }
 0x490   : > { %v1767_v57 = vmul.f32 %v1765_v60, %v3761_v14  ;;  %v1768_v63 = vmul.f32 %v1763_v54, %v3764_v17 }
 0x492   : > { %v1771_v0 = vpack.c.bf16 %v1768_v63, %v1767_v57 }
 0x494   : > { %1773 = vst [vmem:[#allocation2 + $0x1e0] sm:$0xff] %v1771_v0 }
 0x496   : > { %v4286_v1 = vpop.permute.xlu1 %1757  ;;  %v1700_v61 = vpop.permute.xlu2 %1699 }
 0x497   : > { %v1718_v5 = vpop.permute.xlu0 %1717  ;;  %v1703_v31 = vsel %vm194_vm6, %v1696_v30, %v1700_v61  ;;  %v1705_v6 = vsel %vm194_vm6, %v1700_v61, %v1696_v30 }
 0x498   : > { %v1707_v12 = vmul.f32 %v1705_v6, %v3818_v34  ;;  %v1708_v13 = vmul.f32 %v1703_v31, %v3821_v40 }
 0x49a   : > { %v1711_v18 = vpack.c.bf16 %v1708_v13, %v1707_v12 }
 0x49c   : > { %1713 = vst [vmem:[#allocation2 + $0x1b0] sm:$0xff] %v1711_v18 }
 0x49e   : > { %v4294_v21 = vpop.permute.xlu1 %1697  ;;  %v1722_v23 = vpop.permute.xlu2 %1721 }
 0x49f   : > { %v1826_v25 = vpop.permute.xlu0 %1825  ;;  %v1724_v2 = vsel %vm217_vm5, %v1718_v5, %v1722_v23  ;;  %v1726_v26 = vsel %vm217_vm5, %v1722_v23, %v1718_v5  ;;  %v3456_v5 = vld [vmem:[%s4446_s1 + $0x7c] sm:$0xf] }
 0x4a0   : > { %v1729_v27 = vmul.f32 %v1726_v26, %v3799_v15  ;;  %v1730_v28 = vmul.f32 %v1724_v2, %v3802_v16 }
 0x4a2   : > { %v1732_v32 = vpack.c.bf16 %v1730_v28, %v1729_v27  ;;  %v3036_v28 = vld [vmem:[%s4446_s1 + $0x80] sm:$0xf] }
 0x4a4   : > { %1734 = vst [vmem:[#allocation2 + $0x1c8] sm:$0xff] %v1732_v32  ;;  %v3459_v32 = vld [vmem:[%s4446_s1 + $0x90] sm:$0xf0] }
 0x4a6   : > { %v1720_v29 = vpop.permute.xlu1 %1719  ;;  %v4302_v58 = vpop.permute.xlu2 %1807 }
 0x4a7   : > { %v1723_v33 = vsel %vm217_vm5, %v1716_v19, %v1720_v29  ;;  %v1725_v35 = vsel %vm217_vm5, %v1720_v29, %v1716_v19  ;;  %v1740_v38 = vpop.permute.xlu0 %1739 }
 0x4a8   : > { %v1727_v39 = vmul.f32 %v1725_v35, %v3799_v15  ;;  %v1728_v62 = vmul.f32 %v1723_v33, %v3802_v16  ;;  %v1743_v41 = vsel %vm240_vm4, %v1736_v48, %v1740_v38  ;;  %v1745_v42 = vsel %vm240_vm4, %v1740_v38, %v1736_v48 }
 0x4a9   : > { %v1747_v43 = vmul.f32 %v1745_v42, %v3780_v52  ;;  %v1748_v44 = vmul.f32 %v1743_v41, %v3783_v53  ;;  %v4379_v35 = vor.u32 %v3459_v32, %v3036_v28 }
 0x4aa   : > { %v1731_v22 = vpack.c.bf16 %v1728_v62, %v1727_v39  ;;  %v3288_v39 = vld [vmem:[#allocation2 + $0x1e0] sm:$0xf] }
 0x4ab   : > { %v1751_v24 = vpack.c.bf16 %v1748_v44, %v1747_v43  ;;  %2367 = vmatmul.bf16.vlgmr.msrb.gmra.mxu1 %v4379_v35  ;;  %v3554_v44 = vld [vmem:[%s4447_s2 + $0x10] ss:$0 sm:$0xff] }
 0x4ac   : > { %1733 = vst [vmem:[#allocation2 + $0x1c0] sm:$0xff] %v1731_v22 }
 0x4ad   : > { %1753 = vst [vmem:[#allocation2 + $0x1d0] sm:$0xff] %v1751_v24  ;;  %v3555_v24 = vld [vmem:[%s4447_s2 + $0x18] ss:$0 sm:$0xff] }
 0x4ae   : > { %v1828_v59 = vpop.permute.xlu1 %1827  ;;  %v1830_v51 = vpop.permute.xlu2 %1829 }
 0x4af   : > { %v1831_v15 = vsel %vm342_vm0, %v1824_v20, %v1828_v59  ;;  %v1833_v16 = vsel %vm342_vm0, %v1828_v59, %v1824_v20  ;;  %v1848_v45 = vpop.permute.xlu0 %1847  ;;  %v1832_v47 = vsel %vm342_vm0, %v1826_v25, %v1830_v51  ;;  %v1834_v19 = vsel %vm342_vm0, %v1830_v51, %v1826_v25 }
 0x4b0   : > { %v1835_v48 = vmul.f32 %v1831_v15, %v3691_v10  ;;  %v1836_v9 = vmul.f32 %v1833_v16, %v3694_v11  ;;  %v1851_v50 = vsel %vm365_vm7, %v1844_v49, %v1848_v45  ;;  %v1853_v30 = vsel %vm365_vm7, %v1848_v45, %v1844_v49  ;;  %v3030_v49 = vld [vmem:[%s4446_s1 + $0x8c] sm:$0xf0] }
 0x4b1   : > { %v1855_v54 = vmul.f32 %v4091_v3, %v1851_v50  ;;  %v1856_v20 = vmul.f32 %v4097_v4, %v1853_v30  ;;  %v1837_v60 = vmul.f32 %v1832_v47, %v3691_v10  ;;  %v1838_v57 = vmul.f32 %v1834_v19, %v3694_v11  ;;  %v3518_v50 = vld [vmem:[#allocation2 + $0x1c4] sm:$0xf0] }
 0x4b2   : > { %v1839_v63 = vpack.c.bf16 %v1836_v9, %v1835_v48  ;;  %v4340_v4 = vor.u32 %v3456_v5, %v3030_v49 }
 0x4b3   : > { %v1859_v0 = vpack.c.bf16 %v1856_v20, %v1855_v54  ;;  %v1840_v61 = vpack.c.bf16 %v1838_v57, %v1837_v60  ;;  %v3272_v48 = vld [vmem:[#allocation2 + $0x1c0] sm:$0xf] }
 0x4b4   : > { %1841 = vst [vmem:[#allocation2 + $0x220] sm:$0xff] %v1839_v63  ;;  %2353 = vmatmul.bf16.vlgmr.msra.gmra.mxu2 %v4340_v4  ;;  %v3280_v15 = vld [vmem:[#allocation2 + $0x1d0] sm:$0xf]  ;;  %v3273_v30 = vor.u32 %v3518_v50, %v3272_v48  ;;  %v3298_v50 = vld [vmem:[#allocation2 + $0x1f8] sm:$0xf0] }
 0x4b5   : > { %1861 = vst [vmem:[#allocation2 + $0x230] sm:$0xff] %v1859_v0  ;;  %v3264_v63 = vld [vmem:[#allocation2 + $0x1b0] sm:$0xf] }
 0x4b6   : > { %1842 = vst [vmem:[#allocation2 + $0x228] sm:$0xff] %v1840_v61  ;;  %v1742_v3 = vpop.permute.xlu1 %1741 }
 0x4b7   : > { %v1744_v10 = vsel %vm240_vm4, %v4276_v46, %v1742_v3  ;;  %v1746_v11 = vsel %vm240_vm4, %v1742_v3, %v4276_v46  ;;  %v1762_v31 = vpop.permute.xlu0 %1761  ;;  %v3256_v3 = vld [vmem:[#allocation2 + $0x1a0] sm:$0xf] }
 0x4b8   : > { %v1749_v6 = vmul.f32 %v1746_v11, %v3780_v52  ;;  %v1750_v12 = vmul.f32 %v1744_v10, %v3783_v53  ;;  %v1764_v13 = vsel %vm263_vm3, %v4286_v1, %v1762_v31  ;;  %v1766_v18 = vsel %vm263_vm3, %v1762_v31, %v4286_v1  ;;  %v3028_v52 = vld [vmem:[%s4446_s1 + $0x78] sm:$0xf]  ;;  %v3458_v53 = vld [vmem:[%s4446_s1 + $0x88] sm:$0xf0]  ;;  %v3514_v10 = vld [vmem:[#allocation2 + $0x1a4] sm:$0xf0] }
 0x4b9   : > { %v1769_v23 = vmul.f32 %v1766_v18, %v3761_v14  ;;  %v1770_v25 = vmul.f32 %v1764_v13, %v3764_v17  ;;  %v3029_v1 = vor.u32 %v3458_v53, %v3028_v52  ;;  %v3512_v53 = vld [vmem:[#allocation2 + $0x194] sm:$0xf0] }
 0x4ba   : > { %v1752_v46 = vpack.c.bf16 %v1750_v12, %v1749_v6 }
 0x4bb   : > { %v1772_v2 = vpack.c.bf16 %v1770_v25, %v1769_v23  ;;  %2339 = vmatmul.bf16.vlgmr.msra.gmra.mxu0 %v3029_v1  ;;  %v3320_v11 = vld [vmem:[#allocation2 + $0x220] sm:$0xf]  ;;  %2423 = vmatmul.bf16.vlgmr.msra.gmra.mxu1 %v4340_v4 }
 0x4bc   : > { %1754 = vst [vmem:[#allocation2 + $0x1d8] sm:$0xff] %v1752_v46  ;;  %v3328_v49 = vld [vmem:[#allocation2 + $0x230] sm:$0xf]  ;;  %v3531_v12 = vld [vmem:[#allocation2 + $0x234] sm:$0xf] }
 0x4bd   : > { %1774 = vst [vmem:[#allocation2 + $0x1e8] sm:$0xff] %v1772_v2  ;;  %v3530_v25 = vld [vmem:[#allocation2 + $0x224] sm:$0xf0]  ;;  %v3529_v46 = vld [vmem:[#allocation2 + $0x224] sm:$0xf] }
 0x4be   : > { %v1806_v26 = vpop.permute.xlu1 %1805  ;;  %v3322_v2 = vld [vmem:[#allocation2 + $0x228] sm:$0xf0]  ;;  %v3321_v4 = vor.u32 %v3530_v25, %v3320_v11  ;;  %v3499_v25 = vld [vmem:[#allocation2 + $0x134] sm:$0xf] }
 0x4bf   : > { %v1702_v27 = vpop.permute.xlu0 %1701 }
 0x4c0   : > { %v1704_v14 = vsel %vm194_vm6, %v4294_v21, %v1702_v27  ;;  %v1706_v17 = vsel %vm194_vm6, %v1702_v27, %v4294_v21 }
 0x4c1   : > { %v1709_v29 = vmul.f32 %v1706_v17, %v3818_v34  ;;  %v1710_v33 = vmul.f32 %v1704_v14, %v3821_v40  ;;  %v3325_v14 = vor.u32 %v3529_v46, %v3322_v2  ;;  %v3519_v46 = vld [vmem:[#allocation2 + $0x1d4] sm:$0xf] }
 0x4c3   : > { %v1712_v38 = vpack.c.bf16 %v1710_v33, %v1709_v29  ;;  %v3520_v42 = vld [vmem:[#allocation2 + $0x1d4] sm:$0xf0]  ;;  %v3248_v33 = vld [vmem:[#allocation2 + $0x190] sm:$0xf] }
 0x4c4   : > { %v3522_v21 = vld [vmem:[#allocation2 + $0x1e4] sm:$0xf0]  ;;  %2409 = vmatmul.bf16.vlgmr.msrb.gmra.mxu2 %v3029_v1  ;;  %v3281_v47 = vor.u32 %v3520_v42, %v3280_v15  ;;  %v3240_v42 = vld [vmem:[#allocation2 + $0x180] sm:$0xf]  ;;  %v3290_v11 = vld [vmem:[#allocation2 + $0x1e8] sm:$0xf0] }
 0x4c5   : > { %1714 = vst [vmem:[#allocation2 + $0x1b8] sm:$0xff] %v1712_v38  ;;  %v3289_v62 = vor.u32 %v3522_v21, %v3288_v39  ;;  %v3249_v21 = vor.u32 %v3512_v53, %v3248_v33  ;;  %v3517_v53 = vld [vmem:[#allocation2 + $0x1c4] sm:$0xf]  ;;  %v3178_v33 = vld [vmem:[#allocation2 + $0x108] sm:$0xf0] }
 0x4c6   : > { %v1850_v41 = vpop.permute.xlu1 %1849 }
 0x4c7   : > { %v1852_v43 = vsel %vm365_vm7, %v4278_v8, %v1850_v41  ;;  %v1854_v34 = vsel %vm365_vm7, %v1850_v41, %v4278_v8  ;;  %v1804_v40 = vpop.permute.xlu0 %1803  ;;  %2374 = vmatpush.bf16.msrb.mxu3 %v3289_v62  ;;  %v3234_v62 = vld [vmem:[#allocation2 + $0x178] sm:$0xf0] }
 0x4c8   : > { %v1857_v22 = vmul.f32 %v3554_v44, %v1852_v43  ;;  %v1858_v59 = vmul.f32 %v3555_v24, %v1854_v34  ;;  %v1811_v51 = vsel %vm319_vm1, %v1804_v40, %v4302_v58  ;;  %v1813_v8 = vsel %vm319_vm1, %v4302_v58, %v1804_v40  ;;  %v3510_v43 = vld [vmem:[#allocation2 + $0x184] sm:$0xf0]  ;;  %v3457_v34 = vld [vmem:[%s4446_s1 + $0x84] sm:$0xf] }
 0x4c9   : > { %v1815_v16 = vmul.f32 %v1811_v51, %v3723_v36  ;;  %v1816_v45 = vmul.f32 %v1813_v8, %v3726_v37  ;;  %v3241_v24 = vor.u32 %v3510_v43, %v3240_v42  ;;  %v3507_v8 = vld [vmem:[#allocation2 + $0x174] sm:$0xf]  ;;  %v3250_v42 = vld [vmem:[#allocation2 + $0x198] sm:$0xf0] }
 0x4ca   : > { %v1860_v19 = vpack.c.bf16 %v1858_v59, %v1857_v22  ;;  %v3237_v15 = vor.u32 %v3507_v8, %v3234_v62  ;;  %v3511_v43 = vld [vmem:[#allocation2 + $0x194] sm:$0xf] }
 0x4cb   : > { %v1819_v9 = vpack.c.bf16 %v1816_v45, %v1815_v16  ;;  %2375 = vmatpush.bf16.msrb.mxu3 %v3281_v47  ;;  %v3226_v45 = vld [vmem:[#allocation2 + $0x168] sm:$0xf0]  ;;  %v3505_v47 = vld [vmem:[#allocation2 + $0x164] sm:$0xf] }
 0x4cc   : > { %1862 = vst [vmem:[#allocation2 + $0x238] sm:$0xff] %v1860_v19  ;;  %v3516_v20 = vld [vmem:[#allocation2 + $0x1b4] sm:$0xf0]  ;;  %v3503_v19 = vld [vmem:[#allocation2 + $0x154] sm:$0xf]  ;;  %v3229_v48 = vor.u32 %v3505_v47, %v3226_v45 }
 0x4cd   : > { %1821 = vst [vmem:[#allocation2 + $0x210] sm:$0xff] %v1819_v9  ;;  %v3265_v5 = vor.u32 %v3516_v20, %v3264_v63  ;;  %v3218_v9 = vld [vmem:[#allocation2 + $0x158] sm:$0xf0] }
 0x4ce   : > { %v1784_v54 = vpop.permute.xlu1 %1783 }
 0x4cf   : > { %v1810_v60 = vpop.permute.xlu0 %1809  ;;  %2376 = vmatpush.bf16.msrb.mxu3 %v3273_v30  ;;  %v3044_v30 = vld [vmem:[%s4446_s1 + $0x88] sm:$0xf] }
 0x4d0   : > { %v1812_v58 = vsel %vm319_vm1, %v1806_v26, %v1810_v60  ;;  %v1814_v57 = vsel %vm319_vm1, %v1810_v60, %v1806_v26  ;;  %v3460_v60 = vld [vmem:[%s4446_s1 + $0x98] sm:$0xf0] }
 0x4d1   : > { %v1817_v0 = vmul.f32 %v1812_v58, %v3723_v36  ;;  %v1818_v61 = vmul.f32 %v1814_v57, %v3726_v37  ;;  %v3257_v36 = vor.u32 %v3514_v10, %v3256_v3  ;;  %v1786_v37 = vpop.permute.xlu2 %1785  ;;  %v3045_v3 = vor.u32 %v3460_v60, %v3044_v30  ;;  %v3210_v10 = vld [vmem:[#allocation2 + $0x148] sm:$0xf0] }
 0x4d3   : > { %v1820_v31 = vpack.c.bf16 %v1818_v61, %v1817_v0  ;;  %2377 = vmatpush.bf16.msrb.mxu3 %v3265_v5  ;;  %v3532_v6 = vld [vmem:[#allocation2 + $0x234] sm:$0xf0]  ;;  %v3330_v13 = vld [vmem:[#allocation2 + $0x238] sm:$0xf0]  ;;  %v3523_v61 = vld [vmem:[#allocation2 + $0x1f4] sm:$0xf]  ;;  %v3221_v5 = vor.u32 %v3503_v19, %v3218_v9 }
 0x4d4   : > { %v3329_v18 = vor.u32 %v3532_v6, %v3328_v49  ;;  %v3333_v23 = vor.u32 %v3531_v12, %v3330_v13  ;;  %v3312_v7 = vld [vmem:[#allocation2 + $0x210] sm:$0xf]  ;;  %v3527_v44 = vld [vmem:[#allocation2 + $0x214] sm:$0xf]  ;;  %v3301_v49 = vor.u32 %v3523_v61, %v3298_v50  ;;  %v3521_v6 = vld [vmem:[#allocation2 + $0x1e4] sm:$0xf] }
 0x4d5   : > { %1822 = vst [vmem:[#allocation2 + $0x218] sm:$0xff] %v1820_v31  ;;  %v3501_v31 = vld [vmem:[#allocation2 + $0x144] sm:$0xf]  ;;  %v3293_v13 = vor.u32 %v3521_v6, %v3290_v11 }
 0x4d6   : > { %v1790_v52 = vpop.permute.xlu1 %1789  ;;  %2391 = vmatpush.bf16.msrb.mxu0 %v3329_v18  ;;  %2461 = vmatpush.bf16.msra.mxu2 %v3333_v23  ;;  %v3213_v12 = vor.u32 %v3501_v31, %v3210_v10  ;;  %v3202_v18 = vld [vmem:[#allocation2 + $0x138] sm:$0xf0] }
 0x4d7   : > { %v1792_v26 = vsel %vm296_vm2, %v1786_v37, %v1790_v52  ;;  %v1794_v1 = vsel %vm296_vm2, %v1790_v52, %v1786_v37  ;;  %v1788_v27 = vpop.permute.xlu0 %1787  ;;  %2378 = vmatpush.bf16.msrb.mxu3 %v3257_v36  ;;  %v3282_v23 = vld [vmem:[#allocation2 + $0x1d8] sm:$0xf0]  ;;  %v3205_v2 = vor.u32 %v3499_v25, %v3202_v18  ;;  %v3497_v37 = vld [vmem:[#allocation2 + $0x124] sm:$0xf]  ;;  %v3194_v52 = vld [vmem:[#allocation2 + $0x128] sm:$0xf0] }
 0x4d8   : > { %v1797_v17 = vmul.f32 %v1792_v26, %v3742_v55  ;;  %v1798_v28 = vmul.f32 %v1794_v1, %v3745_v56  ;;  %v1791_v32 = vsel %vm296_vm2, %v1784_v54, %v1788_v27  ;;  %v1793_v29 = vsel %vm296_vm2, %v1788_v27, %v1784_v54  ;;  %v3274_v26 = vld [vmem:[#allocation2 + $0x1c8] sm:$0xf0] }
 0x4d9   : > { %v1795_v38 = vmul.f32 %v1791_v32, %v3742_v55  ;;  %v1796_v39 = vmul.f32 %v1793_v29, %v3745_v56  ;;  %v3038_v55 = vld [vmem:[%s4446_s1 + $0x94] sm:$0xf0]  ;;  %v3285_v36 = vor.u32 %v3519_v46, %v3282_v23  ;;  %v3197_v1 = vor.u32 %v3497_v37, %v3194_v52 }
 0x4da   : > { %v1800_v41 = vpack.c.bf16 %v1798_v28, %v1797_v17  ;;  %2392 = vmatpush.bf16.msrb.mxu0 %v3321_v4  ;;  %2462 = vmatpush.bf16.msra.mxu2 %v3325_v14  ;;  %v4427_v16 = vor.u32 %v3457_v34, %v3038_v55  ;;  %v3277_v27 = vor.u32 %v3517_v53, %v3274_v26  ;;  %v3495_v4 = vld [vmem:[#allocation2 + $0x114] sm:$0xf]  ;;  %v3186_v14 = vld [vmem:[#allocation2 + $0x118] sm:$0xf0] }
 0x4db   : > { %v1799_v40 = vpack.c.bf16 %v1796_v39, %v1795_v38  ;;  %2379 = vmatpush.bf16.msrb.mxu3 %v3249_v21  ;;  %v3266_v17 = vld [vmem:[#allocation2 + $0x1b8] sm:$0xf0]  ;;  %v3515_v28 = vld [vmem:[#allocation2 + $0x1b4] sm:$0xf]  ;;  %v3189_v32 = vor.u32 %v3495_v4, %v3186_v14  ;;  %v3258_v38 = vld [vmem:[#allocation2 + $0x1a8] sm:$0xf0]  ;;  %v3253_v34 = vor.u32 %v3511_v43, %v3250_v42 }
 0x4dc   : > { %1802 = vst [vmem:[#allocation2 + $0x208] sm:$0xff] %v1800_v41  ;;  %v3528_v56 = vld [vmem:[#allocation2 + $0x214] sm:$0xf0]  ;;  %v3314_v22 = vld [vmem:[#allocation2 + $0x218] sm:$0xf0]  ;;  %v3269_v29 = vor.u32 %v3515_v28, %v3266_v17 }
 0x4dd   : > { %1801 = vst [vmem:[#allocation2 + $0x200] sm:$0xff] %v1799_v40  ;;  %v3313_v59 = vor.u32 %v3528_v56, %v3312_v7  ;;  %v3317_v51 = vor.u32 %v3527_v44, %v3314_v22  ;;  %v3493_v39 = vld [vmem:[#allocation2 + $0x104] sm:$0xf]  ;;  %v3242_v7 = vld [vmem:[#allocation2 + $0x188] sm:$0xf0] }
 0x4de   : > { %v3513_v21 = vld [vmem:[#allocation2 + $0x1a4] sm:$0xf]  ;;  %v3181_v62 = vor.u32 %v3493_v39, %v3178_v33 }
 0x4df   : > { %2380 = vmatpush.bf16.msrb.mxu3 %v3241_v24  ;;  %2393 = vmatpush.bf16.msrb.mxu0 %v3313_v59  ;;  %v3261_v41 = vor.u32 %v3513_v21, %v3258_v38  ;;  %v3509_v40 = vld [vmem:[#allocation2 + $0x184] sm:$0xf] }
 0x4e0   : > { %2463 = vmatpush.bf16.msra.mxu2 %v3317_v51  ;;  %v3245_v44 = vor.u32 %v3509_v40, %v3242_v7 }
 0x4e2   : > { %2381 = vmatmul.bf16.vlgmr.msrb.gmra.mxu3 %v4427_v16 }
 0x4e3   : > { %2429 = vmatpush.bf16.msra.mxu3 %v3237_v15  ;;  %v3526_v54 = vld [vmem:[#allocation2 + $0x204] sm:$0xf0]  ;;  %v3306_v20 = vld [vmem:[#allocation2 + $0x208] sm:$0xf0] }
 0x4e4   : > { %v3304_v58 = vld [vmem:[#allocation2 + $0x200] sm:$0xf]  ;;  %v3525_v57 = vld [vmem:[#allocation2 + $0x204] sm:$0xf] }
 0x4e5   : > { %v3305_v63 = vor.u32 %v3526_v54, %v3304_v58  ;;  %v3309_v0 = vor.u32 %v3525_v57, %v3306_v20 }
 0x4e7   : > { %2430 = vmatpush.bf16.msra.mxu3 %v3229_v48  ;;  %2394 = vmatpush.bf16.msrb.mxu0 %v3305_v63 }
 0x4e8   : > { %2464 = vmatpush.bf16.msra.mxu2 %v3309_v0 }
 0x4ea   : > { %3334 = vmatmul.msk.bf16.vlgmr.msrb.gmra.mxu0 %vm2327_vm11, %v3045_v3 }
 0x4eb   : > { %2431 = vmatpush.bf16.msra.mxu3 %v3221_v5  ;;  %2443 = vmatpush.bf16.msra.mxu0 %v3301_v49 }
 0x4ec   : > { %3335 = vmatmul.msk.bf16.vlgmr.msra.gmra.mxu2 %vm2327_vm11, %v3045_v3 }
 0x4ef   : > { %2432 = vmatpush.bf16.msra.mxu3 %v3213_v12  ;;  %2444 = vmatpush.bf16.msra.mxu0 %v3293_v13 }
 0x4f3   : > { %2433 = vmatpush.bf16.msra.mxu3 %v3205_v2  ;;  %2445 = vmatpush.bf16.msra.mxu0 %v3285_v36 }
 0x4f7   : > { %2434 = vmatpush.bf16.msra.mxu3 %v3197_v1  ;;  %2446 = vmatpush.bf16.msra.mxu0 %v3277_v27 }
 0x4fb   : > { %2435 = vmatpush.bf16.msra.mxu3 %v3189_v32  ;;  %2447 = vmatpush.bf16.msra.mxu0 %v3269_v29 }
 0x4ff   : > { %2436 = vmatpush.bf16.msra.mxu3 %v3181_v62  ;;  %2448 = vmatpush.bf16.msra.mxu0 %v3261_v41 }
 0x502   : > { %2437 = vmatmul.bf16.vlgmr.msra.gmra.mxu3 %v4379_v35 }
 0x503   : > { %2449 = vmatpush.bf16.msra.mxu0 %v3253_v34 }
 0x507   : > { %2450 = vmatpush.bf16.msra.mxu0 %v3245_v44 }
 0x50a   : > { %2451 = vmatmul.bf16.vlgmr.msra.gmra.mxu0 %v4427_v16 }
 0x528   : > { %v2368_v59 = vpop.f32.mrf.mxu1 }
 0x530   : > { %v2370_v48 = vpop.f32.mrf.mxu1 }
 0x537   : > { %v2354_v56 = vpop.f32.mrf.mxu2 }
 0x538   : > { %v2340_v55 = vpop.f32.mrf.mxu0  ;;  %v2424_v58 = vpop.f32.mrf.mxu1 }
 0x539   : > { %v2355_v24 = vadd.f32 %v2354_v56, %v2340_v55 }
 0x53b   : > { %v2369_v51 = vadd.f32 %v2368_v59, %v2355_v24 }
 0x53f   : > { %v2356_v8 = vpop.f32.mrf.mxu2 }
 0x540   : > { %v2342_v22 = vpop.f32.mrf.mxu0  ;;  %v2426_v3 = vpop.f32.mrf.mxu1 }
 0x541   : > { %v2357_v35 = vadd.f32 %v2356_v8, %v2342_v22 }
 0x543   : > { %v2371_v9 = vadd.f32 %v2370_v48, %v2357_v35 }
 0x547   : > { %v2410_v54 = vpop.f32.mrf.mxu2 }
 0x548   : > { %v2425_v57 = vadd.f32 %v2424_v58, %v2410_v54 }
 0x54f   : > { %v2412_v60 = vpop.f32.mrf.mxu2 }
 0x550   : > { %v2427_v11 = vadd.f32 %v2426_v3, %v2412_v60 }
 0x565   : > { %v2382_v15 = vpop.f32.mrf.mxu3 }
 0x566   : > { %v2383_v45 = vadd.f32 %v2382_v15, %v2369_v51 }
 0x567   : > { %v2396_v47 = vpop.f32.mrf.mxu0 }
 0x568   : > { %v2397_v19 = vadd.f32 %v2396_v47, %v2383_v45 }
 0x56a   : > { %2471 = vst [vmem:[%s3606_s21 + $0x80] sm:$0xff] %v2397_v19 }
 0x56d   : > { %v2384_v50 = vpop.f32.mrf.mxu3 }
 0x56e   : > { %v2385_v30 = vadd.f32 %v2384_v50, %v2371_v9 }
 0x56f   : > { %v2398_v16 = vpop.f32.mrf.mxu0  ;;  %v2466_v61 = vpop.f32.mrf.mxu2 }
 0x570   : > { %v2399_v20 = vadd.f32 %v2398_v16, %v2385_v30 }
 0x572   : > { %2473 = vst [vmem:[%s3606_s21 + $0x90] sm:$0xff] %v2399_v20 }
 0x577   : > { %v2468_v18 = vpop.f32.mrf.mxu2 }
 0x585   : > { %v2438_v63 = vpop.f32.mrf.mxu3 }
 0x586   : > { %v2439_v0 = vadd.f32 %v2438_v63, %v2425_v57 }
 0x587   : > { %v2452_v5 = vpop.f32.mrf.mxu0 }
 0x588   : > { %v2453_v49 = vadd.f32 %v2452_v5, %v2439_v0 }
 0x58a   : > { %v2467_v10 = vadd.f32 %v2466_v61, %v2453_v49 }
 0x58c   : > { %2472 = vst [vmem:[%s3606_s21 + $0x88] sm:$0xff] %v2467_v10 }
 0x58d   : > { %v2440_v31 = vpop.f32.mrf.mxu3 }
 0x58e   : > { %v2441_v6 = vadd.f32 %v2440_v31, %v2427_v11 }
 0x58f   : > { %v2454_v12 = vpop.f32.mrf.mxu0 }
 0x590   : > { %v2455_v13 = vadd.f32 %v2454_v12, %v2441_v6 }
 0x592   : > { %v2469_v23 = vadd.f32 %v2468_v18, %v2455_v13 }
 0x594   : > { %2474 = vst [vmem:[%s3606_s21 + $0x98] sm:$0xff] %v2469_v23 }
 0x595 PF: > { %s13_s12 = sadd.s32 1, %s3562_s12  }
 0x596   : > { %p10_p4 = scmp.ge.s32.totalorder %s13_s12, 4  }
 0x598   :  { %12 = sbr.rel (!%p10_p4) target bundleno = 1 (0x1), region = 65 }

</bundles_post_ra>
